<compile_context>
chip_gen: v7x
topology: tpu7x:2x2x1
jax: 0.10.0
libtpu: 0.0.40
codegen_flags: <defaults>
</compile_context>

<pallas_src>
import jax
import jax.numpy as jnp
from jax.experimental import pallas as pl
from jax.experimental.pallas import tpu as pltpu

# ----------------------- small, shape-consistent config -----------------------
CONFIG = {
    "ntoken": 50,
    "nlayers": 2,
    "nhid": 32,
    "ninp": 32,
    "attention-unit": 64,
    "attention-hops": 1,
}


# ------------------------------ weight preparation -----------------------------
def _interleave_gates(gf, gb, nh):
    """[..., 4*nh] (i,f,g,o) per direction -> [..., 8*nh] as [i_f i_b f_f f_b g_f g_b o_f o_b]."""
    lead = gf.shape[:-1]
    gf4 = gf.reshape(lead + (4, nh))
    gb4 = gb.reshape(lead + (4, nh))
    return jnp.concatenate([gf4, gb4], axis=-1).reshape(lead + (8 * nh,))


def _block_hh(w_hh_f, w_hh_b, nh):
    """Block recurrent weight so [h_f | h_b] @ W drives both directions in one matmul."""
    wf = w_hh_f.T.astype(jnp.float32)        # [nh, 4*nh]
    wb = w_hh_b.T.astype(jnp.float32)
    z = jnp.zeros_like(wf)
    top = _interleave_gates(wf, z, nh)       # rows driven by h_fwd -> fwd gate slots
    bot = _interleave_gates(z, wb, nh)       # rows driven by h_bwd -> bwd gate slots
    return jnp.concatenate([top, bot], axis=0)   # [2*nh, 8*nh]


def prepare_params(embed, lstm_params, ws1, ws2):
    """One-time re-layout of the PyTorch-style parameters into kernel-ready tensors."""
    nh = CONFIG["nhid"]
    assert CONFIG["attention-hops"] == 1, "kernel is specialized for attention-hops == 1"
    (l0_fwd, l0_bwd), (l1_fwd, l1_bwd) = lstm_params

    w_ih0f, w_hh0f, b_ih0f, b_hh0f = l0_fwd
    w_ih0b, w_hh0b, b_ih0b, b_hh0b = l0_bwd
    w_ih1f, w_hh1f, b_ih1f, b_hh1f = l1_fwd
    w_ih1b, w_hh1b, b_ih1b, b_hh1b = l1_bwd

    f32, bf16 = jnp.float32, jnp.bfloat16

    # layer-0 input projection folded into the embedding table (biases included).
    # kept f32: this term carries the biases / input contribution into the gates.
    proj0f = (embed @ w_ih0f.T + b_ih0f + b_hh0f).astype(f32)      # [ntoken, 4*nh]
    proj0b = (embed @ w_ih0b.T + b_ih0b + b_hh0b).astype(f32)

    # bf16 MXU operands (f32 accumulation is requested at the dot sites inside the kernel)
    whh0 = _block_hh(w_hh0f, w_hh0b, nh).astype(bf16)              # [2*nh, 8*nh]
    whh1 = _block_hh(w_hh1f, w_hh1b, nh).astype(bf16)

    z1 = jnp.zeros_like(w_ih1f.T).astype(f32)                      # [2*nh, 4*nh]
    wx1f = _interleave_gates(w_ih1f.T.astype(f32), z1, nh)         # fwd gate slots, [2*nh, 8*nh]
    wx1b = _interleave_gates(z1, w_ih1b.T.astype(f32), nh)         # bwd gate slots
    # single K = 4*nh (=128) weight: rows 0..2nh-1 multiply h0_aligned(t), rows 2nh.. multiply
    # h0_aligned(seq-1-t)
    wx1 = jnp.concatenate([wx1f, wx1b], axis=0).astype(bf16)       # [4*nh, 8*nh]

    b1v = _interleave_gates((b_ih1f + b_hh1f).astype(f32),
                            (b_ih1b + b_hh1b).astype(f32), nh)[None, :]   # [1, 8*nh]

    ws1t = ws1.T.astype(bf16)                                      # [2*nh, au]
    ws2_row = ws2.astype(f32)                                      # [1, au]   (hops == 1)
    return (proj0f, proj0b, whh0, wx1, b1v, whh1, ws1t, ws2_row)


# --------------------------------- fused kernel --------------------------------
def _sas_fused_kernel(gx0_ref, whh0_ref, wx1_ref, b1_ref, whh1_ref,
                      ws1t_ref, ws2_ref, mask_ref, out_ref,
                      h0_ref, gx1_ref, h1_ref):
    seq, bp, _ = gx0_ref.shape
    d2 = whh0_ref.shape[0]           # 2*nhid
    nh = d2 // 2
    f32, bf16 = jnp.float32, jnp.bfloat16

    def run_layer(gx_ref, whh_bf, hout_ref):
        """Fused fwd+bwd recurrence.  gx_ref[t] holds the pre-projected input gates for loop step
        t (fwd slots use time t, bwd slots use time seq-1-t).  Writes the raw per-step outputs
        [h_f(t) | h_b(seq-1-t)] into hout_ref[t]."""
        def step(t, carry):
            hcat, ccat = carry
            gates = gx_ref[t] + jnp.dot(hcat.astype(bf16), whh_bf,
                                        preferred_element_type=f32)
            # gate layout: [i_f i_b | f_f f_b | g_f g_b | o_f o_b], each block d2 lanes
            icat = gates[:, 0 * d2:1 * d2]
            fcat = gates[:, 1 * d2:2 * d2]
            gcat = gates[:, 2 * d2:3 * d2]
            ocat = gates[:, 3 * d2:4 * d2]
            c_new = jax.nn.sigmoid(fcat) * ccat + jax.nn.sigmoid(icat) * jnp.tanh(gcat)
            h_new = jax.nn.sigmoid(ocat) * jnp.tanh(c_new)
            hout_ref[t] = h_new
            return (h_new, c_new)

        zero = jnp.zeros((bp, d2), f32)
        _ = jax.lax.fori_loop(0, seq, step, (zero, zero), unroll=True)

    # ---- layer 0 (input projection already folded into the embedding table) ----
    run_layer(gx0_ref, whh0_ref[...], h0_ref)

    # ---- layer 1 input projection: ONE K=2*d2 matmul over all timesteps --------
    h01 = []
    for t in range(seq):
        s = seq - 1 - t
        a = h0_ref[t]                                   # [h_f(t)       | h_b(s)]
        b = h0_ref[s]                                   # [h_f(s)       | h_b(t)]
        h01.append(jnp.concatenate(
            [a[:, :nh], b[:, nh:],                      # h0 aligned at time t (fwd input)
             b[:, :nh], a[:, nh:]], axis=-1))           # h0 aligned at time s (bwd input)
    h01_flat = jnp.concatenate(h01, axis=0)             # [seq*bp, 2*d2]
    gx1 = (jnp.dot(h01_flat.astype(bf16), wx1_ref[...],
                   preferred_element_type=f32) + b1_ref[...])     # [seq*bp, 4*d2]
    gx1_ref[...] = gx1.reshape(seq, bp, 4 * d2)

    run_layer(gx1_ref, whh1_ref[...], h1_ref)

    # ---- structured self-attention epilogue (hops == 1) ------------------------
    # time-aligned layer-1 outputs: h1a[t] = [h_f(t) | h_b(t)]
    h1a = []
    for t in range(seq):
        a = h1_ref[t]
        b = h1_ref[seq - 1 - t]
        h1a.append(jnp.concatenate([a[:, :nh], b[:, nh:]], axis=-1))
    h1a_flat = jnp.concatenate(h1a, axis=0)              # [seq*bp, d2]

    hbar = jnp.tanh(jnp.dot(h1a_flat.astype(bf16), ws1t_ref[...],
                            preferred_element_type=f32))           # [seq*bp, au]
    score = jnp.sum(hbar * ws2_ref[...], axis=-1, keepdims=True)   # [seq*bp, 1]

    # vectorized masked softmax over seq, lane layout [bp, seq]
    scores = jnp.concatenate([score[t * bp:(t + 1) * bp, :] for t in range(seq)],
                             axis=1)                               # [bp, seq]
    pen = scores - 10000.0 * mask_ref[...]                         # [bp, seq]
    m = jnp.max(pen, axis=-1, keepdims=True)                       # [bp, 1]   (XLU)
    e = jnp.exp(pen - m)                                           # [bp, seq] (EUP)
    denom = jnp.sum(e, axis=-1, keepdims=True)                     # [bp, 1]
    alpha = e * (1.0 / denom)                                      # [bp, seq]

    # weighted sum over seq positions (bmm(alphas, outp) with hops == 1)
    acc = jnp.zeros((bp, d2), f32)
    for t in range(seq):
        acc = acc + alpha[:, t:t + 1] * h1a[t]
    out_ref[...] = acc                                             # [bp, 2*nh]


# --------------------------------- full forward --------------------------------
@jax.jit
def sas_encoder_forward(input_ids, prep):
    """input_ids: [seq, batch] int32 (time-major).  Returns [batch, hops, 2*nhid]."""
    (proj0f, proj0b, whh0, wx1, b1v, whh1, ws1t, ws2_row) = prep
    seq, bsz = input_ids.shape
    d2 = whh0.shape[0]
    nh = d2 // 2
    # pad batch to a full sublane group; for real throughput callers should pack micro-batches
    # so bp reaches 128+ (fills the MXU sublane dimension) -- the kernel handles any multiple of 8.
    bp = max(8, ((bsz + 7) // 8) * 8)

    ids_p = jnp.zeros((seq, bp), jnp.int32).at[:, :bsz].set(input_ids)

    # table-level layer-0 input projection + gather (removes x @ W_ih from the recurrence)
    gx0f = jnp.take(proj0f, ids_p, axis=0)          # [seq, bp, 4*nh]
    gx0b = jnp.take(proj0b, ids_p, axis=0)[::-1]    # pre-reversed for the backward direction
    gx0 = _interleave_gates(gx0f, gx0b, nh)         # [seq, bp, 8*nh]

    # padding mask (token id == 0), batch-major so the kernel never transposes
    mask_bt = jnp.transpose((ids_p == 0).astype(jnp.float32))     # [bp, seq]

    vmem = pl.BlockSpec(memory_space=pltpu.MemorySpace.VMEM)
    out_p = pl.pallas_call(
        _sas_fused_kernel,
        out_shape=jax.ShapeDtypeStruct((bp, d2), jnp.float32),
        in_specs=[vmem] * 8,
        out_specs=vmem,
        scratch_shapes=[
            pltpu.VMEM((seq, bp, d2), jnp.float32),       # layer-0 raw per-step outputs
            pltpu.VMEM((seq, bp, 4 * d2), jnp.float32),   # layer-1 pre-projected input gates
            pltpu.VMEM((seq, bp, d2), jnp.float32),       # layer-1 raw per-step outputs
        ],
    )(gx0, whh0, wx1, b1v, whh1, ws1t, ws2_row, mask_bt)

    return out_p[:bsz, None, :]                     # [bsz, hops=1, 2*nhid]


# ----------------------------------- params ------------------------------------
def init_params(key):
    ninp, nhid, nlayers = CONFIG["ninp"], CONFIG["nhid"], CONFIG["nlayers"]
    au, hops, ntoken = CONFIG["attention-unit"], CONFIG["attention-hops"], CONFIG["ntoken"]

    keys = jax.random.split(key, 4 + nlayers * 2 * 4)
    ki = iter(range(len(keys)))

    embed = 0.1 * jax.random.normal(keys[next(ki)], (ntoken, ninp), jnp.float32)

    lstm_params = []
    for layer in range(nlayers):
        in_dim = ninp if layer == 0 else 2 * nhid
        dirs = []
        for _ in range(2):  # forward, backward
            w_ih = 0.1 * jax.random.normal(keys[next(ki)], (4 * nhid, in_dim), jnp.float32)
            w_hh = 0.1 * jax.random.normal(keys[next(ki)], (4 * nhid, nhid), jnp.float32)
            b_ih = 0.1 * jax.random.normal(keys[next(ki)], (4 * nhid,), jnp.float32)
            b_hh = 0.1 * jax.random.normal(keys[next(ki)], (4 * nhid,), jnp.float32)
            dirs.append((w_ih, w_hh, b_ih, b_hh))
        lstm_params.append(tuple(dirs))

    ws1 = 0.1 * jax.random.normal(keys[next(ki)], (au, 2 * nhid), jnp.float32)
    ws2 = 0.1 * jax.random.normal(keys[next(ki)], (hops, au), jnp.float32)
    return embed, lstm_params, ws1, ws2


if __name__ == "__main__":
    seq, batch = 8, 2
    key = jax.random.PRNGKey(0)
    k_ids, k_params = jax.random.split(key)

    input_ids = jax.random.randint(k_ids, (seq, batch), 1, CONFIG["ntoken"], dtype=jnp.int32)
    # add some padding (token id 0) so the -10000 mask path is exercised
    input_ids = input_ids.at[-2:, 0].set(0)

    embed, lstm_params, ws1, ws2 = init_params(k_params)
    prep = prepare_params(embed, lstm_params, ws1, ws2)

    out = sas_encoder_forward(input_ids, prep)
    out = jax.block_until_ready(out)

    expected_shape = (batch, CONFIG["attention-hops"], 2 * CONFIG["nhid"])
    assert out.shape == expected_shape, (out.shape, expected_shape)
    assert bool(jnp.all(jnp.isfinite(out)))
    print("KERNEL_OK")
</pallas_src>

<mosaic_0001>
module attributes {stable_mosaic.version = 11 : i64} {
  func.func @_sas_fused_kernel(%arg0: memref<8x8x256xf32, #tpu.memory_space<vmem>>, %arg1: memref<64x256xbf16, #tpu.memory_space<vmem>>, %arg2: memref<128x256xbf16, #tpu.memory_space<vmem>>, %arg3: memref<1x256xf32, #tpu.memory_space<vmem>>, %arg4: memref<64x256xbf16, #tpu.memory_space<vmem>>, %arg5: memref<64x64xbf16, #tpu.memory_space<vmem>>, %arg6: memref<1x64xf32, #tpu.memory_space<vmem>>, %arg7: memref<8x8xf32, #tpu.memory_space<vmem>>, %arg8: memref<8x64xf32, #tpu.memory_space<vmem>>, %arg9: memref<8x8x64xf32, #tpu.memory_space<vmem>>, %arg10: memref<8x8x256xf32, #tpu.memory_space<vmem>>, %arg11: memref<8x8x64xf32, #tpu.memory_space<vmem>>) attributes {dimension_semantics = [], scalar_prefetch = 0 : i64, scratch_operands = 3 : i64, tpu.core_type = #tpu.core_type<tc>} {
    %c0 = arith.constant 0 : index
    %c0_0 = arith.constant 0 : index
    %0 = vector.load %arg1[%c0, %c0_0] : memref<64x256xbf16, #tpu.memory_space<vmem>>, vector<64x256xbf16>
    %cst = arith.constant 0.000000e+00 : f32
    %1 = vector.broadcast %cst : f32 to vector<8x64xf32>
    %c0_i32 = arith.constant 0 : i32
    %2 = arith.index_cast %c0_i32 : i32 to index
    %c0_1 = arith.constant 0 : index
    %c0_2 = arith.constant 0 : index
    %3 = vector.load %arg0[%2, %c0_1, %c0_2] : memref<8x8x256xf32, #tpu.memory_space<vmem>>, vector<1x8x256xf32>
    %4 = vector.shape_cast %3 : vector<1x8x256xf32> to vector<8x256xf32>
    %5 = arith.truncf %1 : vector<8x64xf32> to vector<8x64xbf16>
    %cst_3 = arith.constant dense<0.000000e+00> : vector<8x256xf32>
    %6 = tpu.matmul %5, %0, %cst_3 {dimension_numbers = #tpu.dot_dimension_numbers<[1], [0], [0], [1], [0, 0, 1, 1], [], []>} : vector<8x64xbf16>, vector<64x256xbf16>, vector<8x256xf32> -> vector<8x256xf32>
    %7 = arith.addf %4, %6 : vector<8x256xf32>
    %8 = vector.extract_strided_slice %7 {offsets = [0, 0], sizes = [8, 64], strides = [1, 1]} : vector<8x256xf32> to vector<8x64xf32>
    %9 = vector.extract_strided_slice %7 {offsets = [0, 64], sizes = [8, 64], strides = [1, 1]} : vector<8x256xf32> to vector<8x64xf32>
    %10 = vector.extract_strided_slice %7 {offsets = [0, 128], sizes = [8, 64], strides = [1, 1]} : vector<8x256xf32> to vector<8x64xf32>
    %11 = vector.extract_strided_slice %7 {offsets = [0, 192], sizes = [8, 64], strides = [1, 1]} : vector<8x256xf32> to vector<8x64xf32>
    %12 = arith.negf %9 : vector<8x64xf32>
    %13 = math.exp %12 : vector<8x64xf32>
    %cst_4 = arith.constant 1.000000e+00 : f32
    %14 = vector.broadcast %cst_4 : f32 to vector<8x64xf32>
    %15 = arith.addf %14, %13 : vector<8x64xf32>
    %16 = arith.divf %14, %15 : vector<8x64xf32>
    %17 = arith.mulf %16, %1 : vector<8x64xf32>
    %18 = arith.negf %8 : vector<8x64xf32>
    %19 = math.exp %18 : vector<8x64xf32>
    %cst_5 = arith.constant 1.000000e+00 : f32
    %20 = vector.broadcast %cst_5 : f32 to vector<8x64xf32>
    %21 = arith.addf %20, %19 : vector<8x64xf32>
    %22 = arith.divf %20, %21 : vector<8x64xf32>
    %23 = math.tanh %10 : vector<8x64xf32>
    %24 = arith.mulf %22, %23 : vector<8x64xf32>
    %25 = arith.addf %17, %24 : vector<8x64xf32>
    %26 = arith.negf %11 : vector<8x64xf32>
    %27 = math.exp %26 : vector<8x64xf32>
    %cst_6 = arith.constant 1.000000e+00 : f32
    %28 = vector.broadcast %cst_6 : f32 to vector<8x64xf32>
    %29 = arith.addf %28, %27 : vector<8x64xf32>
    %30 = arith.divf %28, %29 : vector<8x64xf32>
    %31 = math.tanh %25 : vector<8x64xf32>
    %32 = arith.mulf %30, %31 : vector<8x64xf32>
    %33 = arith.index_cast %c0_i32 : i32 to index
    %c0_7 = arith.constant 0 : index
    %c0_8 = arith.constant 0 : index
    %34 = vector.load %arg9[%33, %c0_7, %c0_8] : memref<8x8x64xf32, #tpu.memory_space<vmem>>, vector<1x8x64xf32>
    %35 = vector.shape_cast %34 : vector<1x8x64xf32> to vector<8x64xf32>
    %36 = vector.shape_cast %32 : vector<8x64xf32> to vector<1x8x64xf32>
    tpu.vector_store %arg9[%33, %c0_7, %c0_8], %36 {strides = array<i32>} : memref<8x8x64xf32, #tpu.memory_space<vmem>>, vector<1x8x64xf32>,
    %c1_i32 = arith.constant 1 : i32
    %37 = arith.index_cast %c1_i32 : i32 to index
    %c0_9 = arith.constant 0 : index
    %c0_10 = arith.constant 0 : index
    %38 = vector.load %arg0[%37, %c0_9, %c0_10] : memref<8x8x256xf32, #tpu.memory_space<vmem>>, vector<1x8x256xf32>
    %39 = vector.shape_cast %38 : vector<1x8x256xf32> to vector<8x256xf32>
    %40 = arith.truncf %32 : vector<8x64xf32> to vector<8x64xbf16>
    %cst_11 = arith.constant dense<0.000000e+00> : vector<8x256xf32>
    %41 = tpu.matmul %40, %0, %cst_11 {dimension_numbers = #tpu.dot_dimension_numbers<[1], [0], [0], [1], [0, 0, 1, 1], [], []>} : vector<8x64xbf16>, vector<64x256xbf16>, vector<8x256xf32> -> vector<8x256xf32>
    %42 = arith.addf %39, %41 : vector<8x256xf32>
    %43 = vector.extract_strided_slice %42 {offsets = [0, 0], sizes = [8, 64], strides = [1, 1]} : vector<8x256xf32> to vector<8x64xf32>
    %44 = vector.extract_strided_slice %42 {offsets = [0, 64], sizes = [8, 64], strides = [1, 1]} : vector<8x256xf32> to vector<8x64xf32>
    %45 = vector.extract_strided_slice %42 {offsets = [0, 128], sizes = [8, 64], strides = [1, 1]} : vector<8x256xf32> to vector<8x64xf32>
    %46 = vector.extract_strided_slice %42 {offsets = [0, 192], sizes = [8, 64], strides = [1, 1]} : vector<8x256xf32> to vector<8x64xf32>
    %47 = arith.negf %44 : vector<8x64xf32>
    %48 = math.exp %47 : vector<8x64xf32>
    %cst_12 = arith.constant 1.000000e+00 : f32
    %49 = vector.broadcast %cst_12 : f32 to vector<8x64xf32>
    %50 = arith.addf %49, %48 : vector<8x64xf32>
    %51 = arith.divf %49, %50 : vector<8x64xf32>
    %52 = arith.mulf %51, %25 : vector<8x64xf32>
    %53 = arith.negf %43 : vector<8x64xf32>
    %54 = math.exp %53 : vector<8x64xf32>
    %cst_13 = arith.constant 1.000000e+00 : f32
    %55 = vector.broadcast %cst_13 : f32 to vector<8x64xf32>
    %56 = arith.addf %55, %54 : vector<8x64xf32>
    %57 = arith.divf %55, %56 : vector<8x64xf32>
    %58 = math.tanh %45 : vector<8x64xf32>
    %59 = arith.mulf %57, %58 : vector<8x64xf32>
    %60 = arith.addf %52, %59 : vector<8x64xf32>
    %61 = arith.negf %46 : vector<8x64xf32>
    %62 = math.exp %61 : vector<8x64xf32>
    %cst_14 = arith.constant 1.000000e+00 : f32
    %63 = vector.broadcast %cst_14 : f32 to vector<8x64xf32>
    %64 = arith.addf %63, %62 : vector<8x64xf32>
    %65 = arith.divf %63, %64 : vector<8x64xf32>
    %66 = math.tanh %60 : vector<8x64xf32>
    %67 = arith.mulf %65, %66 : vector<8x64xf32>
    %68 = arith.index_cast %c1_i32 : i32 to index
    %c0_15 = arith.constant 0 : index
    %c0_16 = arith.constant 0 : index
    %69 = vector.load %arg9[%68, %c0_15, %c0_16] : memref<8x8x64xf32, #tpu.memory_space<vmem>>, vector<1x8x64xf32>
    %70 = vector.shape_cast %69 : vector<1x8x64xf32> to vector<8x64xf32>
    %71 = vector.shape_cast %67 : vector<8x64xf32> to vector<1x8x64xf32>
    tpu.vector_store %arg9[%68, %c0_15, %c0_16], %71 {strides = array<i32>} : memref<8x8x64xf32, #tpu.memory_space<vmem>>, vector<1x8x64xf32>,
    %c2_i32 = arith.constant 2 : i32
    %72 = arith.index_cast %c2_i32 : i32 to index
    %c0_17 = arith.constant 0 : index
    %c0_18 = arith.constant 0 : index
    %73 = vector.load %arg0[%72, %c0_17, %c0_18] : memref<8x8x256xf32, #tpu.memory_space<vmem>>, vector<1x8x256xf32>
    %74 = vector.shape_cast %73 : vector<1x8x256xf32> to vector<8x256xf32>
    %75 = arith.truncf %67 : vector<8x64xf32> to vector<8x64xbf16>
    %cst_19 = arith.constant dense<0.000000e+00> : vector<8x256xf32>
    %76 = tpu.matmul %75, %0, %cst_19 {dimension_numbers = #tpu.dot_dimension_numbers<[1], [0], [0], [1], [0, 0, 1, 1], [], []>} : vector<8x64xbf16>, vector<64x256xbf16>, vector<8x256xf32> -> vector<8x256xf32>
    %77 = arith.addf %74, %76 : vector<8x256xf32>
    %78 = vector.extract_strided_slice %77 {offsets = [0, 0], sizes = [8, 64], strides = [1, 1]} : vector<8x256xf32> to vector<8x64xf32>
    %79 = vector.extract_strided_slice %77 {offsets = [0, 64], sizes = [8, 64], strides = [1, 1]} : vector<8x256xf32> to vector<8x64xf32>
    %80 = vector.extract_strided_slice %77 {offsets = [0, 128], sizes = [8, 64], strides = [1, 1]} : vector<8x256xf32> to vector<8x64xf32>
    %81 = vector.extract_strided_slice %77 {offsets = [0, 192], sizes = [8, 64], strides = [1, 1]} : vector<8x256xf32> to vector<8x64xf32>
    %82 = arith.negf %79 : vector<8x64xf32>
    %83 = math.exp %82 : vector<8x64xf32>
    %cst_20 = arith.constant 1.000000e+00 : f32
    %84 = vector.broadcast %cst_20 : f32 to vector<8x64xf32>
    %85 = arith.addf %84, %83 : vector<8x64xf32>
    %86 = arith.divf %84, %85 : vector<8x64xf32>
    %87 = arith.mulf %86, %60 : vector<8x64xf32>
    %88 = arith.negf %78 : vector<8x64xf32>
    %89 = math.exp %88 : vector<8x64xf32>
    %cst_21 = arith.constant 1.000000e+00 : f32
    %90 = vector.broadcast %cst_21 : f32 to vector<8x64xf32>
    %91 = arith.addf %90, %89 : vector<8x64xf32>
    %92 = arith.divf %90, %91 : vector<8x64xf32>
    %93 = math.tanh %80 : vector<8x64xf32>
    %94 = arith.mulf %92, %93 : vector<8x64xf32>
    %95 = arith.addf %87, %94 : vector<8x64xf32>
    %96 = arith.negf %81 : vector<8x64xf32>
    %97 = math.exp %96 : vector<8x64xf32>
    %cst_22 = arith.constant 1.000000e+00 : f32
    %98 = vector.broadcast %cst_22 : f32 to vector<8x64xf32>
    %99 = arith.addf %98, %97 : vector<8x64xf32>
    %100 = arith.divf %98, %99 : vector<8x64xf32>
    %101 = math.tanh %95 : vector<8x64xf32>
    %102 = arith.mulf %100, %101 : vector<8x64xf32>
    %103 = arith.index_cast %c2_i32 : i32 to index
    %c0_23 = arith.constant 0 : index
    %c0_24 = arith.constant 0 : index
    %104 = vector.load %arg9[%103, %c0_23, %c0_24] : memref<8x8x64xf32, #tpu.memory_space<vmem>>, vector<1x8x64xf32>
    %105 = vector.shape_cast %104 : vector<1x8x64xf32> to vector<8x64xf32>
    %106 = vector.shape_cast %102 : vector<8x64xf32> to vector<1x8x64xf32>
    tpu.vector_store %arg9[%103, %c0_23, %c0_24], %106 {strides = array<i32>} : memref<8x8x64xf32, #tpu.memory_space<vmem>>, vector<1x8x64xf32>,
    %c3_i32 = arith.constant 3 : i32
    %107 = arith.index_cast %c3_i32 : i32 to index
    %c0_25 = arith.constant 0 : index
    %c0_26 = arith.constant 0 : index
    %108 = vector.load %arg0[%107, %c0_25, %c0_26] : memref<8x8x256xf32, #tpu.memory_space<vmem>>, vector<1x8x256xf32>
    %109 = vector.shape_cast %108 : vector<1x8x256xf32> to vector<8x256xf32>
    %110 = arith.truncf %102 : vector<8x64xf32> to vector<8x64xbf16>
    %cst_27 = arith.constant dense<0.000000e+00> : vector<8x256xf32>
    %111 = tpu.matmul %110, %0, %cst_27 {dimension_numbers = #tpu.dot_dimension_numbers<[1], [0], [0], [1], [0, 0, 1, 1], [], []>} : vector<8x64xbf16>, vector<64x256xbf16>, vector<8x256xf32> -> vector<8x256xf32>
    %112 = arith.addf %109, %111 : vector<8x256xf32>
    %113 = vector.extract_strided_slice %112 {offsets = [0, 0], sizes = [8, 64], strides = [1, 1]} : vector<8x256xf32> to vector<8x64xf32>
    %114 = vector.extract_strided_slice %112 {offsets = [0, 64], sizes = [8, 64], strides = [1, 1]} : vector<8x256xf32> to vector<8x64xf32>
    %115 = vector.extract_strided_slice %112 {offsets = [0, 128], sizes = [8, 64], strides = [1, 1]} : vector<8x256xf32> to vector<8x64xf32>
    %116 = vector.extract_strided_slice %112 {offsets = [0, 192], sizes = [8, 64], strides = [1, 1]} : vector<8x256xf32> to vector<8x64xf32>
    %117 = arith.negf %114 : vector<8x64xf32>
    %118 = math.exp %117 : vector<8x64xf32>
    %cst_28 = arith.constant 1.000000e+00 : f32
    %119 = vector.broadcast %cst_28 : f32 to vector<8x64xf32>
    %120 = arith.addf %119, %118 : vector<8x64xf32>
    %121 = arith.divf %119, %120 : vector<8x64xf32>
    %122 = arith.mulf %121, %95 : vector<8x64xf32>
    %123 = arith.negf %113 : vector<8x64xf32>
    %124 = math.exp %123 : vector<8x64xf32>
    %cst_29 = arith.constant 1.000000e+00 : f32
    %125 = vector.broadcast %cst_29 : f32 to vector<8x64xf32>
    %126 = arith.addf %125, %124 : vector<8x64xf32>
    %127 = arith.divf %125, %126 : vector<8x64xf32>
    %128 = math.tanh %115 : vector<8x64xf32>
    %129 = arith.mulf %127, %128 : vector<8x64xf32>
    %130 = arith.addf %122, %129 : vector<8x64xf32>
    %131 = arith.negf %116 : vector<8x64xf32>
    %132 = math.exp %131 : vector<8x64xf32>
    %cst_30 = arith.constant 1.000000e+00 : f32
    %133 = vector.broadcast %cst_30 : f32 to vector<8x64xf32>
    %134 = arith.addf %133, %132 : vector<8x64xf32>
    %135 = arith.divf %133, %134 : vector<8x64xf32>
    %136 = math.tanh %130 : vector<8x64xf32>
    %137 = arith.mulf %135, %136 : vector<8x64xf32>
    %138 = arith.index_cast %c3_i32 : i32 to index
    %c0_31 = arith.constant 0 : index
    %c0_32 = arith.constant 0 : index
    %139 = vector.load %arg9[%138, %c0_31, %c0_32] : memref<8x8x64xf32, #tpu.memory_space<vmem>>, vector<1x8x64xf32>
    %140 = vector.shape_cast %139 : vector<1x8x64xf32> to vector<8x64xf32>
    %141 = vector.shape_cast %137 : vector<8x64xf32> to vector<1x8x64xf32>
    tpu.vector_store %arg9[%138, %c0_31, %c0_32], %141 {strides = array<i32>} : memref<8x8x64xf32, #tpu.memory_space<vmem>>, vector<1x8x64xf32>,
    %c4_i32 = arith.constant 4 : i32
    %142 = arith.index_cast %c4_i32 : i32 to index
    %c0_33 = arith.constant 0 : index
    %c0_34 = arith.constant 0 : index
    %143 = vector.load %arg0[%142, %c0_33, %c0_34] : memref<8x8x256xf32, #tpu.memory_space<vmem>>, vector<1x8x256xf32>
    %144 = vector.shape_cast %143 : vector<1x8x256xf32> to vector<8x256xf32>
    %145 = arith.truncf %137 : vector<8x64xf32> to vector<8x64xbf16>
    %cst_35 = arith.constant dense<0.000000e+00> : vector<8x256xf32>
    %146 = tpu.matmul %145, %0, %cst_35 {dimension_numbers = #tpu.dot_dimension_numbers<[1], [0], [0], [1], [0, 0, 1, 1], [], []>} : vector<8x64xbf16>, vector<64x256xbf16>, vector<8x256xf32> -> vector<8x256xf32>
    %147 = arith.addf %144, %146 : vector<8x256xf32>
    %148 = vector.extract_strided_slice %147 {offsets = [0, 0], sizes = [8, 64], strides = [1, 1]} : vector<8x256xf32> to vector<8x64xf32>
    %149 = vector.extract_strided_slice %147 {offsets = [0, 64], sizes = [8, 64], strides = [1, 1]} : vector<8x256xf32> to vector<8x64xf32>
    %150 = vector.extract_strided_slice %147 {offsets = [0, 128], sizes = [8, 64], strides = [1, 1]} : vector<8x256xf32> to vector<8x64xf32>
    %151 = vector.extract_strided_slice %147 {offsets = [0, 192], sizes = [8, 64], strides = [1, 1]} : vector<8x256xf32> to vector<8x64xf32>
    %152 = arith.negf %149 : vector<8x64xf32>
    %153 = math.exp %152 : vector<8x64xf32>
    %cst_36 = arith.constant 1.000000e+00 : f32
    %154 = vector.broadcast %cst_36 : f32 to vector<8x64xf32>
    %155 = arith.addf %154, %153 : vector<8x64xf32>
    %156 = arith.divf %154, %155 : vector<8x64xf32>
    %157 = arith.mulf %156, %130 : vector<8x64xf32>
    %158 = arith.negf %148 : vector<8x64xf32>
    %159 = math.exp %158 : vector<8x64xf32>
    %cst_37 = arith.constant 1.000000e+00 : f32
    %160 = vector.broadcast %cst_37 : f32 to vector<8x64xf32>
    %161 = arith.addf %160, %159 : vector<8x64xf32>
    %162 = arith.divf %160, %161 : vector<8x64xf32>
    %163 = math.tanh %150 : vector<8x64xf32>
    %164 = arith.mulf %162, %163 : vector<8x64xf32>
    %165 = arith.addf %157, %164 : vector<8x64xf32>
    %166 = arith.negf %151 : vector<8x64xf32>
    %167 = math.exp %166 : vector<8x64xf32>
    %cst_38 = arith.constant 1.000000e+00 : f32
    %168 = vector.broadcast %cst_38 : f32 to vector<8x64xf32>
    %169 = arith.addf %168, %167 : vector<8x64xf32>
    %170 = arith.divf %168, %169 : vector<8x64xf32>
    %171 = math.tanh %165 : vector<8x64xf32>
    %172 = arith.mulf %170, %171 : vector<8x64xf32>
    %173 = arith.index_cast %c4_i32 : i32 to index
    %c0_39 = arith.constant 0 : index
    %c0_40 = arith.constant 0 : index
    %174 = vector.load %arg9[%173, %c0_39, %c0_40] : memref<8x8x64xf32, #tpu.memory_space<vmem>>, vector<1x8x64xf32>
    %175 = vector.shape_cast %174 : vector<1x8x64xf32> to vector<8x64xf32>
    %176 = vector.shape_cast %172 : vector<8x64xf32> to vector<1x8x64xf32>
    tpu.vector_store %arg9[%173, %c0_39, %c0_40], %176 {strides = array<i32>} : memref<8x8x64xf32, #tpu.memory_space<vmem>>, vector<1x8x64xf32>,
    %c5_i32 = arith.constant 5 : i32
    %177 = arith.index_cast %c5_i32 : i32 to index
    %c0_41 = arith.constant 0 : index
    %c0_42 = arith.constant 0 : index
    %178 = vector.load %arg0[%177, %c0_41, %c0_42] : memref<8x8x256xf32, #tpu.memory_space<vmem>>, vector<1x8x256xf32>
    %179 = vector.shape_cast %178 : vector<1x8x256xf32> to vector<8x256xf32>
    %180 = arith.truncf %172 : vector<8x64xf32> to vector<8x64xbf16>
    %cst_43 = arith.constant dense<0.000000e+00> : vector<8x256xf32>
    %181 = tpu.matmul %180, %0, %cst_43 {dimension_numbers = #tpu.dot_dimension_numbers<[1], [0], [0], [1], [0, 0, 1, 1], [], []>} : vector<8x64xbf16>, vector<64x256xbf16>, vector<8x256xf32> -> vector<8x256xf32>
    %182 = arith.addf %179, %181 : vector<8x256xf32>
    %183 = vector.extract_strided_slice %182 {offsets = [0, 0], sizes = [8, 64], strides = [1, 1]} : vector<8x256xf32> to vector<8x64xf32>
    %184 = vector.extract_strided_slice %182 {offsets = [0, 64], sizes = [8, 64], strides = [1, 1]} : vector<8x256xf32> to vector<8x64xf32>
    %185 = vector.extract_strided_slice %182 {offsets = [0, 128], sizes = [8, 64], strides = [1, 1]} : vector<8x256xf32> to vector<8x64xf32>
    %186 = vector.extract_strided_slice %182 {offsets = [0, 192], sizes = [8, 64], strides = [1, 1]} : vector<8x256xf32> to vector<8x64xf32>
    %187 = arith.negf %184 : vector<8x64xf32>
    %188 = math.exp %187 : vector<8x64xf32>
    %cst_44 = arith.constant 1.000000e+00 : f32
    %189 = vector.broadcast %cst_44 : f32 to vector<8x64xf32>
    %190 = arith.addf %189, %188 : vector<8x64xf32>
    %191 = arith.divf %189, %190 : vector<8x64xf32>
    %192 = arith.mulf %191, %165 : vector<8x64xf32>
    %193 = arith.negf %183 : vector<8x64xf32>
    %194 = math.exp %193 : vector<8x64xf32>
    %cst_45 = arith.constant 1.000000e+00 : f32
    %195 = vector.broadcast %cst_45 : f32 to vector<8x64xf32>
    %196 = arith.addf %195, %194 : vector<8x64xf32>
    %197 = arith.divf %195, %196 : vector<8x64xf32>
    %198 = math.tanh %185 : vector<8x64xf32>
    %199 = arith.mulf %197, %198 : vector<8x64xf32>
    %200 = arith.addf %192, %199 : vector<8x64xf32>
    %201 = arith.negf %186 : vector<8x64xf32>
    %202 = math.exp %201 : vector<8x64xf32>
    %cst_46 = arith.constant 1.000000e+00 : f32
    %203 = vector.broadcast %cst_46 : f32 to vector<8x64xf32>
    %204 = arith.addf %203, %202 : vector<8x64xf32>
    %205 = arith.divf %203, %204 : vector<8x64xf32>
    %206 = math.tanh %200 : vector<8x64xf32>
    %207 = arith.mulf %205, %206 : vector<8x64xf32>
    %208 = arith.index_cast %c5_i32 : i32 to index
    %c0_47 = arith.constant 0 : index
    %c0_48 = arith.constant 0 : index
    %209 = vector.load %arg9[%208, %c0_47, %c0_48] : memref<8x8x64xf32, #tpu.memory_space<vmem>>, vector<1x8x64xf32>
    %210 = vector.shape_cast %209 : vector<1x8x64xf32> to vector<8x64xf32>
    %211 = vector.shape_cast %207 : vector<8x64xf32> to vector<1x8x64xf32>
    tpu.vector_store %arg9[%208, %c0_47, %c0_48], %211 {strides = array<i32>} : memref<8x8x64xf32, #tpu.memory_space<vmem>>, vector<1x8x64xf32>,
    %c6_i32 = arith.constant 6 : i32
    %212 = arith.index_cast %c6_i32 : i32 to index
    %c0_49 = arith.constant 0 : index
    %c0_50 = arith.constant 0 : index
    %213 = vector.load %arg0[%212, %c0_49, %c0_50] : memref<8x8x256xf32, #tpu.memory_space<vmem>>, vector<1x8x256xf32>
    %214 = vector.shape_cast %213 : vector<1x8x256xf32> to vector<8x256xf32>
    %215 = arith.truncf %207 : vector<8x64xf32> to vector<8x64xbf16>
    %cst_51 = arith.constant dense<0.000000e+00> : vector<8x256xf32>
    %216 = tpu.matmul %215, %0, %cst_51 {dimension_numbers = #tpu.dot_dimension_numbers<[1], [0], [0], [1], [0, 0, 1, 1], [], []>} : vector<8x64xbf16>, vector<64x256xbf16>, vector<8x256xf32> -> vector<8x256xf32>
    %217 = arith.addf %214, %216 : vector<8x256xf32>
    %218 = vector.extract_strided_slice %217 {offsets = [0, 0], sizes = [8, 64], strides = [1, 1]} : vector<8x256xf32> to vector<8x64xf32>
    %219 = vector.extract_strided_slice %217 {offsets = [0, 64], sizes = [8, 64], strides = [1, 1]} : vector<8x256xf32> to vector<8x64xf32>
    %220 = vector.extract_strided_slice %217 {offsets = [0, 128], sizes = [8, 64], strides = [1, 1]} : vector<8x256xf32> to vector<8x64xf32>
    %221 = vector.extract_strided_slice %217 {offsets = [0, 192], sizes = [8, 64], strides = [1, 1]} : vector<8x256xf32> to vector<8x64xf32>
    %222 = arith.negf %219 : vector<8x64xf32>
    %223 = math.exp %222 : vector<8x64xf32>
    %cst_52 = arith.constant 1.000000e+00 : f32
    %224 = vector.broadcast %cst_52 : f32 to vector<8x64xf32>
    %225 = arith.addf %224, %223 : vector<8x64xf32>
    %226 = arith.divf %224, %225 : vector<8x64xf32>
    %227 = arith.mulf %226, %200 : vector<8x64xf32>
    %228 = arith.negf %218 : vector<8x64xf32>
    %229 = math.exp %228 : vector<8x64xf32>
    %cst_53 = arith.constant 1.000000e+00 : f32
    %230 = vector.broadcast %cst_53 : f32 to vector<8x64xf32>
    %231 = arith.addf %230, %229 : vector<8x64xf32>
    %232 = arith.divf %230, %231 : vector<8x64xf32>
    %233 = math.tanh %220 : vector<8x64xf32>
    %234 = arith.mulf %232, %233 : vector<8x64xf32>
    %235 = arith.addf %227, %234 : vector<8x64xf32>
    %236 = arith.negf %221 : vector<8x64xf32>
    %237 = math.exp %236 : vector<8x64xf32>
    %cst_54 = arith.constant 1.000000e+00 : f32
    %238 = vector.broadcast %cst_54 : f32 to vector<8x64xf32>
    %239 = arith.addf %238, %237 : vector<8x64xf32>
    %240 = arith.divf %238, %239 : vector<8x64xf32>
    %241 = math.tanh %235 : vector<8x64xf32>
    %242 = arith.mulf %240, %241 : vector<8x64xf32>
    %243 = arith.index_cast %c6_i32 : i32 to index
    %c0_55 = arith.constant 0 : index
    %c0_56 = arith.constant 0 : index
    %244 = vector.load %arg9[%243, %c0_55, %c0_56] : memref<8x8x64xf32, #tpu.memory_space<vmem>>, vector<1x8x64xf32>
    %245 = vector.shape_cast %244 : vector<1x8x64xf32> to vector<8x64xf32>
    %246 = vector.shape_cast %242 : vector<8x64xf32> to vector<1x8x64xf32>
    tpu.vector_store %arg9[%243, %c0_55, %c0_56], %246 {strides = array<i32>} : memref<8x8x64xf32, #tpu.memory_space<vmem>>, vector<1x8x64xf32>,
    %c7_i32 = arith.constant 7 : i32
    %247 = arith.index_cast %c7_i32 : i32 to index
    %c0_57 = arith.constant 0 : index
    %c0_58 = arith.constant 0 : index
    %248 = vector.load %arg0[%247, %c0_57, %c0_58] : memref<8x8x256xf32, #tpu.memory_space<vmem>>, vector<1x8x256xf32>
    %249 = vector.shape_cast %248 : vector<1x8x256xf32> to vector<8x256xf32>
    %250 = arith.truncf %242 : vector<8x64xf32> to vector<8x64xbf16>
    %cst_59 = arith.constant dense<0.000000e+00> : vector<8x256xf32>
    %251 = tpu.matmul %250, %0, %cst_59 {dimension_numbers = #tpu.dot_dimension_numbers<[1], [0], [0], [1], [0, 0, 1, 1], [], []>} : vector<8x64xbf16>, vector<64x256xbf16>, vector<8x256xf32> -> vector<8x256xf32>
    %252 = arith.addf %249, %251 : vector<8x256xf32>
    %253 = vector.extract_strided_slice %252 {offsets = [0, 0], sizes = [8, 64], strides = [1, 1]} : vector<8x256xf32> to vector<8x64xf32>
    %254 = vector.extract_strided_slice %252 {offsets = [0, 64], sizes = [8, 64], strides = [1, 1]} : vector<8x256xf32> to vector<8x64xf32>
    %255 = vector.extract_strided_slice %252 {offsets = [0, 128], sizes = [8, 64], strides = [1, 1]} : vector<8x256xf32> to vector<8x64xf32>
    %256 = vector.extract_strided_slice %252 {offsets = [0, 192], sizes = [8, 64], strides = [1, 1]} : vector<8x256xf32> to vector<8x64xf32>
    %257 = arith.negf %254 : vector<8x64xf32>
    %258 = math.exp %257 : vector<8x64xf32>
    %cst_60 = arith.constant 1.000000e+00 : f32
    %259 = vector.broadcast %cst_60 : f32 to vector<8x64xf32>
    %260 = arith.addf %259, %258 : vector<8x64xf32>
    %261 = arith.divf %259, %260 : vector<8x64xf32>
    %262 = arith.mulf %261, %235 : vector<8x64xf32>
    %263 = arith.negf %253 : vector<8x64xf32>
    %264 = math.exp %263 : vector<8x64xf32>
    %cst_61 = arith.constant 1.000000e+00 : f32
    %265 = vector.broadcast %cst_61 : f32 to vector<8x64xf32>
    %266 = arith.addf %265, %264 : vector<8x64xf32>
    %267 = arith.divf %265, %266 : vector<8x64xf32>
    %268 = math.tanh %255 : vector<8x64xf32>
    %269 = arith.mulf %267, %268 : vector<8x64xf32>
    %270 = arith.addf %262, %269 : vector<8x64xf32>
    %271 = arith.negf %256 : vector<8x64xf32>
    %272 = math.exp %271 : vector<8x64xf32>
    %cst_62 = arith.constant 1.000000e+00 : f32
    %273 = vector.broadcast %cst_62 : f32 to vector<8x64xf32>
    %274 = arith.addf %273, %272 : vector<8x64xf32>
    %275 = arith.divf %273, %274 : vector<8x64xf32>
    %276 = math.tanh %270 : vector<8x64xf32>
    %277 = arith.mulf %275, %276 : vector<8x64xf32>
    %278 = arith.index_cast %c7_i32 : i32 to index
    %c0_63 = arith.constant 0 : index
    %c0_64 = arith.constant 0 : index
    %279 = vector.load %arg9[%278, %c0_63, %c0_64] : memref<8x8x64xf32, #tpu.memory_space<vmem>>, vector<1x8x64xf32>
    %280 = vector.shape_cast %279 : vector<1x8x64xf32> to vector<8x64xf32>
    %281 = vector.shape_cast %277 : vector<8x64xf32> to vector<1x8x64xf32>
    tpu.vector_store %arg9[%278, %c0_63, %c0_64], %281 {strides = array<i32>} : memref<8x8x64xf32, #tpu.memory_space<vmem>>, vector<1x8x64xf32>,
    %c8_i32 = arith.constant 8 : i32
    %c0_65 = arith.constant 0 : index
    %c0_66 = arith.constant 0 : index
    %c0_67 = arith.constant 0 : index
    %282 = vector.load %arg9[%c0_65, %c0_66, %c0_67] : memref<8x8x64xf32, #tpu.memory_space<vmem>>, vector<1x8x64xf32>
    %283 = vector.shape_cast %282 : vector<1x8x64xf32> to vector<8x64xf32>
    %c7 = arith.constant 7 : index
    %c0_68 = arith.constant 0 : index
    %c0_69 = arith.constant 0 : index
    %284 = vector.load %arg9[%c7, %c0_68, %c0_69] : memref<8x8x64xf32, #tpu.memory_space<vmem>>, vector<1x8x64xf32>
    %285 = vector.shape_cast %284 : vector<1x8x64xf32> to vector<8x64xf32>
    %286 = vector.extract_strided_slice %283 {offsets = [0, 0], sizes = [8, 32], strides = [1, 1]} : vector<8x64xf32> to vector<8x32xf32>
    %287 = vector.extract_strided_slice %285 {offsets = [0, 32], sizes = [8, 32], strides = [1, 1]} : vector<8x64xf32> to vector<8x32xf32>
    %288 = vector.extract_strided_slice %285 {offsets = [0, 0], sizes = [8, 32], strides = [1, 1]} : vector<8x64xf32> to vector<8x32xf32>
    %289 = vector.extract_strided_slice %283 {offsets = [0, 32], sizes = [8, 32], strides = [1, 1]} : vector<8x64xf32> to vector<8x32xf32>
    %290 = tpu.concatenate %286, %287, %288, %289 in 1 : vector<8x32xf32>, vector<8x32xf32>, vector<8x32xf32>, vector<8x32xf32> -> vector<8x128xf32>
    %c1 = arith.constant 1 : index
    %c0_70 = arith.constant 0 : index
    %c0_71 = arith.constant 0 : index
    %291 = vector.load %arg9[%c1, %c0_70, %c0_71] : memref<8x8x64xf32, #tpu.memory_space<vmem>>, vector<1x8x64xf32>
    %292 = vector.shape_cast %291 : vector<1x8x64xf32> to vector<8x64xf32>
    %c6 = arith.constant 6 : index
    %c0_72 = arith.constant 0 : index
    %c0_73 = arith.constant 0 : index
    %293 = vector.load %arg9[%c6, %c0_72, %c0_73] : memref<8x8x64xf32, #tpu.memory_space<vmem>>, vector<1x8x64xf32>
    %294 = vector.shape_cast %293 : vector<1x8x64xf32> to vector<8x64xf32>
    %295 = vector.extract_strided_slice %292 {offsets = [0, 0], sizes = [8, 32], strides = [1, 1]} : vector<8x64xf32> to vector<8x32xf32>
    %296 = vector.extract_strided_slice %294 {offsets = [0, 32], sizes = [8, 32], strides = [1, 1]} : vector<8x64xf32> to vector<8x32xf32>
    %297 = vector.extract_strided_slice %294 {offsets = [0, 0], sizes = [8, 32], strides = [1, 1]} : vector<8x64xf32> to vector<8x32xf32>
    %298 = vector.extract_strided_slice %292 {offsets = [0, 32], sizes = [8, 32], strides = [1, 1]} : vector<8x64xf32> to vector<8x32xf32>
    %299 = tpu.concatenate %295, %296, %297, %298 in 1 : vector<8x32xf32>, vector<8x32xf32>, vector<8x32xf32>, vector<8x32xf32> -> vector<8x128xf32>
    %c2 = arith.constant 2 : index
    %c0_74 = arith.constant 0 : index
    %c0_75 = arith.constant 0 : index
    %300 = vector.load %arg9[%c2, %c0_74, %c0_75] : memref<8x8x64xf32, #tpu.memory_space<vmem>>, vector<1x8x64xf32>
    %301 = vector.shape_cast %300 : vector<1x8x64xf32> to vector<8x64xf32>
    %c5 = arith.constant 5 : index
    %c0_76 = arith.constant 0 : index
    %c0_77 = arith.constant 0 : index
    %302 = vector.load %arg9[%c5, %c0_76, %c0_77] : memref<8x8x64xf32, #tpu.memory_space<vmem>>, vector<1x8x64xf32>
    %303 = vector.shape_cast %302 : vector<1x8x64xf32> to vector<8x64xf32>
    %304 = vector.extract_strided_slice %301 {offsets = [0, 0], sizes = [8, 32], strides = [1, 1]} : vector<8x64xf32> to vector<8x32xf32>
    %305 = vector.extract_strided_slice %303 {offsets = [0, 32], sizes = [8, 32], strides = [1, 1]} : vector<8x64xf32> to vector<8x32xf32>
    %306 = vector.extract_strided_slice %303 {offsets = [0, 0], sizes = [8, 32], strides = [1, 1]} : vector<8x64xf32> to vector<8x32xf32>
    %307 = vector.extract_strided_slice %301 {offsets = [0, 32], sizes = [8, 32], strides = [1, 1]} : vector<8x64xf32> to vector<8x32xf32>
    %308 = tpu.concatenate %304, %305, %306, %307 in 1 : vector<8x32xf32>, vector<8x32xf32>, vector<8x32xf32>, vector<8x32xf32> -> vector<8x128xf32>
    %c3 = arith.constant 3 : index
    %c0_78 = arith.constant 0 : index
    %c0_79 = arith.constant 0 : index
    %309 = vector.load %arg9[%c3, %c0_78, %c0_79] : memref<8x8x64xf32, #tpu.memory_space<vmem>>, vector<1x8x64xf32>
    %310 = vector.shape_cast %309 : vector<1x8x64xf32> to vector<8x64xf32>
    %c4 = arith.constant 4 : index
    %c0_80 = arith.constant 0 : index
    %c0_81 = arith.constant 0 : index
    %311 = vector.load %arg9[%c4, %c0_80, %c0_81] : memref<8x8x64xf32, #tpu.memory_space<vmem>>, vector<1x8x64xf32>
    %312 = vector.shape_cast %311 : vector<1x8x64xf32> to vector<8x64xf32>
    %313 = vector.extract_strided_slice %310 {offsets = [0, 0], sizes = [8, 32], strides = [1, 1]} : vector<8x64xf32> to vector<8x32xf32>
    %314 = vector.extract_strided_slice %312 {offsets = [0, 32], sizes = [8, 32], strides = [1, 1]} : vector<8x64xf32> to vector<8x32xf32>
    %315 = vector.extract_strided_slice %312 {offsets = [0, 0], sizes = [8, 32], strides = [1, 1]} : vector<8x64xf32> to vector<8x32xf32>
    %316 = vector.extract_strided_slice %310 {offsets = [0, 32], sizes = [8, 32], strides = [1, 1]} : vector<8x64xf32> to vector<8x32xf32>
    %317 = tpu.concatenate %313, %314, %315, %316 in 1 : vector<8x32xf32>, vector<8x32xf32>, vector<8x32xf32>, vector<8x32xf32> -> vector<8x128xf32>
    %c4_82 = arith.constant 4 : index
    %c0_83 = arith.constant 0 : index
    %c0_84 = arith.constant 0 : index
    %318 = vector.load %arg9[%c4_82, %c0_83, %c0_84] : memref<8x8x64xf32, #tpu.memory_space<vmem>>, vector<1x8x64xf32>
    %319 = vector.shape_cast %318 : vector<1x8x64xf32> to vector<8x64xf32>
    %c3_85 = arith.constant 3 : index
    %c0_86 = arith.constant 0 : index
    %c0_87 = arith.constant 0 : index
    %320 = vector.load %arg9[%c3_85, %c0_86, %c0_87] : memref<8x8x64xf32, #tpu.memory_space<vmem>>, vector<1x8x64xf32>
    %321 = vector.shape_cast %320 : vector<1x8x64xf32> to vector<8x64xf32>
    %322 = vector.extract_strided_slice %319 {offsets = [0, 0], sizes = [8, 32], strides = [1, 1]} : vector<8x64xf32> to vector<8x32xf32>
    %323 = vector.extract_strided_slice %321 {offsets = [0, 32], sizes = [8, 32], strides = [1, 1]} : vector<8x64xf32> to vector<8x32xf32>
    %324 = vector.extract_strided_slice %321 {offsets = [0, 0], sizes = [8, 32], strides = [1, 1]} : vector<8x64xf32> to vector<8x32xf32>
    %325 = vector.extract_strided_slice %319 {offsets = [0, 32], sizes = [8, 32], strides = [1, 1]} : vector<8x64xf32> to vector<8x32xf32>
    %326 = tpu.concatenate %322, %323, %324, %325 in 1 : vector<8x32xf32>, vector<8x32xf32>, vector<8x32xf32>, vector<8x32xf32> -> vector<8x128xf32>
    %c5_88 = arith.constant 5 : index
    %c0_89 = arith.constant 0 : index
    %c0_90 = arith.constant 0 : index
    %327 = vector.load %arg9[%c5_88, %c0_89, %c0_90] : memref<8x8x64xf32, #tpu.memory_space<vmem>>, vector<1x8x64xf32>
    %328 = vector.shape_cast %327 : vector<1x8x64xf32> to vector<8x64xf32>
    %c2_91 = arith.constant 2 : index
    %c0_92 = arith.constant 0 : index
    %c0_93 = arith.constant 0 : index
    %329 = vector.load %arg9[%c2_91, %c0_92, %c0_93] : memref<8x8x64xf32, #tpu.memory_space<vmem>>, vector<1x8x64xf32>
    %330 = vector.shape_cast %329 : vector<1x8x64xf32> to vector<8x64xf32>
    %331 = vector.extract_strided_slice %328 {offsets = [0, 0], sizes = [8, 32], strides = [1, 1]} : vector<8x64xf32> to vector<8x32xf32>
    %332 = vector.extract_strided_slice %330 {offsets = [0, 32], sizes = [8, 32], strides = [1, 1]} : vector<8x64xf32> to vector<8x32xf32>
    %333 = vector.extract_strided_slice %330 {offsets = [0, 0], sizes = [8, 32], strides = [1, 1]} : vector<8x64xf32> to vector<8x32xf32>
    %334 = vector.extract_strided_slice %328 {offsets = [0, 32], sizes = [8, 32], strides = [1, 1]} : vector<8x64xf32> to vector<8x32xf32>
    %335 = tpu.concatenate %331, %332, %333, %334 in 1 : vector<8x32xf32>, vector<8x32xf32>, vector<8x32xf32>, vector<8x32xf32> -> vector<8x128xf32>
    %c6_94 = arith.constant 6 : index
    %c0_95 = arith.constant 0 : index
    %c0_96 = arith.constant 0 : index
    %336 = vector.load %arg9[%c6_94, %c0_95, %c0_96] : memref<8x8x64xf32, #tpu.memory_space<vmem>>, vector<1x8x64xf32>
    %337 = vector.shape_cast %336 : vector<1x8x64xf32> to vector<8x64xf32>
    %c1_97 = arith.constant 1 : index
    %c0_98 = arith.constant 0 : index
    %c0_99 = arith.constant 0 : index
    %338 = vector.load %arg9[%c1_97, %c0_98, %c0_99] : memref<8x8x64xf32, #tpu.memory_space<vmem>>, vector<1x8x64xf32>
    %339 = vector.shape_cast %338 : vector<1x8x64xf32> to vector<8x64xf32>
    %340 = vector.extract_strided_slice %337 {offsets = [0, 0], sizes = [8, 32], strides = [1, 1]} : vector<8x64xf32> to vector<8x32xf32>
    %341 = vector.extract_strided_slice %339 {offsets = [0, 32], sizes = [8, 32], strides = [1, 1]} : vector<8x64xf32> to vector<8x32xf32>
    %342 = vector.extract_strided_slice %339 {offsets = [0, 0], sizes = [8, 32], strides = [1, 1]} : vector<8x64xf32> to vector<8x32xf32>
    %343 = vector.extract_strided_slice %337 {offsets = [0, 32], sizes = [8, 32], strides = [1, 1]} : vector<8x64xf32> to vector<8x32xf32>
    %344 = tpu.concatenate %340, %341, %342, %343 in 1 : vector<8x32xf32>, vector<8x32xf32>, vector<8x32xf32>, vector<8x32xf32> -> vector<8x128xf32>
    %c7_100 = arith.constant 7 : index
    %c0_101 = arith.constant 0 : index
    %c0_102 = arith.constant 0 : index
    %345 = vector.load %arg9[%c7_100, %c0_101, %c0_102] : memref<8x8x64xf32, #tpu.memory_space<vmem>>, vector<1x8x64xf32>
    %346 = vector.shape_cast %345 : vector<1x8x64xf32> to vector<8x64xf32>
    %c0_103 = arith.constant 0 : index
    %c0_104 = arith.constant 0 : index
    %c0_105 = arith.constant 0 : index
    %347 = vector.load %arg9[%c0_103, %c0_104, %c0_105] : memref<8x8x64xf32, #tpu.memory_space<vmem>>, vector<1x8x64xf32>
    %348 = vector.shape_cast %347 : vector<1x8x64xf32> to vector<8x64xf32>
    %349 = vector.extract_strided_slice %346 {offsets = [0, 0], sizes = [8, 32], strides = [1, 1]} : vector<8x64xf32> to vector<8x32xf32>
    %350 = vector.extract_strided_slice %348 {offsets = [0, 32], sizes = [8, 32], strides = [1, 1]} : vector<8x64xf32> to vector<8x32xf32>
    %351 = vector.extract_strided_slice %348 {offsets = [0, 0], sizes = [8, 32], strides = [1, 1]} : vector<8x64xf32> to vector<8x32xf32>
    %352 = vector.extract_strided_slice %346 {offsets = [0, 32], sizes = [8, 32], strides = [1, 1]} : vector<8x64xf32> to vector<8x32xf32>
    %353 = tpu.concatenate %349, %350, %351, %352 in 1 : vector<8x32xf32>, vector<8x32xf32>, vector<8x32xf32>, vector<8x32xf32> -> vector<8x128xf32>
    %354 = tpu.concatenate %290, %299, %308, %317, %326, %335, %344, %353 in 0 : vector<8x128xf32>, vector<8x128xf32>, vector<8x128xf32>, vector<8x128xf32>, vector<8x128xf32>, vector<8x128xf32>, vector<8x128xf32>, vector<8x128xf32> -> vector<64x128xf32>
    %355 = arith.truncf %354 : vector<64x128xf32> to vector<64x128xbf16>
    %c0_106 = arith.constant 0 : index
    %c0_107 = arith.constant 0 : index
    %356 = vector.load %arg2[%c0_106, %c0_107] : memref<128x256xbf16, #tpu.memory_space<vmem>>, vector<128x256xbf16>
    %cst_108 = arith.constant dense<0.000000e+00> : vector<64x256xf32>
    %357 = tpu.matmul %355, %356, %cst_108 {dimension_numbers = #tpu.dot_dimension_numbers<[1], [0], [0], [1], [0, 0, 1, 1], [], []>} : vector<64x128xbf16>, vector<128x256xbf16>, vector<64x256xf32> -> vector<64x256xf32>
    %c0_109 = arith.constant 0 : index
    %c0_110 = arith.constant 0 : index
    %358 = vector.load %arg3[%c0_109, %c0_110] : memref<1x256xf32, #tpu.memory_space<vmem>>, vector<1x256xf32>
    %359 = vector.broadcast %358 : vector<1x256xf32> to vector<64x256xf32>
    %360 = arith.addf %357, %359 : vector<64x256xf32>
    %361 = vector.shape_cast %360 : vector<64x256xf32> to vector<8x8x256xf32>
    %c0_111 = arith.constant 0 : index
    %c0_112 = arith.constant 0 : index
    %c0_113 = arith.constant 0 : index
    %362 = vector.load %arg10[%c0_111, %c0_112, %c0_113] : memref<8x8x256xf32, #tpu.memory_space<vmem>>, vector<8x8x256xf32>
    tpu.vector_store %arg10[%c0_111, %c0_112, %c0_113], %361 {strides = array<i32>} : memref<8x8x256xf32, #tpu.memory_space<vmem>>, vector<8x8x256xf32>,
    %c0_114 = arith.constant 0 : index
    %c0_115 = arith.constant 0 : index
    %363 = vector.load %arg4[%c0_114, %c0_115] : memref<64x256xbf16, #tpu.memory_space<vmem>>, vector<64x256xbf16>
    %cst_116 = arith.constant 0.000000e+00 : f32
    %364 = vector.broadcast %cst_116 : f32 to vector<8x64xf32>
    %c0_i32_117 = arith.constant 0 : i32
    %365 = arith.index_cast %c0_i32_117 : i32 to index
    %c0_118 = arith.constant 0 : index
    %c0_119 = arith.constant 0 : index
    %366 = vector.load %arg10[%365, %c0_118, %c0_119] : memref<8x8x256xf32, #tpu.memory_space<vmem>>, vector<1x8x256xf32>
    %367 = vector.shape_cast %366 : vector<1x8x256xf32> to vector<8x256xf32>
    %368 = arith.truncf %364 : vector<8x64xf32> to vector<8x64xbf16>
    %cst_120 = arith.constant dense<0.000000e+00> : vector<8x256xf32>
    %369 = tpu.matmul %368, %363, %cst_120 {dimension_numbers = #tpu.dot_dimension_numbers<[1], [0], [0], [1], [0, 0, 1, 1], [], []>} : vector<8x64xbf16>, vector<64x256xbf16>, vector<8x256xf32> -> vector<8x256xf32>
    %370 = arith.addf %367, %369 : vector<8x256xf32>
    %371 = vector.extract_strided_slice %370 {offsets = [0, 0], sizes = [8, 64], strides = [1, 1]} : vector<8x256xf32> to vector<8x64xf32>
    %372 = vector.extract_strided_slice %370 {offsets = [0, 64], sizes = [8, 64], strides = [1, 1]} : vector<8x256xf32> to vector<8x64xf32>
    %373 = vector.extract_strided_slice %370 {offsets = [0, 128], sizes = [8, 64], strides = [1, 1]} : vector<8x256xf32> to vector<8x64xf32>
    %374 = vector.extract_strided_slice %370 {offsets = [0, 192], sizes = [8, 64], strides = [1, 1]} : vector<8x256xf32> to vector<8x64xf32>
    %375 = arith.negf %372 : vector<8x64xf32>
    %376 = math.exp %375 : vector<8x64xf32>
    %cst_121 = arith.constant 1.000000e+00 : f32
    %377 = vector.broadcast %cst_121 : f32 to vector<8x64xf32>
    %378 = arith.addf %377, %376 : vector<8x64xf32>
    %379 = arith.divf %377, %378 : vector<8x64xf32>
    %380 = arith.mulf %379, %364 : vector<8x64xf32>
    %381 = arith.negf %371 : vector<8x64xf32>
    %382 = math.exp %381 : vector<8x64xf32>
    %cst_122 = arith.constant 1.000000e+00 : f32
    %383 = vector.broadcast %cst_122 : f32 to vector<8x64xf32>
    %384 = arith.addf %383, %382 : vector<8x64xf32>
    %385 = arith.divf %383, %384 : vector<8x64xf32>
    %386 = math.tanh %373 : vector<8x64xf32>
    %387 = arith.mulf %385, %386 : vector<8x64xf32>
    %388 = arith.addf %380, %387 : vector<8x64xf32>
    %389 = arith.negf %374 : vector<8x64xf32>
    %390 = math.exp %389 : vector<8x64xf32>
    %cst_123 = arith.constant 1.000000e+00 : f32
    %391 = vector.broadcast %cst_123 : f32 to vector<8x64xf32>
    %392 = arith.addf %391, %390 : vector<8x64xf32>
    %393 = arith.divf %391, %392 : vector<8x64xf32>
    %394 = math.tanh %388 : vector<8x64xf32>
    %395 = arith.mulf %393, %394 : vector<8x64xf32>
    %396 = arith.index_cast %c0_i32_117 : i32 to index
    %c0_124 = arith.constant 0 : index
    %c0_125 = arith.constant 0 : index
    %397 = vector.load %arg11[%396, %c0_124, %c0_125] : memref<8x8x64xf32, #tpu.memory_space<vmem>>, vector<1x8x64xf32>
    %398 = vector.shape_cast %397 : vector<1x8x64xf32> to vector<8x64xf32>
    %399 = vector.shape_cast %395 : vector<8x64xf32> to vector<1x8x64xf32>
    tpu.vector_store %arg11[%396, %c0_124, %c0_125], %399 {strides = array<i32>} : memref<8x8x64xf32, #tpu.memory_space<vmem>>, vector<1x8x64xf32>,
    %c1_i32_126 = arith.constant 1 : i32
    %400 = arith.index_cast %c1_i32_126 : i32 to index
    %c0_127 = arith.constant 0 : index
    %c0_128 = arith.constant 0 : index
    %401 = vector.load %arg10[%400, %c0_127, %c0_128] : memref<8x8x256xf32, #tpu.memory_space<vmem>>, vector<1x8x256xf32>
    %402 = vector.shape_cast %401 : vector<1x8x256xf32> to vector<8x256xf32>
    %403 = arith.truncf %395 : vector<8x64xf32> to vector<8x64xbf16>
    %cst_129 = arith.constant dense<0.000000e+00> : vector<8x256xf32>
    %404 = tpu.matmul %403, %363, %cst_129 {dimension_numbers = #tpu.dot_dimension_numbers<[1], [0], [0], [1], [0, 0, 1, 1], [], []>} : vector<8x64xbf16>, vector<64x256xbf16>, vector<8x256xf32> -> vector<8x256xf32>
    %405 = arith.addf %402, %404 : vector<8x256xf32>
    %406 = vector.extract_strided_slice %405 {offsets = [0, 0], sizes = [8, 64], strides = [1, 1]} : vector<8x256xf32> to vector<8x64xf32>
    %407 = vector.extract_strided_slice %405 {offsets = [0, 64], sizes = [8, 64], strides = [1, 1]} : vector<8x256xf32> to vector<8x64xf32>
    %408 = vector.extract_strided_slice %405 {offsets = [0, 128], sizes = [8, 64], strides = [1, 1]} : vector<8x256xf32> to vector<8x64xf32>
    %409 = vector.extract_strided_slice %405 {offsets = [0, 192], sizes = [8, 64], strides = [1, 1]} : vector<8x256xf32> to vector<8x64xf32>
    %410 = arith.negf %407 : vector<8x64xf32>
    %411 = math.exp %410 : vector<8x64xf32>
    %cst_130 = arith.constant 1.000000e+00 : f32
    %412 = vector.broadcast %cst_130 : f32 to vector<8x64xf32>
    %413 = arith.addf %412, %411 : vector<8x64xf32>
    %414 = arith.divf %412, %413 : vector<8x64xf32>
    %415 = arith.mulf %414, %388 : vector<8x64xf32>
    %416 = arith.negf %406 : vector<8x64xf32>
    %417 = math.exp %416 : vector<8x64xf32>
    %cst_131 = arith.constant 1.000000e+00 : f32
    %418 = vector.broadcast %cst_131 : f32 to vector<8x64xf32>
    %419 = arith.addf %418, %417 : vector<8x64xf32>
    %420 = arith.divf %418, %419 : vector<8x64xf32>
    %421 = math.tanh %408 : vector<8x64xf32>
    %422 = arith.mulf %420, %421 : vector<8x64xf32>
    %423 = arith.addf %415, %422 : vector<8x64xf32>
    %424 = arith.negf %409 : vector<8x64xf32>
    %425 = math.exp %424 : vector<8x64xf32>
    %cst_132 = arith.constant 1.000000e+00 : f32
    %426 = vector.broadcast %cst_132 : f32 to vector<8x64xf32>
    %427 = arith.addf %426, %425 : vector<8x64xf32>
    %428 = arith.divf %426, %427 : vector<8x64xf32>
    %429 = math.tanh %423 : vector<8x64xf32>
    %430 = arith.mulf %428, %429 : vector<8x64xf32>
    %431 = arith.index_cast %c1_i32_126 : i32 to index
    %c0_133 = arith.constant 0 : index
    %c0_134 = arith.constant 0 : index
    %432 = vector.load %arg11[%431, %c0_133, %c0_134] : memref<8x8x64xf32, #tpu.memory_space<vmem>>, vector<1x8x64xf32>
    %433 = vector.shape_cast %432 : vector<1x8x64xf32> to vector<8x64xf32>
    %434 = vector.shape_cast %430 : vector<8x64xf32> to vector<1x8x64xf32>
    tpu.vector_store %arg11[%431, %c0_133, %c0_134], %434 {strides = array<i32>} : memref<8x8x64xf32, #tpu.memory_space<vmem>>, vector<1x8x64xf32>,
    %c2_i32_135 = arith.constant 2 : i32
    %435 = arith.index_cast %c2_i32_135 : i32 to index
    %c0_136 = arith.constant 0 : index
    %c0_137 = arith.constant 0 : index
    %436 = vector.load %arg10[%435, %c0_136, %c0_137] : memref<8x8x256xf32, #tpu.memory_space<vmem>>, vector<1x8x256xf32>
    %437 = vector.shape_cast %436 : vector<1x8x256xf32> to vector<8x256xf32>
    %438 = arith.truncf %430 : vector<8x64xf32> to vector<8x64xbf16>
    %cst_138 = arith.constant dense<0.000000e+00> : vector<8x256xf32>
    %439 = tpu.matmul %438, %363, %cst_138 {dimension_numbers = #tpu.dot_dimension_numbers<[1], [0], [0], [1], [0, 0, 1, 1], [], []>} : vector<8x64xbf16>, vector<64x256xbf16>, vector<8x256xf32> -> vector<8x256xf32>
    %440 = arith.addf %437, %439 : vector<8x256xf32>
    %441 = vector.extract_strided_slice %440 {offsets = [0, 0], sizes = [8, 64], strides = [1, 1]} : vector<8x256xf32> to vector<8x64xf32>
    %442 = vector.extract_strided_slice %440 {offsets = [0, 64], sizes = [8, 64], strides = [1, 1]} : vector<8x256xf32> to vector<8x64xf32>
    %443 = vector.extract_strided_slice %440 {offsets = [0, 128], sizes = [8, 64], strides = [1, 1]} : vector<8x256xf32> to vector<8x64xf32>
    %444 = vector.extract_strided_slice %440 {offsets = [0, 192], sizes = [8, 64], strides = [1, 1]} : vector<8x256xf32> to vector<8x64xf32>
    %445 = arith.negf %442 : vector<8x64xf32>
    %446 = math.exp %445 : vector<8x64xf32>
    %cst_139 = arith.constant 1.000000e+00 : f32
    %447 = vector.broadcast %cst_139 : f32 to vector<8x64xf32>
    %448 = arith.addf %447, %446 : vector<8x64xf32>
    %449 = arith.divf %447, %448 : vector<8x64xf32>
    %450 = arith.mulf %449, %423 : vector<8x64xf32>
    %451 = arith.negf %441 : vector<8x64xf32>
    %452 = math.exp %451 : vector<8x64xf32>
    %cst_140 = arith.constant 1.000000e+00 : f32
    %453 = vector.broadcast %cst_140 : f32 to vector<8x64xf32>
    %454 = arith.addf %453, %452 : vector<8x64xf32>
    %455 = arith.divf %453, %454 : vector<8x64xf32>
    %456 = math.tanh %443 : vector<8x64xf32>
    %457 = arith.mulf %455, %456 : vector<8x64xf32>
    %458 = arith.addf %450, %457 : vector<8x64xf32>
    %459 = arith.negf %444 : vector<8x64xf32>
    %460 = math.exp %459 : vector<8x64xf32>
    %cst_141 = arith.constant 1.000000e+00 : f32
    %461 = vector.broadcast %cst_141 : f32 to vector<8x64xf32>
    %462 = arith.addf %461, %460 : vector<8x64xf32>
    %463 = arith.divf %461, %462 : vector<8x64xf32>
    %464 = math.tanh %458 : vector<8x64xf32>
    %465 = arith.mulf %463, %464 : vector<8x64xf32>
    %466 = arith.index_cast %c2_i32_135 : i32 to index
    %c0_142 = arith.constant 0 : index
    %c0_143 = arith.constant 0 : index
    %467 = vector.load %arg11[%466, %c0_142, %c0_143] : memref<8x8x64xf32, #tpu.memory_space<vmem>>, vector<1x8x64xf32>
    %468 = vector.shape_cast %467 : vector<1x8x64xf32> to vector<8x64xf32>
    %469 = vector.shape_cast %465 : vector<8x64xf32> to vector<1x8x64xf32>
    tpu.vector_store %arg11[%466, %c0_142, %c0_143], %469 {strides = array<i32>} : memref<8x8x64xf32, #tpu.memory_space<vmem>>, vector<1x8x64xf32>,
    %c3_i32_144 = arith.constant 3 : i32
    %470 = arith.index_cast %c3_i32_144 : i32 to index
    %c0_145 = arith.constant 0 : index
    %c0_146 = arith.constant 0 : index
    %471 = vector.load %arg10[%470, %c0_145, %c0_146] : memref<8x8x256xf32, #tpu.memory_space<vmem>>, vector<1x8x256xf32>
    %472 = vector.shape_cast %471 : vector<1x8x256xf32> to vector<8x256xf32>
    %473 = arith.truncf %465 : vector<8x64xf32> to vector<8x64xbf16>
    %cst_147 = arith.constant dense<0.000000e+00> : vector<8x256xf32>
    %474 = tpu.matmul %473, %363, %cst_147 {dimension_numbers = #tpu.dot_dimension_numbers<[1], [0], [0], [1], [0, 0, 1, 1], [], []>} : vector<8x64xbf16>, vector<64x256xbf16>, vector<8x256xf32> -> vector<8x256xf32>
    %475 = arith.addf %472, %474 : vector<8x256xf32>
    %476 = vector.extract_strided_slice %475 {offsets = [0, 0], sizes = [8, 64], strides = [1, 1]} : vector<8x256xf32> to vector<8x64xf32>
    %477 = vector.extract_strided_slice %475 {offsets = [0, 64], sizes = [8, 64], strides = [1, 1]} : vector<8x256xf32> to vector<8x64xf32>
    %478 = vector.extract_strided_slice %475 {offsets = [0, 128], sizes = [8, 64], strides = [1, 1]} : vector<8x256xf32> to vector<8x64xf32>
    %479 = vector.extract_strided_slice %475 {offsets = [0, 192], sizes = [8, 64], strides = [1, 1]} : vector<8x256xf32> to vector<8x64xf32>
    %480 = arith.negf %477 : vector<8x64xf32>
    %481 = math.exp %480 : vector<8x64xf32>
    %cst_148 = arith.constant 1.000000e+00 : f32
    %482 = vector.broadcast %cst_148 : f32 to vector<8x64xf32>
    %483 = arith.addf %482, %481 : vector<8x64xf32>
    %484 = arith.divf %482, %483 : vector<8x64xf32>
    %485 = arith.mulf %484, %458 : vector<8x64xf32>
    %486 = arith.negf %476 : vector<8x64xf32>
    %487 = math.exp %486 : vector<8x64xf32>
    %cst_149 = arith.constant 1.000000e+00 : f32
    %488 = vector.broadcast %cst_149 : f32 to vector<8x64xf32>
    %489 = arith.addf %488, %487 : vector<8x64xf32>
    %490 = arith.divf %488, %489 : vector<8x64xf32>
    %491 = math.tanh %478 : vector<8x64xf32>
    %492 = arith.mulf %490, %491 : vector<8x64xf32>
    %493 = arith.addf %485, %492 : vector<8x64xf32>
    %494 = arith.negf %479 : vector<8x64xf32>
    %495 = math.exp %494 : vector<8x64xf32>
    %cst_150 = arith.constant 1.000000e+00 : f32
    %496 = vector.broadcast %cst_150 : f32 to vector<8x64xf32>
    %497 = arith.addf %496, %495 : vector<8x64xf32>
    %498 = arith.divf %496, %497 : vector<8x64xf32>
    %499 = math.tanh %493 : vector<8x64xf32>
    %500 = arith.mulf %498, %499 : vector<8x64xf32>
    %501 = arith.index_cast %c3_i32_144 : i32 to index
    %c0_151 = arith.constant 0 : index
    %c0_152 = arith.constant 0 : index
    %502 = vector.load %arg11[%501, %c0_151, %c0_152] : memref<8x8x64xf32, #tpu.memory_space<vmem>>, vector<1x8x64xf32>
    %503 = vector.shape_cast %502 : vector<1x8x64xf32> to vector<8x64xf32>
    %504 = vector.shape_cast %500 : vector<8x64xf32> to vector<1x8x64xf32>
    tpu.vector_store %arg11[%501, %c0_151, %c0_152], %504 {strides = array<i32>} : memref<8x8x64xf32, #tpu.memory_space<vmem>>, vector<1x8x64xf32>,
    %c4_i32_153 = arith.constant 4 : i32
    %505 = arith.index_cast %c4_i32_153 : i32 to index
    %c0_154 = arith.constant 0 : index
    %c0_155 = arith.constant 0 : index
    %506 = vector.load %arg10[%505, %c0_154, %c0_155] : memref<8x8x256xf32, #tpu.memory_space<vmem>>, vector<1x8x256xf32>
    %507 = vector.shape_cast %506 : vector<1x8x256xf32> to vector<8x256xf32>
    %508 = arith.truncf %500 : vector<8x64xf32> to vector<8x64xbf16>
    %cst_156 = arith.constant dense<0.000000e+00> : vector<8x256xf32>
    %509 = tpu.matmul %508, %363, %cst_156 {dimension_numbers = #tpu.dot_dimension_numbers<[1], [0], [0], [1], [0, 0, 1, 1], [], []>} : vector<8x64xbf16>, vector<64x256xbf16>, vector<8x256xf32> -> vector<8x256xf32>
    %510 = arith.addf %507, %509 : vector<8x256xf32>
    %511 = vector.extract_strided_slice %510 {offsets = [0, 0], sizes = [8, 64], strides = [1, 1]} : vector<8x256xf32> to vector<8x64xf32>
    %512 = vector.extract_strided_slice %510 {offsets = [0, 64], sizes = [8, 64], strides = [1, 1]} : vector<8x256xf32> to vector<8x64xf32>
    %513 = vector.extract_strided_slice %510 {offsets = [0, 128], sizes = [8, 64], strides = [1, 1]} : vector<8x256xf32> to vector<8x64xf32>
    %514 = vector.extract_strided_slice %510 {offsets = [0, 192], sizes = [8, 64], strides = [1, 1]} : vector<8x256xf32> to vector<8x64xf32>
    %515 = arith.negf %512 : vector<8x64xf32>
    %516 = math.exp %515 : vector<8x64xf32>
    %cst_157 = arith.constant 1.000000e+00 : f32
    %517 = vector.broadcast %cst_157 : f32 to vector<8x64xf32>
    %518 = arith.addf %517, %516 : vector<8x64xf32>
    %519 = arith.divf %517, %518 : vector<8x64xf32>
    %520 = arith.mulf %519, %493 : vector<8x64xf32>
    %521 = arith.negf %511 : vector<8x64xf32>
    %522 = math.exp %521 : vector<8x64xf32>
    %cst_158 = arith.constant 1.000000e+00 : f32
    %523 = vector.broadcast %cst_158 : f32 to vector<8x64xf32>
    %524 = arith.addf %523, %522 : vector<8x64xf32>
    %525 = arith.divf %523, %524 : vector<8x64xf32>
    %526 = math.tanh %513 : vector<8x64xf32>
    %527 = arith.mulf %525, %526 : vector<8x64xf32>
    %528 = arith.addf %520, %527 : vector<8x64xf32>
    %529 = arith.negf %514 : vector<8x64xf32>
    %530 = math.exp %529 : vector<8x64xf32>
    %cst_159 = arith.constant 1.000000e+00 : f32
    %531 = vector.broadcast %cst_159 : f32 to vector<8x64xf32>
    %532 = arith.addf %531, %530 : vector<8x64xf32>
    %533 = arith.divf %531, %532 : vector<8x64xf32>
    %534 = math.tanh %528 : vector<8x64xf32>
    %535 = arith.mulf %533, %534 : vector<8x64xf32>
    %536 = arith.index_cast %c4_i32_153 : i32 to index
    %c0_160 = arith.constant 0 : index
    %c0_161 = arith.constant 0 : index
    %537 = vector.load %arg11[%536, %c0_160, %c0_161] : memref<8x8x64xf32, #tpu.memory_space<vmem>>, vector<1x8x64xf32>
    %538 = vector.shape_cast %537 : vector<1x8x64xf32> to vector<8x64xf32>
    %539 = vector.shape_cast %535 : vector<8x64xf32> to vector<1x8x64xf32>
    tpu.vector_store %arg11[%536, %c0_160, %c0_161], %539 {strides = array<i32>} : memref<8x8x64xf32, #tpu.memory_space<vmem>>, vector<1x8x64xf32>,
    %c5_i32_162 = arith.constant 5 : i32
    %540 = arith.index_cast %c5_i32_162 : i32 to index
    %c0_163 = arith.constant 0 : index
    %c0_164 = arith.constant 0 : index
    %541 = vector.load %arg10[%540, %c0_163, %c0_164] : memref<8x8x256xf32, #tpu.memory_space<vmem>>, vector<1x8x256xf32>
    %542 = vector.shape_cast %541 : vector<1x8x256xf32> to vector<8x256xf32>
    %543 = arith.truncf %535 : vector<8x64xf32> to vector<8x64xbf16>
    %cst_165 = arith.constant dense<0.000000e+00> : vector<8x256xf32>
    %544 = tpu.matmul %543, %363, %cst_165 {dimension_numbers = #tpu.dot_dimension_numbers<[1], [0], [0], [1], [0, 0, 1, 1], [], []>} : vector<8x64xbf16>, vector<64x256xbf16>, vector<8x256xf32> -> vector<8x256xf32>
    %545 = arith.addf %542, %544 : vector<8x256xf32>
    %546 = vector.extract_strided_slice %545 {offsets = [0, 0], sizes = [8, 64], strides = [1, 1]} : vector<8x256xf32> to vector<8x64xf32>
    %547 = vector.extract_strided_slice %545 {offsets = [0, 64], sizes = [8, 64], strides = [1, 1]} : vector<8x256xf32> to vector<8x64xf32>
    %548 = vector.extract_strided_slice %545 {offsets = [0, 128], sizes = [8, 64], strides = [1, 1]} : vector<8x256xf32> to vector<8x64xf32>
    %549 = vector.extract_strided_slice %545 {offsets = [0, 192], sizes = [8, 64], strides = [1, 1]} : vector<8x256xf32> to vector<8x64xf32>
    %550 = arith.negf %547 : vector<8x64xf32>
    %551 = math.exp %550 : vector<8x64xf32>
    %cst_166 = arith.constant 1.000000e+00 : f32
    %552 = vector.broadcast %cst_166 : f32 to vector<8x64xf32>
    %553 = arith.addf %552, %551 : vector<8x64xf32>
    %554 = arith.divf %552, %553 : vector<8x64xf32>
    %555 = arith.mulf %554, %528 : vector<8x64xf32>
    %556 = arith.negf %546 : vector<8x64xf32>
    %557 = math.exp %556 : vector<8x64xf32>
    %cst_167 = arith.constant 1.000000e+00 : f32
    %558 = vector.broadcast %cst_167 : f32 to vector<8x64xf32>
    %559 = arith.addf %558, %557 : vector<8x64xf32>
    %560 = arith.divf %558, %559 : vector<8x64xf32>
    %561 = math.tanh %548 : vector<8x64xf32>
    %562 = arith.mulf %560, %561 : vector<8x64xf32>
    %563 = arith.addf %555, %562 : vector<8x64xf32>
    %564 = arith.negf %549 : vector<8x64xf32>
    %565 = math.exp %564 : vector<8x64xf32>
    %cst_168 = arith.constant 1.000000e+00 : f32
    %566 = vector.broadcast %cst_168 : f32 to vector<8x64xf32>
    %567 = arith.addf %566, %565 : vector<8x64xf32>
    %568 = arith.divf %566, %567 : vector<8x64xf32>
    %569 = math.tanh %563 : vector<8x64xf32>
    %570 = arith.mulf %568, %569 : vector<8x64xf32>
    %571 = arith.index_cast %c5_i32_162 : i32 to index
    %c0_169 = arith.constant 0 : index
    %c0_170 = arith.constant 0 : index
    %572 = vector.load %arg11[%571, %c0_169, %c0_170] : memref<8x8x64xf32, #tpu.memory_space<vmem>>, vector<1x8x64xf32>
    %573 = vector.shape_cast %572 : vector<1x8x64xf32> to vector<8x64xf32>
    %574 = vector.shape_cast %570 : vector<8x64xf32> to vector<1x8x64xf32>
    tpu.vector_store %arg11[%571, %c0_169, %c0_170], %574 {strides = array<i32>} : memref<8x8x64xf32, #tpu.memory_space<vmem>>, vector<1x8x64xf32>,
    %c6_i32_171 = arith.constant 6 : i32
    %575 = arith.index_cast %c6_i32_171 : i32 to index
    %c0_172 = arith.constant 0 : index
    %c0_173 = arith.constant 0 : index
    %576 = vector.load %arg10[%575, %c0_172, %c0_173] : memref<8x8x256xf32, #tpu.memory_space<vmem>>, vector<1x8x256xf32>
    %577 = vector.shape_cast %576 : vector<1x8x256xf32> to vector<8x256xf32>
    %578 = arith.truncf %570 : vector<8x64xf32> to vector<8x64xbf16>
    %cst_174 = arith.constant dense<0.000000e+00> : vector<8x256xf32>
    %579 = tpu.matmul %578, %363, %cst_174 {dimension_numbers = #tpu.dot_dimension_numbers<[1], [0], [0], [1], [0, 0, 1, 1], [], []>} : vector<8x64xbf16>, vector<64x256xbf16>, vector<8x256xf32> -> vector<8x256xf32>
    %580 = arith.addf %577, %579 : vector<8x256xf32>
    %581 = vector.extract_strided_slice %580 {offsets = [0, 0], sizes = [8, 64], strides = [1, 1]} : vector<8x256xf32> to vector<8x64xf32>
    %582 = vector.extract_strided_slice %580 {offsets = [0, 64], sizes = [8, 64], strides = [1, 1]} : vector<8x256xf32> to vector<8x64xf32>
    %583 = vector.extract_strided_slice %580 {offsets = [0, 128], sizes = [8, 64], strides = [1, 1]} : vector<8x256xf32> to vector<8x64xf32>
    %584 = vector.extract_strided_slice %580 {offsets = [0, 192], sizes = [8, 64], strides = [1, 1]} : vector<8x256xf32> to vector<8x64xf32>
    %585 = arith.negf %582 : vector<8x64xf32>
    %586 = math.exp %585 : vector<8x64xf32>
    %cst_175 = arith.constant 1.000000e+00 : f32
    %587 = vector.broadcast %cst_175 : f32 to vector<8x64xf32>
    %588 = arith.addf %587, %586 : vector<8x64xf32>
    %589 = arith.divf %587, %588 : vector<8x64xf32>
    %590 = arith.mulf %589, %563 : vector<8x64xf32>
    %591 = arith.negf %581 : vector<8x64xf32>
    %592 = math.exp %591 : vector<8x64xf32>
    %cst_176 = arith.constant 1.000000e+00 : f32
    %593 = vector.broadcast %cst_176 : f32 to vector<8x64xf32>
    %594 = arith.addf %593, %592 : vector<8x64xf32>
    %595 = arith.divf %593, %594 : vector<8x64xf32>
    %596 = math.tanh %583 : vector<8x64xf32>
    %597 = arith.mulf %595, %596 : vector<8x64xf32>
    %598 = arith.addf %590, %597 : vector<8x64xf32>
    %599 = arith.negf %584 : vector<8x64xf32>
    %600 = math.exp %599 : vector<8x64xf32>
    %cst_177 = arith.constant 1.000000e+00 : f32
    %601 = vector.broadcast %cst_177 : f32 to vector<8x64xf32>
    %602 = arith.addf %601, %600 : vector<8x64xf32>
    %603 = arith.divf %601, %602 : vector<8x64xf32>
    %604 = math.tanh %598 : vector<8x64xf32>
    %605 = arith.mulf %603, %604 : vector<8x64xf32>
    %606 = arith.index_cast %c6_i32_171 : i32 to index
    %c0_178 = arith.constant 0 : index
    %c0_179 = arith.constant 0 : index
    %607 = vector.load %arg11[%606, %c0_178, %c0_179] : memref<8x8x64xf32, #tpu.memory_space<vmem>>, vector<1x8x64xf32>
    %608 = vector.shape_cast %607 : vector<1x8x64xf32> to vector<8x64xf32>
    %609 = vector.shape_cast %605 : vector<8x64xf32> to vector<1x8x64xf32>
    tpu.vector_store %arg11[%606, %c0_178, %c0_179], %609 {strides = array<i32>} : memref<8x8x64xf32, #tpu.memory_space<vmem>>, vector<1x8x64xf32>,
    %c7_i32_180 = arith.constant 7 : i32
    %610 = arith.index_cast %c7_i32_180 : i32 to index
    %c0_181 = arith.constant 0 : index
    %c0_182 = arith.constant 0 : index
    %611 = vector.load %arg10[%610, %c0_181, %c0_182] : memref<8x8x256xf32, #tpu.memory_space<vmem>>, vector<1x8x256xf32>
    %612 = vector.shape_cast %611 : vector<1x8x256xf32> to vector<8x256xf32>
    %613 = arith.truncf %605 : vector<8x64xf32> to vector<8x64xbf16>
    %cst_183 = arith.constant dense<0.000000e+00> : vector<8x256xf32>
    %614 = tpu.matmul %613, %363, %cst_183 {dimension_numbers = #tpu.dot_dimension_numbers<[1], [0], [0], [1], [0, 0, 1, 1], [], []>} : vector<8x64xbf16>, vector<64x256xbf16>, vector<8x256xf32> -> vector<8x256xf32>
    %615 = arith.addf %612, %614 : vector<8x256xf32>
    %616 = vector.extract_strided_slice %615 {offsets = [0, 0], sizes = [8, 64], strides = [1, 1]} : vector<8x256xf32> to vector<8x64xf32>
    %617 = vector.extract_strided_slice %615 {offsets = [0, 64], sizes = [8, 64], strides = [1, 1]} : vector<8x256xf32> to vector<8x64xf32>
    %618 = vector.extract_strided_slice %615 {offsets = [0, 128], sizes = [8, 64], strides = [1, 1]} : vector<8x256xf32> to vector<8x64xf32>
    %619 = vector.extract_strided_slice %615 {offsets = [0, 192], sizes = [8, 64], strides = [1, 1]} : vector<8x256xf32> to vector<8x64xf32>
    %620 = arith.negf %617 : vector<8x64xf32>
    %621 = math.exp %620 : vector<8x64xf32>
    %cst_184 = arith.constant 1.000000e+00 : f32
    %622 = vector.broadcast %cst_184 : f32 to vector<8x64xf32>
    %623 = arith.addf %622, %621 : vector<8x64xf32>
    %624 = arith.divf %622, %623 : vector<8x64xf32>
    %625 = arith.mulf %624, %598 : vector<8x64xf32>
    %626 = arith.negf %616 : vector<8x64xf32>
    %627 = math.exp %626 : vector<8x64xf32>
    %cst_185 = arith.constant 1.000000e+00 : f32
    %628 = vector.broadcast %cst_185 : f32 to vector<8x64xf32>
    %629 = arith.addf %628, %627 : vector<8x64xf32>
    %630 = arith.divf %628, %629 : vector<8x64xf32>
    %631 = math.tanh %618 : vector<8x64xf32>
    %632 = arith.mulf %630, %631 : vector<8x64xf32>
    %633 = arith.addf %625, %632 : vector<8x64xf32>
    %634 = arith.negf %619 : vector<8x64xf32>
    %635 = math.exp %634 : vector<8x64xf32>
    %cst_186 = arith.constant 1.000000e+00 : f32
    %636 = vector.broadcast %cst_186 : f32 to vector<8x64xf32>
    %637 = arith.addf %636, %635 : vector<8x64xf32>
    %638 = arith.divf %636, %637 : vector<8x64xf32>
    %639 = math.tanh %633 : vector<8x64xf32>
    %640 = arith.mulf %638, %639 : vector<8x64xf32>
    %641 = arith.index_cast %c7_i32_180 : i32 to index
    %c0_187 = arith.constant 0 : index
    %c0_188 = arith.constant 0 : index
    %642 = vector.load %arg11[%641, %c0_187, %c0_188] : memref<8x8x64xf32, #tpu.memory_space<vmem>>, vector<1x8x64xf32>
    %643 = vector.shape_cast %642 : vector<1x8x64xf32> to vector<8x64xf32>
    %644 = vector.shape_cast %640 : vector<8x64xf32> to vector<1x8x64xf32>
    tpu.vector_store %arg11[%641, %c0_187, %c0_188], %644 {strides = array<i32>} : memref<8x8x64xf32, #tpu.memory_space<vmem>>, vector<1x8x64xf32>,
    %c8_i32_189 = arith.constant 8 : i32
    %c0_190 = arith.constant 0 : index
    %c0_191 = arith.constant 0 : index
    %c0_192 = arith.constant 0 : index
    %645 = vector.load %arg11[%c0_190, %c0_191, %c0_192] : memref<8x8x64xf32, #tpu.memory_space<vmem>>, vector<1x8x64xf32>
    %646 = vector.shape_cast %645 : vector<1x8x64xf32> to vector<8x64xf32>
    %c7_193 = arith.constant 7 : index
    %c0_194 = arith.constant 0 : index
    %c0_195 = arith.constant 0 : index
    %647 = vector.load %arg11[%c7_193, %c0_194, %c0_195] : memref<8x8x64xf32, #tpu.memory_space<vmem>>, vector<1x8x64xf32>
    %648 = vector.shape_cast %647 : vector<1x8x64xf32> to vector<8x64xf32>
    %649 = vector.extract_strided_slice %646 {offsets = [0, 0], sizes = [8, 32], strides = [1, 1]} : vector<8x64xf32> to vector<8x32xf32>
    %650 = vector.extract_strided_slice %648 {offsets = [0, 32], sizes = [8, 32], strides = [1, 1]} : vector<8x64xf32> to vector<8x32xf32>
    %651 = tpu.concatenate %649, %650 in 1 : vector<8x32xf32>, vector<8x32xf32> -> vector<8x64xf32>
    %c1_196 = arith.constant 1 : index
    %c0_197 = arith.constant 0 : index
    %c0_198 = arith.constant 0 : index
    %652 = vector.load %arg11[%c1_196, %c0_197, %c0_198] : memref<8x8x64xf32, #tpu.memory_space<vmem>>, vector<1x8x64xf32>
    %653 = vector.shape_cast %652 : vector<1x8x64xf32> to vector<8x64xf32>
    %c6_199 = arith.constant 6 : index
    %c0_200 = arith.constant 0 : index
    %c0_201 = arith.constant 0 : index
    %654 = vector.load %arg11[%c6_199, %c0_200, %c0_201] : memref<8x8x64xf32, #tpu.memory_space<vmem>>, vector<1x8x64xf32>
    %655 = vector.shape_cast %654 : vector<1x8x64xf32> to vector<8x64xf32>
    %656 = vector.extract_strided_slice %653 {offsets = [0, 0], sizes = [8, 32], strides = [1, 1]} : vector<8x64xf32> to vector<8x32xf32>
    %657 = vector.extract_strided_slice %655 {offsets = [0, 32], sizes = [8, 32], strides = [1, 1]} : vector<8x64xf32> to vector<8x32xf32>
    %658 = tpu.concatenate %656, %657 in 1 : vector<8x32xf32>, vector<8x32xf32> -> vector<8x64xf32>
    %c2_202 = arith.constant 2 : index
    %c0_203 = arith.constant 0 : index
    %c0_204 = arith.constant 0 : index
    %659 = vector.load %arg11[%c2_202, %c0_203, %c0_204] : memref<8x8x64xf32, #tpu.memory_space<vmem>>, vector<1x8x64xf32>
    %660 = vector.shape_cast %659 : vector<1x8x64xf32> to vector<8x64xf32>
    %c5_205 = arith.constant 5 : index
    %c0_206 = arith.constant 0 : index
    %c0_207 = arith.constant 0 : index
    %661 = vector.load %arg11[%c5_205, %c0_206, %c0_207] : memref<8x8x64xf32, #tpu.memory_space<vmem>>, vector<1x8x64xf32>
    %662 = vector.shape_cast %661 : vector<1x8x64xf32> to vector<8x64xf32>
    %663 = vector.extract_strided_slice %660 {offsets = [0, 0], sizes = [8, 32], strides = [1, 1]} : vector<8x64xf32> to vector<8x32xf32>
    %664 = vector.extract_strided_slice %662 {offsets = [0, 32], sizes = [8, 32], strides = [1, 1]} : vector<8x64xf32> to vector<8x32xf32>
    %665 = tpu.concatenate %663, %664 in 1 : vector<8x32xf32>, vector<8x32xf32> -> vector<8x64xf32>
    %c3_208 = arith.constant 3 : index
    %c0_209 = arith.constant 0 : index
    %c0_210 = arith.constant 0 : index
    %666 = vector.load %arg11[%c3_208, %c0_209, %c0_210] : memref<8x8x64xf32, #tpu.memory_space<vmem>>, vector<1x8x64xf32>
    %667 = vector.shape_cast %666 : vector<1x8x64xf32> to vector<8x64xf32>
    %c4_211 = arith.constant 4 : index
    %c0_212 = arith.constant 0 : index
    %c0_213 = arith.constant 0 : index
    %668 = vector.load %arg11[%c4_211, %c0_212, %c0_213] : memref<8x8x64xf32, #tpu.memory_space<vmem>>, vector<1x8x64xf32>
    %669 = vector.shape_cast %668 : vector<1x8x64xf32> to vector<8x64xf32>
    %670 = vector.extract_strided_slice %667 {offsets = [0, 0], sizes = [8, 32], strides = [1, 1]} : vector<8x64xf32> to vector<8x32xf32>
    %671 = vector.extract_strided_slice %669 {offsets = [0, 32], sizes = [8, 32], strides = [1, 1]} : vector<8x64xf32> to vector<8x32xf32>
    %672 = tpu.concatenate %670, %671 in 1 : vector<8x32xf32>, vector<8x32xf32> -> vector<8x64xf32>
    %c4_214 = arith.constant 4 : index
    %c0_215 = arith.constant 0 : index
    %c0_216 = arith.constant 0 : index
    %673 = vector.load %arg11[%c4_214, %c0_215, %c0_216] : memref<8x8x64xf32, #tpu.memory_space<vmem>>, vector<1x8x64xf32>
    %674 = vector.shape_cast %673 : vector<1x8x64xf32> to vector<8x64xf32>
    %c3_217 = arith.constant 3 : index
    %c0_218 = arith.constant 0 : index
    %c0_219 = arith.constant 0 : index
    %675 = vector.load %arg11[%c3_217, %c0_218, %c0_219] : memref<8x8x64xf32, #tpu.memory_space<vmem>>, vector<1x8x64xf32>
    %676 = vector.shape_cast %675 : vector<1x8x64xf32> to vector<8x64xf32>
    %677 = vector.extract_strided_slice %674 {offsets = [0, 0], sizes = [8, 32], strides = [1, 1]} : vector<8x64xf32> to vector<8x32xf32>
    %678 = vector.extract_strided_slice %676 {offsets = [0, 32], sizes = [8, 32], strides = [1, 1]} : vector<8x64xf32> to vector<8x32xf32>
    %679 = tpu.concatenate %677, %678 in 1 : vector<8x32xf32>, vector<8x32xf32> -> vector<8x64xf32>
    %c5_220 = arith.constant 5 : index
    %c0_221 = arith.constant 0 : index
    %c0_222 = arith.constant 0 : index
    %680 = vector.load %arg11[%c5_220, %c0_221, %c0_222] : memref<8x8x64xf32, #tpu.memory_space<vmem>>, vector<1x8x64xf32>
    %681 = vector.shape_cast %680 : vector<1x8x64xf32> to vector<8x64xf32>
    %c2_223 = arith.constant 2 : index
    %c0_224 = arith.constant 0 : index
    %c0_225 = arith.constant 0 : index
    %682 = vector.load %arg11[%c2_223, %c0_224, %c0_225] : memref<8x8x64xf32, #tpu.memory_space<vmem>>, vector<1x8x64xf32>
    %683 = vector.shape_cast %682 : vector<1x8x64xf32> to vector<8x64xf32>
    %684 = vector.extract_strided_slice %681 {offsets = [0, 0], sizes = [8, 32], strides = [1, 1]} : vector<8x64xf32> to vector<8x32xf32>
    %685 = vector.extract_strided_slice %683 {offsets = [0, 32], sizes = [8, 32], strides = [1, 1]} : vector<8x64xf32> to vector<8x32xf32>
    %686 = tpu.concatenate %684, %685 in 1 : vector<8x32xf32>, vector<8x32xf32> -> vector<8x64xf32>
    %c6_226 = arith.constant 6 : index
    %c0_227 = arith.constant 0 : index
    %c0_228 = arith.constant 0 : index
    %687 = vector.load %arg11[%c6_226, %c0_227, %c0_228] : memref<8x8x64xf32, #tpu.memory_space<vmem>>, vector<1x8x64xf32>
    %688 = vector.shape_cast %687 : vector<1x8x64xf32> to vector<8x64xf32>
    %c1_229 = arith.constant 1 : index
    %c0_230 = arith.constant 0 : index
    %c0_231 = arith.constant 0 : index
    %689 = vector.load %arg11[%c1_229, %c0_230, %c0_231] : memref<8x8x64xf32, #tpu.memory_space<vmem>>, vector<1x8x64xf32>
    %690 = vector.shape_cast %689 : vector<1x8x64xf32> to vector<8x64xf32>
    %691 = vector.extract_strided_slice %688 {offsets = [0, 0], sizes = [8, 32], strides = [1, 1]} : vector<8x64xf32> to vector<8x32xf32>
    %692 = vector.extract_strided_slice %690 {offsets = [0, 32], sizes = [8, 32], strides = [1, 1]} : vector<8x64xf32> to vector<8x32xf32>
    %693 = tpu.concatenate %691, %692 in 1 : vector<8x32xf32>, vector<8x32xf32> -> vector<8x64xf32>
    %c7_232 = arith.constant 7 : index
    %c0_233 = arith.constant 0 : index
    %c0_234 = arith.constant 0 : index
    %694 = vector.load %arg11[%c7_232, %c0_233, %c0_234] : memref<8x8x64xf32, #tpu.memory_space<vmem>>, vector<1x8x64xf32>
    %695 = vector.shape_cast %694 : vector<1x8x64xf32> to vector<8x64xf32>
    %c0_235 = arith.constant 0 : index
    %c0_236 = arith.constant 0 : index
    %c0_237 = arith.constant 0 : index
    %696 = vector.load %arg11[%c0_235, %c0_236, %c0_237] : memref<8x8x64xf32, #tpu.memory_space<vmem>>, vector<1x8x64xf32>
    %697 = vector.shape_cast %696 : vector<1x8x64xf32> to vector<8x64xf32>
    %698 = vector.extract_strided_slice %695 {offsets = [0, 0], sizes = [8, 32], strides = [1, 1]} : vector<8x64xf32> to vector<8x32xf32>
    %699 = vector.extract_strided_slice %697 {offsets = [0, 32], sizes = [8, 32], strides = [1, 1]} : vector<8x64xf32> to vector<8x32xf32>
    %700 = tpu.concatenate %698, %699 in 1 : vector<8x32xf32>, vector<8x32xf32> -> vector<8x64xf32>
    %701 = tpu.concatenate %651, %658, %665, %672, %679, %686, %693, %700 in 0 : vector<8x64xf32>, vector<8x64xf32>, vector<8x64xf32>, vector<8x64xf32>, vector<8x64xf32>, vector<8x64xf32>, vector<8x64xf32>, vector<8x64xf32> -> vector<64x64xf32>
    %702 = arith.truncf %701 : vector<64x64xf32> to vector<64x64xbf16>
    %c0_238 = arith.constant 0 : index
    %c0_239 = arith.constant 0 : index
    %703 = vector.load %arg5[%c0_238, %c0_239] : memref<64x64xbf16, #tpu.memory_space<vmem>>, vector<64x64xbf16>
    %cst_240 = arith.constant dense<0.000000e+00> : vector<64x64xf32>
    %704 = tpu.matmul %702, %703, %cst_240 {dimension_numbers = #tpu.dot_dimension_numbers<[1], [0], [0], [1], [0, 0, 1, 1], [], []>} : vector<64x64xbf16>, vector<64x64xbf16>, vector<64x64xf32> -> vector<64x64xf32>
    %705 = math.tanh %704 : vector<64x64xf32>
    %c0_241 = arith.constant 0 : index
    %c0_242 = arith.constant 0 : index
    %706 = vector.load %arg6[%c0_241, %c0_242] : memref<1x64xf32, #tpu.memory_space<vmem>>, vector<1x64xf32>
    %707 = vector.broadcast %706 : vector<1x64xf32> to vector<64x64xf32>
    %708 = arith.mulf %705, %707 : vector<64x64xf32>
    %cst_243 = arith.constant dense<0.000000e+00> : vector<64xf32>
    %709 = vector.multi_reduction <add>, %708, %cst_243 [1] : vector<64x64xf32> to vector<64xf32>
    %710 = vector.shape_cast %709 : vector<64xf32> to vector<64x1xf32>
    %711 = vector.extract_strided_slice %710 {offsets = [0, 0], sizes = [8, 1], strides = [1, 1]} : vector<64x1xf32> to vector<8x1xf32>
    %712 = vector.extract_strided_slice %710 {offsets = [8, 0], sizes = [8, 1], strides = [1, 1]} : vector<64x1xf32> to vector<8x1xf32>
    %713 = vector.extract_strided_slice %710 {offsets = [16, 0], sizes = [8, 1], strides = [1, 1]} : vector<64x1xf32> to vector<8x1xf32>
    %714 = vector.extract_strided_slice %710 {offsets = [24, 0], sizes = [8, 1], strides = [1, 1]} : vector<64x1xf32> to vector<8x1xf32>
    %715 = vector.extract_strided_slice %710 {offsets = [32, 0], sizes = [8, 1], strides = [1, 1]} : vector<64x1xf32> to vector<8x1xf32>
    %716 = vector.extract_strided_slice %710 {offsets = [40, 0], sizes = [8, 1], strides = [1, 1]} : vector<64x1xf32> to vector<8x1xf32>
    %717 = vector.extract_strided_slice %710 {offsets = [48, 0], sizes = [8, 1], strides = [1, 1]} : vector<64x1xf32> to vector<8x1xf32>
    %718 = vector.extract_strided_slice %710 {offsets = [56, 0], sizes = [8, 1], strides = [1, 1]} : vector<64x1xf32> to vector<8x1xf32>
    %719 = tpu.concatenate %711, %712, %713, %714, %715, %716, %717, %718 in 1 : vector<8x1xf32>, vector<8x1xf32>, vector<8x1xf32>, vector<8x1xf32>, vector<8x1xf32>, vector<8x1xf32>, vector<8x1xf32>, vector<8x1xf32> -> vector<8x8xf32>
    %c0_244 = arith.constant 0 : index
    %c0_245 = arith.constant 0 : index
    %720 = vector.load %arg7[%c0_244, %c0_245] : memref<8x8xf32, #tpu.memory_space<vmem>>, vector<8x8xf32>
    %cst_246 = arith.constant 1.000000e+04 : f32
    %721 = vector.broadcast %cst_246 : f32 to vector<8x8xf32>
    %722 = arith.mulf %721, %720 : vector<8x8xf32>
    %723 = arith.subf %719, %722 : vector<8x8xf32>
    %cst_247 = arith.constant dense<0xFF800000> : vector<8xf32>
    %724 = vector.multi_reduction <maximumf>, %723, %cst_247 [1] : vector<8x8xf32> to vector<8xf32>
    %725 = vector.shape_cast %724 : vector<8xf32> to vector<8x1xf32>
    %726 = vector.broadcast %725 : vector<8x1xf32> to vector<8x8xf32>
    %727 = arith.subf %723, %726 : vector<8x8xf32>
    %728 = math.exp %727 : vector<8x8xf32>
    %cst_248 = arith.constant dense<0.000000e+00> : vector<8xf32>
    %729 = vector.multi_reduction <add>, %728, %cst_248 [1] : vector<8x8xf32> to vector<8xf32>
    %730 = vector.shape_cast %729 : vector<8xf32> to vector<8x1xf32>
    %cst_249 = arith.constant 1.000000e+00 : f32
    %731 = vector.broadcast %cst_249 : f32 to vector<8x1xf32>
    %732 = arith.divf %731, %730 : vector<8x1xf32>
    %733 = vector.broadcast %732 : vector<8x1xf32> to vector<8x8xf32>
    %734 = arith.mulf %728, %733 : vector<8x8xf32>
    %cst_250 = arith.constant 0.000000e+00 : f32
    %735 = vector.broadcast %cst_250 : f32 to vector<8x64xf32>
    %736 = vector.extract_strided_slice %734 {offsets = [0, 0], sizes = [8, 1], strides = [1, 1]} : vector<8x8xf32> to vector<8x1xf32>
    %737 = vector.broadcast %736 : vector<8x1xf32> to vector<8x64xf32>
    %738 = arith.mulf %737, %651 : vector<8x64xf32>
    %739 = arith.addf %735, %738 : vector<8x64xf32>
    %740 = vector.extract_strided_slice %734 {offsets = [0, 1], sizes = [8, 1], strides = [1, 1]} : vector<8x8xf32> to vector<8x1xf32>
    %741 = vector.broadcast %740 : vector<8x1xf32> to vector<8x64xf32>
    %742 = arith.mulf %741, %658 : vector<8x64xf32>
    %743 = arith.addf %739, %742 : vector<8x64xf32>
    %744 = vector.extract_strided_slice %734 {offsets = [0, 2], sizes = [8, 1], strides = [1, 1]} : vector<8x8xf32> to vector<8x1xf32>
    %745 = vector.broadcast %744 : vector<8x1xf32> to vector<8x64xf32>
    %746 = arith.mulf %745, %665 : vector<8x64xf32>
    %747 = arith.addf %743, %746 : vector<8x64xf32>
    %748 = vector.extract_strided_slice %734 {offsets = [0, 3], sizes = [8, 1], strides = [1, 1]} : vector<8x8xf32> to vector<8x1xf32>
    %749 = vector.broadcast %748 : vector<8x1xf32> to vector<8x64xf32>
    %750 = arith.mulf %749, %672 : vector<8x64xf32>
    %751 = arith.addf %747, %750 : vector<8x64xf32>
    %752 = vector.extract_strided_slice %734 {offsets = [0, 4], sizes = [8, 1], strides = [1, 1]} : vector<8x8xf32> to vector<8x1xf32>
    %753 = vector.broadcast %752 : vector<8x1xf32> to vector<8x64xf32>
    %754 = arith.mulf %753, %679 : vector<8x64xf32>
    %755 = arith.addf %751, %754 : vector<8x64xf32>
    %756 = vector.extract_strided_slice %734 {offsets = [0, 5], sizes = [8, 1], strides = [1, 1]} : vector<8x8xf32> to vector<8x1xf32>
    %757 = vector.broadcast %756 : vector<8x1xf32> to vector<8x64xf32>
    %758 = arith.mulf %757, %686 : vector<8x64xf32>
    %759 = arith.addf %755, %758 : vector<8x64xf32>
    %760 = vector.extract_strided_slice %734 {offsets = [0, 6], sizes = [8, 1], strides = [1, 1]} : vector<8x8xf32> to vector<8x1xf32>
    %761 = vector.broadcast %760 : vector<8x1xf32> to vector<8x64xf32>
    %762 = arith.mulf %761, %693 : vector<8x64xf32>
    %763 = arith.addf %759, %762 : vector<8x64xf32>
    %764 = vector.extract_strided_slice %734 {offsets = [0, 7], sizes = [8, 1], strides = [1, 1]} : vector<8x8xf32> to vector<8x1xf32>
    %765 = vector.broadcast %764 : vector<8x1xf32> to vector<8x64xf32>
    %766 = arith.mulf %765, %700 : vector<8x64xf32>
    %767 = arith.addf %763, %766 : vector<8x64xf32>
    %c0_251 = arith.constant 0 : index
    %c0_252 = arith.constant 0 : index
    %768 = vector.load %arg8[%c0_251, %c0_252] : memref<8x64xf32, #tpu.memory_space<vmem>>, vector<8x64xf32>
    tpu.vector_store %arg8[%c0_251, %c0_252], %767 {strides = array<i32>} : memref<8x64xf32, #tpu.memory_space<vmem>>, vector<8x64xf32>,
    return
  }
}

</mosaic_0001>

<bundles_post_ra>
// kernel: sas_encoder_forward.1
= control target key start
LH: loop header
LB: loop body
LE: loop exit
PB: predicated region body
PF: predicated region fallthrough
CT: control target
= control target key end

     0   :  { %v2362_v1 = vmov 0   ;;  %s2363_s24 = smov 64   ;;  %vm80_vm0 = vcmask 523264   ;;  %vm731_vm1 = vcmask 261120   ;;  %vm734_vm2 = vcmask 785408   ;;  %s3041_s1 = inlined_call_operand.vmem [shape: bf16[64,256], index: 1, kind: input, shape index: {}]   ;;  %s3042_s0 = inlined_call_operand.vmem [shape: f32[8,8,256], index: 0, kind: input, shape index: {}]   ;;  %s3043_s2 = inlined_call_operand.vmem [shape: bf16[128,256], index: 2, kind: input, shape index: {}]   ;;  %s3044_s4 = inlined_call_operand.vmem [shape: bf16[64,256], index: 4, kind: input, shape index: {}]   ;;  %s3045_s3 = inlined_call_operand.vmem [shape: f32[1,256], index: 3, kind: input, shape index: {}]   ;;  %s3046_s5 = inlined_call_operand.vmem [shape: bf16[64,64], index: 5, kind: input, shape index: {}]   ;;  %s3047_s6 = inlined_call_operand.vmem [shape: f32[1,64], index: 6, kind: input, shape index: {}]   ;;  %s3048_s7 = inlined_call_operand.vmem [shape: f32[8,8], index: 7, kind: input, shape index: {}]   ;;  %s3049_s8 = inlined_call_operand.vmem [shape: f32[8,64], index: 8, kind: output, shape index: {}]  }
   0x1   :  { %v2419_v0 = vld [vmem:[%s3041_s1 + $0x4] ss:$8 sps:$4 sm:$0xff]   ;;  %116 = vmatprep.mubr.bf16.mxu0 %v2362_v1  ;;  %196 = vmatprep.mubr.bf16.mxu1 %v2362_v1  ;;  %v2426_v2 = vld [vmem:[%s3041_s1] ss:$8 sps:$4 sm:$0xff]   ;;  %v2433_v3 = vld [vmem:[%s3041_s1 + $0x14] ss:$8 sps:$4 sm:$0xff]  }
   0x2   :  { %2089 = vset.pattern.permute.xlu1 %v2362_v1  ;;  %84 = vmatprep.subr.bf16.mxu0 %v2419_v0  ;;  %v2440_v4 = vld [vmem:[%s3041_s1 + $0x10] ss:$8 sps:$4 sm:$0xff]   ;;  %v2447_v5 = vld [vmem:[%s3041_s1 + $0x24] ss:$8 sps:$4 sm:$0xff]   ;;  %v2454_v6 = vld [vmem:[%s3041_s1 + $0x20] ss:$8 sps:$4 sm:$0xff]  }
   0x3   :  { %164 = vmatprep.subr.bf16.mxu1 %v2419_v0  ;;  %85 = vmatpush1.bf16.msra.mxu0 %v2426_v2  ;;  %v2461_v7 = vld [vmem:[%s3041_s1 + $0x34] ss:$8 sps:$4 sm:$0xff]   ;;  %v2468_v8 = vld [vmem:[%s3041_s1 + $0x30] ss:$8 sps:$4 sm:$0xff]   ;;  %v38_v9 = vld [vmem:[%s3042_s0] sm:$0xff]  ;;  %vm1851_vm3 = vcmask 7168  }
   0x4   :  { %165 = vmatpush1.bf16.msra.mxu1 %v2426_v2  ;;  %86 = vmatprep.subr.bf16.mxu0 %v2433_v3  ;;  %v39_v16 = vld [vmem:[%s3042_s0 + $0x8] sm:$0xff]  ;;  %v1945_v34 = vld [vmem:[%s3042_s0 + $0x10] sm:$0xff]  ;;  %v1946_v41 = vld [vmem:[%s3042_s0 + $0x18] sm:$0xff]  ;;  %vm1853_vm4 = vcmask 15360   ;;  %vm1855_vm5 = vcmask 23552   ;;  %vm1857_vm6 = vcmask 31744  }
   0x5   :  { %166 = vmatprep.subr.bf16.mxu1 %v2433_v3  ;;  %v1950_v59 = vld [vmem:[%s3042_s0 + $0x20] sm:$0xff]  ;;  %vm1859_vm7 = vcmask 39936   ;;  %vm1861_vm8 = vcmask 48128   ;;  %vm1863_vm9 = vcmask 56320   ;;  %vm1868_vm10 = vcmask 64512  }
   0x7   :  { %87 = vmatpush1.bf16.msra.mxu0 %v2440_v4 }
   0x8   :  { %167 = vmatpush1.bf16.msra.mxu1 %v2440_v4  ;;  %88 = vmatprep.subr.bf16.mxu0 %v2447_v5 }
   0x9   :  { %168 = vmatprep.subr.bf16.mxu1 %v2447_v5 }
   0xb   :  { %89 = vmatpush1.bf16.msra.mxu0 %v2454_v6 }
   0xc   :  { %169 = vmatpush1.bf16.msra.mxu1 %v2454_v6  ;;  %90 = vmatprep.subr.bf16.mxu0 %v2461_v7 }
   0xd   :  { %170 = vmatprep.subr.bf16.mxu1 %v2461_v7 }
   0xf   :  { %91 = vmatpush1.bf16.msra.mxu0 %v2468_v8 }
  0x10   :  { %171 = vmatpush1.bf16.msra.mxu1 %v2468_v8  ;;  %245 = vmatprep.subr.bf16.mxu0 %v2419_v0 }
  0x11   :  { %326 = vmatprep.subr.bf16.mxu1 %v2419_v0 }
  0x12   :  { %117 = vmatmul.mubr.bf16.vlgmr.msra.gmra.mrb[0].mxu0 %v2362_v1 }
  0x13   :  { %246 = vmatpush1.bf16.msra.mxu0 %v2426_v2  ;;  %277 = vmatprep.mubr.bf16.mxu0 %v2362_v1 }
  0x14   :  { %247 = vmatprep.subr.bf16.mxu0 %v2433_v3 }
  0x17   :  { %248 = vmatpush1.bf16.msra.mxu0 %v2440_v4 }
  0x18   :  { %249 = vmatprep.subr.bf16.mxu0 %v2447_v5 }
  0x1b   :  { %250 = vmatpush1.bf16.msra.mxu0 %v2454_v6 }
  0x1c   :  { %251 = vmatprep.subr.bf16.mxu0 %v2461_v7 }
  0x1f   :  { %252 = vmatpush1.bf16.msra.mxu0 %v2468_v8 }
  0x20   :  { %407 = vmatprep.subr.bf16.mxu0 %v2419_v0 }
  0xe5   :  { %v118_v10 = vpop.f32.mrb[0].mxu0 }
  0xe6   :  { %v125_v11 = vadd.f32 %v118_v10, %v38_v9  ;;  %v120_v12 = vpop.f32.mrb[1].mxu0 }
  0xe7   :  { %v122_v13 = vpop.f32.mrb[2].mxu0  ;;  %v126_v17 = vadd.f32 %v120_v12, %v39_v16 }
  0xe8   :  { %v1943_v14 = vmul.f32 -1.442695, %v125_v11  ;;  %v123_v15 = vpop.f32.mrb[3].mxu0  ;;  %v1951_v11 = vld [vmem:[%s3042_s0 + $0x28] sm:$0xff] }
  0xe9   :  { %v1944_v23 = vmul.f32 -1.442695, %v126_v17 }
  0xea   :  { %2150 = vpow2.f32 %v1943_v14 }
  0xeb   :  { %2152 = vtanh.f32 %v126_v17 }
  0xf4   :  { %v2151_v18 = vpop.eup %2150 }
  0xf5   :  { %v130_v19 = vadd.f32 1.0, %v2151_v18  ;;  %v2153_v20 = vpop.eup %2152 }
  0xf7   :  { %2154 = vrcp.f32 %v130_v19 }
  0xf8   :  { %2156 = vpow2.f32 %v1944_v23 }
 0x101   :  { %v2155_v21 = vpop.eup %2154 }
 0x102   :  { %v135_v22 = vmul.f32 %v2155_v21, %v2153_v20  ;;  %v2157_v24 = vpop.eup %2156  ;;  %v133_v26 = vmul.f32 0.0, %v2155_v21 }
 0x103   :  { %v144_v25 = vadd.f32 1.0, %v2157_v24 }
 0x104   :  { %137 = vrot.lane.b32.xlu0 %v135_v22, %s2363_s24 }
 0x105   :  { %2158 = vrcp.f32 %v144_v25 }
 0x10f   :  { %v2159_v29 = vpop.eup %2158 }
 0x176   :  { %v138_v27 = vpop.permute.xlu0 %137 }
 0x177   :  { %v140_v28 = vadd.f32 %v138_v27, %v133_v26 }
 0x179   :  { %2160 = vtanh.f32 %v140_v28 }
 0x183   :  { %v2161_v30 = vpop.eup %2160 }
 0x184   :  { %v2494_v31 = vmul.f32 %v2161_v30, %v2159_v29  ;;  %v1955_v29 = vld [vmem:[%s3042_s0 + $0x30] sm:$0xff] }
 0x186   :  { %v157_v32 = vpack.c.bf16 %v2494_v31, %v2494_v31 }
 0x188   :  { %159 = vrot.lane.b32.xlu0 %v157_v32, %s2363_s24 }
 0x1fa   :  { %v160_v33 = vpop.permute.xlu0 %159 }
 0x1fb   :  { %1947 = vmatmul.mubr.msk.bf16.vlgmr.msra.gmra.mrb[0].mxu1 %vm80_vm0, %v160_v33 }
 0x1fc   :  { %327 = vmatpush1.bf16.msra.mxu1 %v2426_v2  ;;  %358 = vmatprep.mubr.bf16.mxu1 %v2362_v1 }
 0x1fd   :  { %328 = vmatprep.subr.bf16.mxu1 %v2433_v3 }
 0x200   :  { %329 = vmatpush1.bf16.msra.mxu1 %v2440_v4 }
 0x201   :  { %330 = vmatprep.subr.bf16.mxu1 %v2447_v5 }
 0x204   :  { %331 = vmatpush1.bf16.msra.mxu1 %v2454_v6 }
 0x205   :  { %332 = vmatprep.subr.bf16.mxu1 %v2461_v7 }
 0x208   :  { %333 = vmatpush1.bf16.msra.mxu1 %v2468_v8 }
 0x209   :  { %488 = vmatprep.subr.bf16.mxu1 %v2419_v0 }
 0x2ce   :  { %v198_v35 = vpop.f32.mrb[0].mxu1 }
 0x2cf   :  { %v205_v36 = vadd.f32 %v1945_v34, %v198_v35  ;;  %v200_v37 = vpop.f32.mrb[1].mxu1 }
 0x2d0   :  { %v202_v38 = vpop.f32.mrb[2].mxu1  ;;  %v206_v42 = vadd.f32 %v1946_v41, %v200_v37  ;;  %v1956_v37 = vld [vmem:[%s3042_s0 + $0x38] sm:$0xff] }
 0x2d1   :  { %v1948_v39 = vmul.f32 -1.442695, %v205_v36  ;;  %v203_v40 = vpop.f32.mrb[3].mxu1 }
 0x2d2   :  { %v1949_v48 = vmul.f32 -1.442695, %v206_v42 }
 0x2d3   :  { %2162 = vpow2.f32 %v1948_v39 }
 0x2d4   :  { %2164 = vtanh.f32 %v206_v42 }
 0x2dd   :  { %v2163_v43 = vpop.eup %2162 }
 0x2de   :  { %v210_v44 = vadd.f32 1.0, %v2163_v43  ;;  %v2165_v45 = vpop.eup %2164 }
 0x2e0   :  { %2166 = vrcp.f32 %v210_v44 }
 0x2e1   :  { %2168 = vpow2.f32 %v1949_v48 }
 0x2ea   :  { %v2167_v46 = vpop.eup %2166 }
 0x2eb   :  { %v215_v47 = vmul.f32 %v2167_v46, %v2165_v45  ;;  %v2169_v49 = vpop.eup %2168  ;;  %v213_v51 = vmul.f32 %v2167_v46, %v140_v28 }
 0x2ec   :  { %v224_v50 = vadd.f32 1.0, %v2169_v49 }
 0x2ed   :  { %217 = vrot.lane.b32.xlu1 %v215_v47, %s2363_s24 }
 0x2ee   :  { %2170 = vrcp.f32 %v224_v50 }
 0x2f8   :  { %v2171_v54 = vpop.eup %2170 }
 0x35f   :  { %v218_v52 = vpop.permute.xlu1 %217 }
 0x360   :  { %v220_v53 = vadd.f32 %v218_v52, %v213_v51 }
 0x362   :  { %2172 = vtanh.f32 %v220_v53 }
 0x36c   :  { %v2173_v55 = vpop.eup %2172 }
 0x36d   :  { %v2516_v56 = vmul.f32 %v2173_v55, %v2171_v54  ;;  %v1960_v54 = vld [vmem:[%s3042_s0 + $0x40] sm:$0xff] }
 0x36f   :  { %v238_v57 = vpack.c.bf16 %v2516_v56, %v2516_v56 }
 0x371   :  { %240 = vrot.lane.b32.xlu1 %v238_v57, %s2363_s24 }
 0x3e3   :  { %v241_v58 = vpop.permute.xlu1 %240 }
 0x3e4   :  { %1952 = vmatmul.mubr.msk.bf16.vlgmr.msra.gmra.mrb[4].mxu0 %vm80_vm0, %v241_v58 }
 0x3e5   :  { %408 = vmatpush1.bf16.msra.mxu0 %v2426_v2  ;;  %439 = vmatprep.mubr.bf16.mxu0 %v2362_v1 }
 0x3e6   :  { %409 = vmatprep.subr.bf16.mxu0 %v2433_v3 }
 0x3e9   :  { %410 = vmatpush1.bf16.msra.mxu0 %v2440_v4 }
 0x3ea   :  { %411 = vmatprep.subr.bf16.mxu0 %v2447_v5 }
 0x3ed   :  { %412 = vmatpush1.bf16.msra.mxu0 %v2454_v6 }
 0x3ee   :  { %413 = vmatprep.subr.bf16.mxu0 %v2461_v7 }
 0x3f1   :  { %414 = vmatpush1.bf16.msra.mxu0 %v2468_v8 }
 0x3f2   :  { %569 = vmatprep.subr.bf16.mxu0 %v2419_v0 }
 0x4b7   :  { %v279_v60 = vpop.f32.mrb[4].mxu0 }
 0x4b8   :  { %v286_v61 = vadd.f32 %v1950_v59, %v279_v60  ;;  %v281_v62 = vpop.f32.mrb[5].mxu0 }
 0x4b9   :  { %v283_v63 = vpop.f32.mrb[6].mxu0  ;;  %v287_v12 = vadd.f32 %v1951_v11, %v281_v62  ;;  %v1961_v62 = vld [vmem:[%s3042_s0 + $0x48] sm:$0xff] }
 0x4ba   :  { %v1953_v9 = vmul.f32 -1.442695, %v286_v61  ;;  %v284_v10 = vpop.f32.mrb[7].mxu0 }
 0x4bb   :  { %v1954_v18 = vmul.f32 -1.442695, %v287_v12 }
 0x4bc   :  { %2174 = vpow2.f32 %v1953_v9 }
 0x4bd   :  { %2176 = vtanh.f32 %v287_v12 }
 0x4c6   :  { %v2175_v13 = vpop.eup %2174 }
 0x4c7   :  { %v291_v14 = vadd.f32 1.0, %v2175_v13  ;;  %v2177_v15 = vpop.eup %2176 }
 0x4c9   :  { %2178 = vrcp.f32 %v291_v14 }
 0x4ca   :  { %2180 = vpow2.f32 %v1954_v18 }
 0x4d3   :  { %v2179_v16 = vpop.eup %2178 }
 0x4d4   :  { %v296_v17 = vmul.f32 %v2179_v16, %v2177_v15  ;;  %v2181_v19 = vpop.eup %2180  ;;  %v294_v21 = vmul.f32 %v2179_v16, %v220_v53 }
 0x4d5   :  { %v305_v20 = vadd.f32 1.0, %v2181_v19 }
 0x4d6   :  { %298 = vrot.lane.b32.xlu0 %v296_v17, %s2363_s24 }
 0x4d7   :  { %2182 = vrcp.f32 %v305_v20 }
 0x4e1   :  { %v2183_v24 = vpop.eup %2182 }
 0x548   :  { %v299_v22 = vpop.permute.xlu0 %298 }
 0x549   :  { %v301_v23 = vadd.f32 %v299_v22, %v294_v21 }
 0x54b   :  { %2184 = vtanh.f32 %v301_v23 }
 0x555   :  { %v2185_v25 = vpop.eup %2184 }
 0x556   :  { %v2538_v26 = vmul.f32 %v2185_v25, %v2183_v24  ;;  %v1965_v25 = vld [vmem:[%s3042_s0 + $0x50] sm:$0xff] }
 0x558   :  { %v319_v27 = vpack.c.bf16 %v2538_v26, %v2538_v26 }
 0x55a   :  { %321 = vrot.lane.b32.xlu1 %v319_v27, %s2363_s24 }
 0x5cc   :  { %v322_v28 = vpop.permute.xlu1 %321 }
 0x5cd   :  { %1957 = vmatmul.mubr.msk.bf16.vlgmr.msra.gmra.mrb[4].mxu1 %vm80_vm0, %v322_v28 }
 0x5ce   :  { %489 = vmatpush1.bf16.msra.mxu1 %v2426_v2  ;;  %520 = vmatprep.mubr.bf16.mxu1 %v2362_v1 }
 0x5cf   :  { %490 = vmatprep.subr.bf16.mxu1 %v2433_v3 }
 0x5d2   :  { %491 = vmatpush1.bf16.msra.mxu1 %v2440_v4 }
 0x5d3   :  { %492 = vmatprep.subr.bf16.mxu1 %v2447_v5 }
 0x5d6   :  { %493 = vmatpush1.bf16.msra.mxu1 %v2454_v6 }
 0x5d7   :  { %494 = vmatprep.subr.bf16.mxu1 %v2461_v7 }
 0x5da   :  { %495 = vmatpush1.bf16.msra.mxu1 %v2468_v8 }
 0x5db   :  { %650 = vmatprep.subr.bf16.mxu1 %v2419_v0 }
 0x6a0   :  { %v360_v30 = vpop.f32.mrb[4].mxu1 }
 0x6a1   :  { %v367_v32 = vadd.f32 %v1955_v29, %v360_v30  ;;  %v362_v33 = vpop.f32.mrb[5].mxu1 }
 0x6a2   :  { %v364_v34 = vpop.f32.mrb[6].mxu1  ;;  %v368_v38 = vadd.f32 %v1956_v37, %v362_v33 }
 0x6a3   :  { %v1958_v35 = vmul.f32 -1.442695, %v367_v32  ;;  %v365_v36 = vpop.f32.mrb[7].mxu1 }
 0x6a4   :  { %v1959_v43 = vmul.f32 -1.442695, %v368_v38 }
 0x6a5   :  { %2186 = vpow2.f32 %v1958_v35 }
 0x6a6   :  { %2188 = vtanh.f32 %v368_v38 }
 0x6af   :  { %v2187_v39 = vpop.eup %2186 }
 0x6b0   :  { %v372_v40 = vadd.f32 1.0, %v2187_v39  ;;  %v2189_v0 = vpop.eup %2188 }
 0x6b2   :  { %2190 = vrcp.f32 %v372_v40 }
 0x6b3   :  { %2192 = vpow2.f32 %v1959_v43 }
 0x6bc   :  { %v2191_v41 = vpop.eup %2190 }
 0x6bd   :  { %v377_v42 = vmul.f32 %v2191_v41, %v2189_v0  ;;  %v2193_v44 = vpop.eup %2192  ;;  %v375_v46 = vmul.f32 %v2191_v41, %v301_v23 }
 0x6be   :  { %v386_v45 = vadd.f32 1.0, %v2193_v44  ;;  %v1970_v44 = vld [vmem:[%s3042_s0 + $0x60] sm:$0xff] }
 0x6bf   :  { %379 = vrot.lane.b32.xlu0 %v377_v42, %s2363_s24 }
 0x6c0   :  { %2194 = vrcp.f32 %v386_v45 }
 0x6ca   :  { %v2195_v49 = vpop.eup %2194 }
 0x731   :  { %v380_v47 = vpop.permute.xlu0 %379 }
 0x732   :  { %v382_v48 = vadd.f32 %v380_v47, %v375_v46 }
 0x734   :  { %2196 = vtanh.f32 %v382_v48 }
 0x73e   :  { %v2197_v50 = vpop.eup %2196 }
 0x73f   :  { %v2560_v51 = vmul.f32 %v2197_v50, %v2195_v49 }
 0x741   :  { %v400_v52 = vpack.c.bf16 %v2560_v51, %v2560_v51 }
 0x743   :  { %402 = vrot.lane.b32.xlu1 %v400_v52, %s2363_s24  ;;  %v1971_v52 = vld [vmem:[%s3042_s0 + $0x68] sm:$0xff] }
 0x7b5   :  { %v403_v53 = vpop.permute.xlu1 %402 }
 0x7b6   :  { %1962 = vmatmul.mubr.msk.bf16.vlgmr.msra.gmra.mrb[8].mxu0 %vm80_vm0, %v403_v53 }
 0x7b7   :  { %570 = vmatpush1.bf16.msra.mxu0 %v2426_v2  ;;  %601 = vmatprep.mubr.bf16.mxu0 %v2362_v1 }
 0x7b8   :  { %571 = vmatprep.subr.bf16.mxu0 %v2433_v3 }
 0x7bb   :  { %572 = vmatpush1.bf16.msra.mxu0 %v2440_v4 }
 0x7bc   :  { %573 = vmatprep.subr.bf16.mxu0 %v2447_v5 }
 0x7bf   :  { %574 = vmatpush1.bf16.msra.mxu0 %v2454_v6 }
 0x7c0   :  { %575 = vmatprep.subr.bf16.mxu0 %v2461_v7 }
 0x7c3   :  { %576 = vmatpush1.bf16.msra.mxu0 %v2468_v8 }
 0x889   :  { %v441_v55 = vpop.f32.mrb[8].mxu0 }
 0x88a   :  { %v448_v57 = vadd.f32 %v1960_v54, %v441_v55  ;;  %v443_v58 = vpop.f32.mrb[9].mxu0 }
 0x88b   :  { %v445_v59 = vpop.f32.mrb[10].mxu0  ;;  %v449_v63 = vadd.f32 %v1961_v62, %v443_v58 }
 0x88c   :  { %v1963_v60 = vmul.f32 -1.442695, %v448_v57  ;;  %v446_v61 = vpop.f32.mrb[11].mxu0 }
 0x88d   :  { %v1964_v14 = vmul.f32 -1.442695, %v449_v63 }
 0x88e   :  { %2198 = vpow2.f32 %v1963_v60 }
 0x88f   :  { %2200 = vtanh.f32 %v449_v63 }
 0x898   :  { %v2199_v9 = vpop.eup %2198 }
 0x899   :  { %v453_v10 = vadd.f32 1.0, %v2199_v9  ;;  %v2201_v11 = vpop.eup %2200 }
 0x89b   :  { %2202 = vrcp.f32 %v453_v10 }
 0x89c   :  { %2204 = vpow2.f32 %v1964_v14 }
 0x8a5   :  { %v2203_v12 = vpop.eup %2202 }
 0x8a6   :  { %v458_v13 = vmul.f32 %v2203_v12, %v2201_v11  ;;  %v2205_v15 = vpop.eup %2204  ;;  %v456_v17 = vmul.f32 %v2203_v12, %v382_v48 }
 0x8a7   :  { %v467_v16 = vadd.f32 1.0, %v2205_v15 }
 0x8a8   :  { %460 = vrot.lane.b32.xlu0 %v458_v13, %s2363_s24 }
 0x8a9   :  { %2206 = vrcp.f32 %v467_v16 }
 0x8b3   :  { %v2207_v20 = vpop.eup %2206 }
 0x91a   :  { %v461_v18 = vpop.permute.xlu0 %460 }
 0x91b   :  { %v463_v19 = vadd.f32 %v461_v18, %v456_v17  ;;  %v1975_v18 = vld [vmem:[%s3042_s0 + $0x70] sm:$0xff] }
 0x91d   :  { %2208 = vtanh.f32 %v463_v19 }
 0x927   :  { %v2209_v21 = vpop.eup %2208 }
 0x928   :  { %v2581_v22 = vmul.f32 %v2209_v21, %v2207_v20 }
 0x92a   :  { %v481_v23 = vpack.c.bf16 %v2581_v22, %v2581_v22 }
 0x92c   :  { %483 = vrot.lane.b32.xlu1 %v481_v23, %s2363_s24 }
 0x99e   :  { %v484_v24 = vpop.permute.xlu1 %483 }
 0x99f   :  { %1967 = vmatmul.mubr.msk.bf16.vlgmr.msra.gmra.mrb[8].mxu1 %vm80_vm0, %v484_v24 }
 0x9a0   :  { %651 = vmatpush1.bf16.msra.mxu1 %v2426_v2  ;;  %682 = vmatprep.mubr.bf16.mxu1 %v2362_v1 }
 0x9a1   :  { %652 = vmatprep.subr.bf16.mxu1 %v2433_v3 }
 0x9a4   :  { %653 = vmatpush1.bf16.msra.mxu1 %v2440_v4  ;;  %v1966_v4 = vld [vmem:[%s3042_s0 + $0x58] sm:$0xff] }
 0x9a5   :  { %654 = vmatprep.subr.bf16.mxu1 %v2447_v5 }
 0x9a8   :  { %655 = vmatpush1.bf16.msra.mxu1 %v2454_v6 }
 0x9a9   :  { %656 = vmatprep.subr.bf16.mxu1 %v2461_v7 }
 0x9ac   :  { %657 = vmatpush1.bf16.msra.mxu1 %v2468_v8 }
 0xa72   :  { %v522_v27 = vpop.f32.mrb[8].mxu1 }
 0xa73   :  { %v529_v2 = vadd.f32 %v1965_v25, %v522_v27  ;;  %v524_v28 = vpop.f32.mrb[9].mxu1  ;;  %v1976_v25 = vld [vmem:[%s3042_s0 + $0x78] sm:$0xff] }
 0xa74   :  { %v526_v29 = vpop.f32.mrb[10].mxu1  ;;  %v530_v5 = vadd.f32 %v1966_v4, %v524_v28 }
 0xa75   :  { %v1968_v30 = vmul.f32 -1.442695, %v529_v2  ;;  %v527_v3 = vpop.f32.mrb[11].mxu1 }
 0xa76   :  { %v1969_v34 = vmul.f32 -1.442695, %v530_v5 }
 0xa77   :  { %2210 = vpow2.f32 %v1968_v30 }
 0xa78   :  { %2212 = vtanh.f32 %v530_v5 }
 0xa81   :  { %v2211_v6 = vpop.eup %2210 }
 0xa82   :  { %v534_v7 = vadd.f32 1.0, %v2211_v6  ;;  %v2213_v8 = vpop.eup %2212 }
 0xa84   :  { %2214 = vrcp.f32 %v534_v7 }
 0xa85   :  { %2216 = vpow2.f32 %v1969_v34 }
 0xa8e   :  { %v2215_v32 = vpop.eup %2214 }
 0xa8f   :  { %v539_v33 = vmul.f32 %v2215_v32, %v2213_v8  ;;  %v2217_v35 = vpop.eup %2216  ;;  %v537_v37 = vmul.f32 %v2215_v32, %v463_v19 }
 0xa90   :  { %v548_v36 = vadd.f32 1.0, %v2217_v35 }
 0xa91   :  { %541 = vrot.lane.b32.xlu0 %v539_v33, %s2363_s24 }
 0xa92   :  { %2218 = vrcp.f32 %v548_v36  ;;  %v2110_v36 = vld [vmem:[%s3043_s2] ss:$8 sps:$4 sm:$0xff]  }
 0xa9c   :  { %v2219_v40 = vpop.eup %2218 }
 0xb03   :  { %v542_v38 = vpop.permute.xlu0 %541 }
 0xb04   :  { %v544_v39 = vadd.f32 %v542_v38, %v537_v37  ;;  %v2112_v37 = vld [vmem:[%s3043_s2 + $0x4] ss:$8 sps:$4 sm:$0xff]   ;;  %v2115_v38 = vld [vmem:[%s3043_s2 + $0x14] ss:$8 sps:$4 sm:$0xff]  }
 0xb05   :  { %899 = vmatprep.subr.bf16.mxu0 %v2112_v37 }
 0xb06   :  { %2220 = vtanh.f32 %v544_v39 }
 0xb10   :  { %v2221_v0 = vpop.eup %2220 }
 0xb11   :  { %v2602_v41 = vmul.f32 %v2221_v0, %v2219_v40  ;;  %v2118_v40 = vld [vmem:[%s3043_s2 + $0x24] ss:$8 sps:$4 sm:$0xff]  }
 0xb12   :  { %v2652_v0 = vld [vmem:[%s3044_s4 + $0x4] ss:$8 sps:$4 sm:$0xff]  }
 0xb13   :  { %v562_v42 = vpack.c.bf16 %v2602_v41, %v2602_v41  ;;  %1038 = vmatprep.subr.bf16.mxu1 %v2652_v0 }
 0xb15   :  { %564 = vrot.lane.b32.xlu1 %v562_v42, %s2363_s24  ;;  %v2660_v42 = vld [vmem:[%s3044_s4] ss:$8 sps:$4 sm:$0xff]  }
 0xb87   :  { %v565_v43 = vpop.permute.xlu1 %564 }
 0xb88   :  { %1972 = vmatmul.mubr.msk.bf16.vlgmr.msra.gmra.mrb[12].mxu0 %vm80_vm0, %v565_v43  ;;  %v2666_v43 = vld [vmem:[%s3044_s4 + $0x14] ss:$8 sps:$4 sm:$0xff]  }
 0xb89   :  { %931 = vmatprep.mubr.bf16.mxu0 %v2362_v1  ;;  %900 = vmatpush1.bf16.msra.mxu0 %v2110_v36  ;;  %v807_v36 = vld [vmem:[%s3045_s3] sm:$0x3] }
 0xb8a   :  { %901 = vmatprep.subr.bf16.mxu0 %v2115_v38 }
 0xc5b   :  { %v603_v45 = vpop.f32.mrb[12].mxu0 }
 0xc5c   :  { %v610_v46 = vadd.f32 %v1970_v44, %v603_v45  ;;  %v605_v47 = vpop.f32.mrb[13].mxu0  ;;  %v2121_v44 = vld [vmem:[%s3043_s2 + $0x34] ss:$8 sps:$4 sm:$0xff]   ;;  %v2119_v45 = vld [vmem:[%s3043_s2 + $0x30] ss:$8 sps:$4 sm:$0xff]  }
 0xc5d   :  { %v607_v48 = vpop.f32.mrb[14].mxu0  ;;  %v611_v53 = vadd.f32 %v1971_v52, %v605_v47  ;;  %v2126_v47 = vld [vmem:[%s3043_s2 + $0x44] ss:$8 sps:$4 sm:$0xff]  }
 0xc5e   :  { %v1973_v49 = vmul.f32 -1.442695, %v610_v46  ;;  %v608_v50 = vpop.f32.mrb[15].mxu0  ;;  %v2679_v46 = vld [vmem:[%s3044_s4 + $0x10] ss:$8 sps:$4 sm:$0xff]  }
 0xc5f   :  { %v1974_v60 = vmul.f32 -1.442695, %v611_v53  ;;  %v2124_v48 = vld [vmem:[%s3043_s2 + $0x40] ss:$8 sps:$4 sm:$0xff]   ;;  %v2130_v50 = vld [vmem:[%s3043_s2 + $0x50] ss:$8 sps:$4 sm:$0xff]  }
 0xc60   :  { %2222 = vpow2.f32 %v1973_v49  ;;  %v2132_v49 = vld [vmem:[%s3043_s2 + $0x54] ss:$8 sps:$4 sm:$0xff]   ;;  %v2697_v52 = vld [vmem:[%s3044_s4 + $0x24] ss:$8 sps:$4 sm:$0xff]  }
 0xc61   :  { %2224 = vtanh.f32 %v611_v53  ;;  %v2138_v53 = vld [vmem:[%s3043_s2 + $0x64] ss:$8 sps:$4 sm:$0xff]  }
 0xc6a   :  { %v2223_v54 = vpop.eup %2222 }
 0xc6b   :  { %v615_v55 = vadd.f32 1.0, %v2223_v54  ;;  %v2225_v57 = vpop.eup %2224  ;;  %v2705_v54 = vld [vmem:[%s3044_s4 + $0x20] ss:$8 sps:$4 sm:$0xff]  }
 0xc6d   :  { %2226 = vrcp.f32 %v615_v55  ;;  %v2136_v55 = vld [vmem:[%s3043_s2 + $0x60] ss:$8 sps:$4 sm:$0xff]  }
 0xc6e   :  { %2228 = vpow2.f32 %v1974_v60  ;;  %v2724_v60 = vld [vmem:[%s3044_s4 + $0x30] ss:$8 sps:$4 sm:$0xff]  }
 0xc77   :  { %v2227_v58 = vpop.eup %2226 }
 0xc78   :  { %v620_v59 = vmul.f32 %v2227_v58, %v2225_v57  ;;  %v2229_v61 = vpop.eup %2228  ;;  %v618_v63 = vmul.f32 %v2227_v58, %v544_v39  ;;  %v2113_v39 = vld [vmem:[%s3043_s2 + $0x10] ss:$8 sps:$4 sm:$0xff]   ;;  %v2715_v58 = vld [vmem:[%s3044_s4 + $0x34] ss:$8 sps:$4 sm:$0xff]  }
 0xc79   :  { %v629_v62 = vadd.f32 1.0, %v2229_v61  ;;  %902 = vmatpush1.bf16.msra.mxu0 %v2113_v39  ;;  %v2142_v61 = vld [vmem:[%s3043_s2 + $0x70] ss:$8 sps:$4 sm:$0xff]  }
 0xc7a   :  { %622 = vrot.lane.b32.xlu0 %v620_v59, %s2363_s24  ;;  %903 = vmatprep.subr.bf16.mxu0 %v2118_v40  ;;  %v2144_v59 = vld [vmem:[%s3043_s2 + $0x74] ss:$8 sps:$4 sm:$0xff]  }
 0xc7b   :  { %2230 = vrcp.f32 %v629_v62 }
 0xc85   :  { %v2231_v11 = vpop.eup %2230 }
 0xcec   :  { %v623_v9 = vpop.permute.xlu0 %622 }
 0xced   :  { %v625_v10 = vadd.f32 %v623_v9, %v618_v63 }
 0xcef   :  { %2232 = vtanh.f32 %v625_v10 }
 0xcf9   :  { %v2233_v12 = vpop.eup %2232 }
 0xcfa   :  { %v633_v13 = vmul.f32 %v2233_v12, %v2231_v11 }
 0xcfc   :  { %v643_v14 = vpack.c.bf16 %v633_v13, %v633_v13 }
 0xcfe   :  { %645 = vrot.lane.b32.xlu1 %v643_v14, %s2363_s24 }
 0xd02   :  { %635 = vrot.lane.b32.xlu1 %v633_v13, %s2363_s24 }
 0xd06   :  { %150 = vrot.lane.b32.xlu1 %v2494_v31, %s2363_s24 }
 0xd70   :  { %v646_v15 = vpop.permute.xlu1 %645 }
 0xd71   :  { %1977 = vmatmul.mubr.msk.bf16.vlgmr.msra.gmra.mrb[12].mxu1 %vm80_vm0, %v646_v15 }
 0xd72   :  { %1070 = vmatprep.mubr.bf16.mxu1 %v2362_v1  ;;  %1039 = vmatpush1.bf16.msra.mxu1 %v2660_v42 }
 0xd73   :  { %1040 = vmatprep.subr.bf16.mxu1 %v2666_v43 }
 0xd74   :  { %v636_v16 = vpop.permute.xlu1 %635 }
 0xd75   :  { %639 = vst.msk [vmem:[#allocation2 + $0x30] sm:$0xff] %vm80_vm0, %v636_v16 }
 0xd76   :  { %1041 = vmatpush1.bf16.msra.mxu1 %v2679_v46 }
 0xd77   :  { %1042 = vmatprep.subr.bf16.mxu1 %v2697_v52 }
 0xd78   :  { %v151_v17 = vpop.permute.xlu1 %150 }
 0xd79   :  { %153 = vst.msk [vmem:[#allocation2] sm:$0xff] %vm80_vm0, %v151_v17 }
 0xd7a   :  { %1043 = vmatpush1.bf16.msra.mxu1 %v2705_v54 }
 0xd7b   :  { %1044 = vmatprep.subr.bf16.mxu1 %v2715_v58 }
 0xd7c   :  { %v737_v9 = vld [vmem:[#allocation2 + $0x30] sm:$0xff] }
 0xd7e   :  { %1045 = vmatpush1.bf16.msra.mxu1 %v2724_v60 }
 0xd7f   :  { %1118 = vmatprep.subr.bf16.mxu1 %v2652_v0 }
 0xd81   :  { %1071 = vmatmul.mubr.bf16.vlgmr.msra.gmra.mrb[16].mxu1 %v2362_v1 }
 0xd82   :  { %1119 = vmatpush1.bf16.msra.mxu1 %v2660_v42  ;;  %1150 = vmatprep.mubr.bf16.mxu1 %v2362_v1 }
 0xd83   :  { %1120 = vmatprep.subr.bf16.mxu1 %v2666_v43 }
 0xd86   :  { %1121 = vmatpush1.bf16.msra.mxu1 %v2679_v46 }
 0xd87   :  { %1122 = vmatprep.subr.bf16.mxu1 %v2697_v52 }
 0xd8a   :  { %1123 = vmatpush1.bf16.msra.mxu1 %v2705_v54 }
 0xd8b   :  { %1124 = vmatprep.subr.bf16.mxu1 %v2715_v58 }
 0xd8e   :  { %1125 = vmatpush1.bf16.msra.mxu1 %v2724_v60 }
 0xd8f   :  { %1199 = vmatprep.subr.bf16.mxu1 %v2652_v0 }
 0xe44   :  { %v684_v19 = vpop.f32.mrb[12].mxu1 }
 0xe45   :  { %v691_v20 = vadd.f32 %v1975_v18, %v684_v19  ;;  %v686_v21 = vpop.f32.mrb[13].mxu1 }
 0xe46   :  { %v688_v23 = vpop.f32.mrb[14].mxu1  ;;  %v692_v27 = vadd.f32 %v1976_v25, %v686_v21 }
 0xe47   :  { %v1978_v31 = vmul.f32 -1.442695, %v691_v20  ;;  %v689_v24 = vpop.f32.mrb[15].mxu1 }
 0xe48   :  { %v1979_v4 = vmul.f32 -1.442695, %v692_v27 }
 0xe49   :  { %2234 = vpow2.f32 %v1978_v31 }
 0xe4a   :  { %2236 = vtanh.f32 %v692_v27 }
 0xe53   :  { %v2235_v2 = vpop.eup %2234 }
 0xe54   :  { %v696_v28 = vadd.f32 1.0, %v2235_v2  ;;  %v2237_v29 = vpop.eup %2236 }
 0xe56   :  { %2238 = vrcp.f32 %v696_v28 }
 0xe57   :  { %2240 = vpow2.f32 %v1979_v4 }
 0xe60   :  { %v2239_v30 = vpop.eup %2238 }
 0xe61   :  { %v701_v3 = vmul.f32 %v2239_v30, %v2237_v29  ;;  %v2241_v5 = vpop.eup %2240  ;;  %v699_v7 = vmul.f32 %v2239_v30, %v625_v10  ;;  %v721_v10 = vld [vmem:[#allocation2] sm:$0xff] }
 0xe62   :  { %v710_v6 = vadd.f32 1.0, %v2241_v5 }
 0xe63   :  { %703 = vrot.lane.b32.xlu0 %v701_v3, %s2363_s24 }
 0xe64   :  { %2242 = vrcp.f32 %v710_v6  ;;  %v1072_v6 = vpop.f32.mrb[16].mxu1 }
 0xe6e   :  { %v2243_v33 = vpop.eup %2242 }
 0xed5   :  { %v704_v8 = vpop.permute.xlu0 %703 }
 0xed6   :  { %v706_v32 = vadd.f32 %v704_v8, %v699_v7  ;;  %v1074_v7 = vpop.f32.mrb[17].mxu1 }
 0xed7   :  { %v1076_v8 = vpop.f32.mrb[18].mxu1 }
 0xed8   :  { %2244 = vtanh.f32 %v706_v32  ;;  %v1077_v32 = vpop.f32.mrb[19].mxu1 }
 0xee2   :  { %v2245_v34 = vpop.eup %2244 }
 0xee3   :  { %v714_v35 = vmul.f32 %v2245_v34, %v2243_v33  ;;  %v809_v33 = vlaneseq }
 0xee5   :  { %716 = vrot.lane.b32.xlu0 %v714_v35, %s2363_s24  ;;  %v810_v34 = vshrl.u32 %v809_v33, 7 }
 0xee7   :  { %v811_v35 = vsub.s32 0, %v810_v34  ;;  %v815_v37 = vsub.s32 1, %v810_v34 }
 0xee9   :  { %230 = vrot.lane.b32.xlu0 %v2516_v56, %s2363_s24  ;;  %v2116_v56 = vld [vmem:[%s3043_s2 + $0x20] ss:$8 sps:$4 sm:$0xff]   ;;  %v2776_v38 = vrot.slane %v807_v36, %v811_v35  ;;  %v2778_v39 = vrot.slane %v807_v36, %v815_v37 }
 0xeea   :  { %904 = vmatpush1.bf16.msra.mxu0 %v2116_v56 }
 0xeeb   :  { %905 = vmatprep.subr.bf16.mxu0 %v2121_v44 }
 0xeee   :  { %906 = vmatpush1.bf16.msra.mxu0 %v2119_v45 }
 0xeef   :  { %907 = vmatprep.subr.bf16.mxu0 %v2126_v47 }
 0xef2   :  { %908 = vmatpush1.bf16.msra.mxu0 %v2124_v48 }
 0xef3   :  { %909 = vmatprep.subr.bf16.mxu0 %v2132_v49 }
 0xef6   :  { %910 = vmatpush1.bf16.msra.mxu0 %v2130_v50 }
 0xef7   :  { %911 = vmatprep.subr.bf16.mxu0 %v2138_v53 }
 0xefa   :  { %912 = vmatpush1.bf16.msra.mxu0 %v2136_v55 }
 0xefb   :  { %913 = vmatprep.subr.bf16.mxu0 %v2144_v59 }
 0xefe   :  { %914 = vmatpush1.bf16.msra.mxu0 %v2142_v61 }
 0xeff   :  { %1280 = vmatprep.subr.bf16.mxu0 %v2652_v0 }
 0xf57   :  { %v717_v57 = vpop.permute.xlu0 %716 }
 0xf58   :  { %720 = vst.msk [vmem:[#allocation2 + $0x38] sm:$0xff] %vm80_vm0, %v717_v57 }
 0xf5b   :  { %v231_v62 = vpop.permute.xlu0 %230 }
 0xf5c   :  { %234 = vst.msk [vmem:[#allocation2 + $0x8] sm:$0xff] %vm80_vm0, %v231_v62 }
 0xf5f   :  { %v722_v63 = vld [vmem:[#allocation2 + $0x38] sm:$0xff] }
 0xf60   :  { %v2069_v11 = vpack.i.bf16 %v737_v9, %v722_v63  ;;  %v732_v12 = vsel %vm731_vm1, %v721_v10, %v722_v63  ;;  %v784_v13 = vsel %vm731_vm1, %v722_v63, %v721_v10 }
 0xf62   :  { %2070 = vrot.lane.b32.xlu1 %v2069_v11, %s2363_s24 }
 0xf63   :  { %v736_v14 = vld [vmem:[#allocation2 + $0x8] sm:$0xff] }
 0xf64   :  { %v2074_v15 = vpack.i.bf16 %v736_v14, %v721_v10  ;;  %v746_v16 = vsel %vm731_vm1, %v736_v14, %v737_v9  ;;  %v781_v17 = vsel %vm731_vm1, %v737_v9, %v736_v14 }
 0xf66   :  { %2075 = vrot.lane.b32.xlu0 %v2074_v15, %s2363_s24 }
 0xfd4   :  { %v2071_v18 = vpop.permute.xlu1 %2070 }
 0xfd5   :  { %v2073_v19 = vunpack.i.h.bf16 %v2071_v18  ;;  %v2072_v20 = vunpack.i.l.bf16 %v2071_v18 }
 0xfd7   :  { %v733_v24 = vsel %vm80_vm0, %v732_v12, %v2072_v20  ;;  %v747_v25 = vsel %vm80_vm0, %v746_v16, %v2073_v19 }
 0xfd8   :  { %v2076_v21 = vpop.permute.xlu0 %2075 }
 0xfd9   :  { %v2078_v23 = vunpack.i.h.bf16 %v2076_v21  ;;  %v2077_v31 = vunpack.i.l.bf16 %v2076_v21 }
 0xfdb   :  { %v735_v27 = vsel %vm734_vm2, %v733_v24, %v2077_v31  ;;  %v748_v2 = vsel %vm734_vm2, %v747_v25, %v2078_v23  ;;  %v782_v28 = vsel %vm80_vm0, %v781_v17, %v2078_v23  ;;  %v785_v29 = vsel %vm80_vm0, %v784_v13, %v2077_v31 }
 0xfdc   :  { %v787_v30 = vpack.c.bf16 %v748_v2, %v735_v27  ;;  %v2757_v3 = vsel %vm734_vm2, %v782_v28, %v2073_v19  ;;  %v2760_v4 = vsel %vm734_vm2, %v785_v29, %v2072_v20 }
 0xfdd   :  { %v790_v5 = vpack.c.bf16 %v2760_v4, %v2757_v3 }
 0xfde   :  { %932 = vmatmul.mubr.bf16.vlgmr.msra.gmra.mrb[16].mxu0 %v787_v30 }
 0xfdf   :  { %941 = vmatprep.mubr.bf16.mxu0 %v2362_v1  ;;  %1281 = vmatpush1.bf16.msra.mxu0 %v2660_v42 }
 0xfe0   :  { %1282 = vmatprep.subr.bf16.mxu0 %v2666_v43 }
 0xfe3   :  { %1283 = vmatpush1.bf16.msra.mxu0 %v2679_v46 }
 0xfe4   :  { %1284 = vmatprep.subr.bf16.mxu0 %v2697_v52 }
 0xfe7   :  { %1285 = vmatpush1.bf16.msra.mxu0 %v2705_v54 }
 0xfe8   :  { %1286 = vmatprep.subr.bf16.mxu0 %v2715_v58 }
 0xfeb   :  { %1287 = vmatpush1.bf16.msra.mxu0 %v2724_v60 }
 0xfec   :  { %1442 = vmatprep.subr.bf16.mxu0 %v2652_v0 }
0x10b1   :  { %v933_v40 = vpop.f32.mrb[16].mxu0 }
0x10b2   :  { %v934_v56 = vadd.f32 %v933_v40, %v2776_v38  ;;  %v935_v44 = vpop.f32.mrb[17].mxu0 }
0x10b3   :  { %v936_v45 = vadd.f32 %v935_v44, %v2778_v39  ;;  %v937_v47 = vpop.f32.mrb[18].mxu0 }
0x10b4   :  { %v1079_v48 = vadd.f32 %v1072_v6, %v934_v56  ;;  %v939_v49 = vpop.f32.mrb[19].mxu0  ;;  %v938_v23 = vadd.f32 %v937_v47, %v2776_v38 }
0x10b5   :  { %v1080_v50 = vadd.f32 %v1074_v7, %v936_v45  ;;  %v940_v31 = vadd.f32 %v939_v49, %v2778_v39 }
0x10b6   :  { %v2004_v53 = vmul.f32 -1.442695, %v1079_v48 }
0x10b7   :  { %v2005_v63 = vmul.f32 -1.442695, %v1080_v50 }
0x10b8   :  { %2246 = vpow2.f32 %v2004_v53 }
0x10b9   :  { %2248 = vtanh.f32 %v1080_v50 }
0x10c2   :  { %v2247_v55 = vpop.eup %2246 }
0x10c3   :  { %v1084_v57 = vadd.f32 1.0, %v2247_v55  ;;  %v2249_v59 = vpop.eup %2248 }
0x10c5   :  { %2250 = vrcp.f32 %v1084_v57 }
0x10c6   :  { %2252 = vpow2.f32 %v2005_v63 }
0x10cf   :  { %v2251_v61 = vpop.eup %2250 }
0x10d0   :  { %v1089_v62 = vmul.f32 %v2251_v61, %v2249_v59  ;;  %v2253_v9 = vpop.eup %2252  ;;  %v1087_v11 = vmul.f32 0.0, %v2251_v61 }
0x10d1   :  { %v1098_v10 = vadd.f32 1.0, %v2253_v9 }
0x10d2   :  { %1091 = vrot.lane.b32.xlu1 %v1089_v62, %s2363_s24 }
0x10d3   :  { %2254 = vrcp.f32 %v1098_v10 }
0x10d6   :  { %554 = vrot.lane.b32.xlu1 %v2602_v41, %s2363_s24 }
0x10dd   :  { %v2255_v15 = vpop.eup %2254 }
0x1144   :  { %v1092_v12 = vpop.permute.xlu1 %1091 }
0x1145   :  { %v1094_v13 = vadd.f32 %v1092_v12, %v1087_v11 }
0x1147   :  { %2256 = vtanh.f32 %v1094_v13 }
0x1148   :  { %v555_v14 = vpop.permute.xlu1 %554 }
0x1149   :  { %558 = vst.msk [vmem:[#allocation2 + $0x28] sm:$0xff] %vm80_vm0, %v555_v14 }
0x1151   :  { %v2257_v16 = vpop.eup %2256 }
0x1152   :  { %v2786_v17 = vmul.f32 %v2257_v16, %v2255_v15 }
0x1154   :  { %v1111_v18 = vpack.c.bf16 %v2786_v17, %v2786_v17 }
0x1156   :  { %1113 = vrot.lane.b32.xlu0 %v1111_v18, %s2363_s24 }
0x115a   :  { %473 = vrot.lane.b32.xlu0 %v2581_v22, %s2363_s24 }
0x115e   :  { %311 = vrot.lane.b32.xlu0 %v2538_v26, %s2363_s24  ;;  %v750_v26 = vld [vmem:[#allocation2 + $0x28] sm:$0xff] }
0x11c8   :  { %v1114_v41 = vpop.permute.xlu0 %1113 }
0x11c9   :  { %2006 = vmatmul.mubr.msk.bf16.vlgmr.msra.gmra.mrb[20].mxu1 %vm80_vm0, %v1114_v41 }
0x11ca   :  { %1200 = vmatpush1.bf16.msra.mxu1 %v2660_v42  ;;  %1231 = vmatprep.mubr.bf16.mxu1 %v2362_v1 }
0x11cb   :  { %1201 = vmatprep.subr.bf16.mxu1 %v2666_v43 }
0x11cc   :  { %v474_v19 = vpop.permute.xlu0 %473 }
0x11cd   :  { %477 = vst.msk [vmem:[#allocation2 + $0x20] sm:$0xff] %vm80_vm0, %v474_v19 }
0x11ce   :  { %1202 = vmatpush1.bf16.msra.mxu1 %v2679_v46 }
0x11cf   :  { %1203 = vmatprep.subr.bf16.mxu1 %v2697_v52 }
0x11d0   :  { %v312_v22 = vpop.permute.xlu0 %311 }
0x11d1   :  { %315 = vst.msk [vmem:[#allocation2 + $0x10] sm:$0xff] %vm80_vm0, %v312_v22 }
0x11d2   :  { %1204 = vmatpush1.bf16.msra.mxu1 %v2705_v54 }
0x11d3   :  { %1205 = vmatprep.subr.bf16.mxu1 %v2715_v58 }
0x11d4   :  { %v763_v20 = vld [vmem:[#allocation2 + $0x20] sm:$0xff] }
0x11d5   :  { %v2079_v21 = vpack.i.bf16 %v763_v20, %v750_v26 }
0x11d6   :  { %1206 = vmatpush1.bf16.msra.mxu1 %v2724_v60 }
0x11d7   :  { %2080 = vrot.lane.b32.xlu0 %v2079_v21, %s2363_s24  ;;  %1361 = vmatprep.subr.bf16.mxu1 %v2652_v0 }
0x11d8   :  { %v749_v47 = vld [vmem:[#allocation2 + $0x10] sm:$0xff] }
0x11d9   :  { %v759_v63 = vsel %vm731_vm1, %v749_v47, %v750_v26  ;;  %v778_v12 = vsel %vm731_vm1, %v750_v26, %v749_v47 }
0x1249   :  { %v2081_v55 = vpop.permute.xlu0 %2080 }
0x124a   :  { %v2082_v57 = vunpack.i.l.bf16 %v2081_v55  ;;  %v2083_v61 = vunpack.i.h.bf16 %v2081_v55 }
0x124c   :  { %v760_v11 = vsel %vm80_vm0, %v759_v63, %v2082_v57 }
0x129c   :  { %v1152_v24 = vpop.f32.mrb[20].mxu1 }
0x129d   :  { %v1159_v25 = vadd.f32 %v1152_v24, %v938_v23  ;;  %v1154_v27 = vpop.f32.mrb[21].mxu1 }
0x129e   :  { %v1160_v2 = vadd.f32 %v1154_v27, %v940_v31  ;;  %v1156_v28 = vpop.f32.mrb[22].mxu1 }
0x129f   :  { %v2007_v29 = vmul.f32 -1.442695, %v1159_v25  ;;  %v1157_v30 = vpop.f32.mrb[23].mxu1 }
0x12a0   :  { %v2008_v34 = vmul.f32 -1.442695, %v1160_v2 }
0x12a1   :  { %2258 = vpow2.f32 %v2007_v29 }
0x12a2   :  { %2260 = vtanh.f32 %v1160_v2 }
0x12ab   :  { %v2259_v6 = vpop.eup %2258 }
0x12ac   :  { %v1164_v7 = vadd.f32 1.0, %v2259_v6  ;;  %v2261_v8 = vpop.eup %2260 }
0x12ae   :  { %2262 = vrcp.f32 %v1164_v7 }
0x12af   :  { %2264 = vpow2.f32 %v2008_v34 }
0x12b8   :  { %v2263_v32 = vpop.eup %2262 }
0x12b9   :  { %v1169_v33 = vmul.f32 %v2263_v32, %v2261_v8  ;;  %v2265_v35 = vpop.eup %2264  ;;  %v1167_v37 = vmul.f32 %v2263_v32, %v1094_v13 }
0x12ba   :  { %v1178_v36 = vadd.f32 1.0, %v2265_v35 }
0x12bb   :  { %1171 = vrot.lane.b32.xlu1 %v1169_v33, %s2363_s24 }
0x12bc   :  { %2266 = vrcp.f32 %v1178_v36 }
0x12bf   :  { %392 = vrot.lane.b32.xlu1 %v2560_v51, %s2363_s24 }
0x12c6   :  { %v2267_v45 = vpop.eup %2266 }
0x132d   :  { %v1172_v40 = vpop.permute.xlu1 %1171 }
0x132e   :  { %v2813_v56 = vadd.f32 %v1172_v40, %v1167_v37 }
0x1330   :  { %2268 = vtanh.f32 %v2813_v56 }
0x1331   :  { %v393_v44 = vpop.permute.xlu1 %392 }
0x1332   :  { %396 = vst.msk [vmem:[#allocation2 + $0x18] sm:$0xff] %vm80_vm0, %v393_v44 }
0x1339   :  { %v762_v48 = vld [vmem:[#allocation2 + $0x18] sm:$0xff] }
0x133a   :  { %v2269_v49 = vpop.eup %2268  ;;  %v2084_v50 = vpack.i.bf16 %v762_v48, %v749_v47  ;;  %v772_v59 = vsel %vm731_vm1, %v762_v48, %v763_v20  ;;  %v775_v13 = vsel %vm731_vm1, %v763_v20, %v762_v48 }
0x133b   :  { %v2817_v51 = vmul.f32 %v2269_v49, %v2267_v45  ;;  %v773_v14 = vsel %vm80_vm0, %v772_v59, %v2083_v61 }
0x133c   :  { %2085 = vrot.lane.b32.xlu1 %v2084_v50, %s2363_s24 }
0x133d   :  { %v1192_v53 = vpack.c.bf16 %v2817_v51, %v2817_v51 }
0x133f   :  { %1194 = vrot.lane.b32.xlu0 %v1192_v53, %s2363_s24 }
0x13ae   :  { %v2086_v62 = vpop.permute.xlu1 %2085 }
0x13af   :  { %v2088_v9 = vunpack.i.h.bf16 %v2086_v62  ;;  %v2087_v10 = vunpack.i.l.bf16 %v2086_v62 }
0x13b1   :  { %v776_v15 = vsel %vm80_vm0, %v775_v13, %v2088_v9  ;;  %v779_v16 = vsel %vm80_vm0, %v778_v12, %v2087_v10  ;;  %v1195_v18 = vpop.permute.xlu0 %1194  ;;  %v761_v41 = vsel %vm734_vm2, %v760_v11, %v2087_v10  ;;  %v774_v19 = vsel %vm734_vm2, %v773_v14, %v2088_v9 }
0x13b2   :  { %2009 = vmatmul.mubr.msk.bf16.vlgmr.msra.gmra.mrb[24].mxu1 %vm80_vm0, %v1195_v18  ;;  %v788_v22 = vpack.c.bf16 %v774_v19, %v761_v41  ;;  %v777_v21 = vsel %vm734_vm2, %v776_v15, %v2083_v61  ;;  %v780_v26 = vsel %vm734_vm2, %v779_v16, %v2082_v57 }
0x13b3   :  { %v789_v23 = vpack.c.bf16 %v780_v26, %v777_v21  ;;  %1362 = vmatpush1.bf16.msra.mxu1 %v2660_v42  ;;  %1393 = vmatprep.mubr.bf16.mxu1 %v2362_v1 }
0x13b4   :  { %942 = vmatmul.mubr.bf16.gmra.mrb[20].mxu0 %v788_v22  ;;  %1363 = vmatprep.subr.bf16.mxu1 %v2666_v43 }
0x13b5   :  { %951 = vmatprep.mubr.bf16.mxu0 %v2362_v1 }
0x13b7   :  { %1364 = vmatpush1.bf16.msra.mxu1 %v2679_v46 }
0x13b8   :  { %1365 = vmatprep.subr.bf16.mxu1 %v2697_v52 }
0x13bb   :  { %1366 = vmatpush1.bf16.msra.mxu1 %v2705_v54 }
0x13bc   :  { %952 = vmatmul.mubr.bf16.gmra.mrb[24].mxu0 %v789_v23  ;;  %1367 = vmatprep.subr.bf16.mxu1 %v2715_v58 }
0x13bd   :  { %961 = vmatprep.mubr.bf16.mxu0 %v2362_v1 }
0x13bf   :  { %1368 = vmatpush1.bf16.msra.mxu1 %v2724_v60 }
0x13c0   :  { %1523 = vmatprep.subr.bf16.mxu1 %v2652_v0 }
0x13c4   :  { %962 = vmatmul.mubr.bf16.gmra.mrb[28].mxu0 %v790_v5 }
0x13c5   :  { %1312 = vmatprep.mubr.bf16.mxu0 %v2362_v1 }
0x1485   :  { %v1233_v20 = vpop.f32.mrb[24].mxu1 }
0x1486   :  { %v1235_v31 = vpop.f32.mrb[25].mxu1 }
0x1487   :  { %v943_v24 = vpop.f32.mrb[20].mxu0  ;;  %v1237_v25 = vpop.f32.mrb[26].mxu1 }
0x1488   :  { %v944_v27 = vadd.f32 %v943_v24, %v2776_v38  ;;  %v945_v2 = vpop.f32.mrb[21].mxu0  ;;  %v1238_v28 = vpop.f32.mrb[27].mxu1 }
0x1489   :  { %v946_v29 = vadd.f32 %v945_v2, %v2778_v39  ;;  %v947_v30 = vpop.f32.mrb[22].mxu0 }
0x148a   :  { %v1240_v6 = vadd.f32 %v1233_v20, %v944_v27  ;;  %v949_v7 = vpop.f32.mrb[23].mxu0 }
0x148b   :  { %v1241_v8 = vadd.f32 %v1235_v31, %v946_v29  ;;  %v950_v11 = vadd.f32 %v949_v7, %v2778_v39 }
0x148c   :  { %v2010_v32 = vmul.f32 -1.442695, %v1240_v6 }
0x148d   :  { %v2011_v49 = vmul.f32 -1.442695, %v1241_v8 }
0x148e   :  { %2270 = vpow2.f32 %v2010_v32 }
0x148f   :  { %v2853_v3 = vpop.f32.mrb[24].mxu0  ;;  %2272 = vtanh.f32 %v1241_v8 }
0x1490   :  { %v2855_v4 = vpop.f32.mrb[25].mxu0  ;;  %v954_v7 = vadd.f32 %v2853_v3, %v2776_v38 }
0x1491   :  { %v2857_v5 = vpop.f32.mrb[26].mxu0  ;;  %v956_v8 = vadd.f32 %v2855_v4, %v2778_v39 }
0x1492   :  { %v2859_v33 = vpop.f32.mrb[27].mxu0 }
0x1497   :  { %v2861_v34 = vpop.f32.mrb[28].mxu0 }
0x1498   :  { %v2271_v35 = vpop.eup %2270  ;;  %v2863_v36 = vpop.f32.mrb[29].mxu0 }
0x1499   :  { %v1245_v37 = vadd.f32 1.0, %v2271_v35  ;;  %v2865_v40 = vpop.f32.mrb[30].mxu0  ;;  %v2273_v45 = vpop.eup %2272 }
0x149a   :  { %v2867_v44 = vpop.f32.mrb[31].mxu0 }
0x149b   :  { %2274 = vrcp.f32 %v1245_v37 }
0x149c   :  { %2276 = vpow2.f32 %v2011_v49 }
0x14a5   :  { %v2275_v47 = vpop.eup %2274 }
0x14a6   :  { %v1250_v48 = vmul.f32 %v2275_v47, %v2273_v45  ;;  %v2277_v50 = vpop.eup %2276  ;;  %v1248_v55 = vmul.f32 %v2275_v47, %v2813_v56  ;;  %v948_v56 = vadd.f32 %v947_v30, %v2776_v38 }
0x14a7   :  { %v1259_v53 = vadd.f32 1.0, %v2277_v50 }
0x14a8   :  { %1252 = vrot.lane.b32.xlu1 %v1250_v48, %s2363_s24 }
0x14a9   :  { %2278 = vrcp.f32 %v1259_v53 }
0x14b3   :  { %v2279_v61 = vpop.eup %2278 }
0x151a   :  { %v1253_v57 = vpop.permute.xlu1 %1252 }
0x151b   :  { %v1255_v59 = vadd.f32 %v1253_v57, %v1248_v55 }
0x151d   :  { %2280 = vtanh.f32 %v1255_v59 }
0x1527   :  { %v2281_v62 = vpop.eup %2280 }
0x1528   :  { %v2871_v63 = vmul.f32 %v2281_v62, %v2279_v61 }
0x152a   :  { %v1273_v9 = vpack.c.bf16 %v2871_v63, %v2871_v63 }
0x152c   :  { %1275 = vrot.lane.b32.xlu0 %v1273_v9, %s2363_s24 }
0x159e   :  { %v1276_v10 = vpop.permute.xlu0 %1275 }
0x159f   :  { %2012 = vmatmul.mubr.msk.bf16.vlgmr.msra.gmra.mrb[32].mxu0 %vm80_vm0, %v1276_v10 }
0x15a0   :  { %1443 = vmatpush1.bf16.msra.mxu0 %v2660_v42  ;;  %1474 = vmatprep.mubr.bf16.mxu0 %v2362_v1 }
0x15a1   :  { %1444 = vmatprep.subr.bf16.mxu0 %v2666_v43 }
0x15a4   :  { %1445 = vmatpush1.bf16.msra.mxu0 %v2679_v46 }
0x15a5   :  { %1446 = vmatprep.subr.bf16.mxu0 %v2697_v52 }
0x15a8   :  { %1447 = vmatpush1.bf16.msra.mxu0 %v2705_v54 }
0x15a9   :  { %1448 = vmatprep.subr.bf16.mxu0 %v2715_v58 }
0x15ac   :  { %1449 = vmatpush1.bf16.msra.mxu0 %v2724_v60 }
0x15ad   :  { %1604 = vmatprep.subr.bf16.mxu0 %v2652_v0 }
0x1672   :  { %v1314_v12 = vpop.f32.mrb[32].mxu0 }
0x1673   :  { %v1321_v13 = vadd.f32 %v1314_v12, %v948_v56  ;;  %v1316_v14 = vpop.f32.mrb[33].mxu0 }
0x1674   :  { %v1322_v15 = vadd.f32 %v1316_v14, %v950_v11  ;;  %v1318_v16 = vpop.f32.mrb[34].mxu0 }
0x1675   :  { %v2013_v18 = vmul.f32 -1.442695, %v1321_v13  ;;  %v1319_v41 = vpop.f32.mrb[35].mxu0 }
0x1676   :  { %v2014_v0 = vmul.f32 -1.442695, %v1322_v15 }
0x1677   :  { %2282 = vpow2.f32 %v2013_v18 }
0x1678   :  { %2284 = vtanh.f32 %v1322_v15  ;;  %v958_v15 = vadd.f32 %v2857_v5, %v2776_v38 }
0x1681   :  { %v2283_v19 = vpop.eup %2282 }
0x1682   :  { %v1326_v22 = vadd.f32 1.0, %v2283_v19  ;;  %v2285_v21 = vpop.eup %2284 }
0x1684   :  { %2286 = vrcp.f32 %v1326_v22 }
0x1685   :  { %2288 = vpow2.f32 %v2014_v0 }
0x168e   :  { %v2287_v26 = vpop.eup %2286 }
0x168f   :  { %v1331_v23 = vmul.f32 %v2287_v26, %v2285_v21  ;;  %v2289_v20 = vpop.eup %2288  ;;  %v1329_v24 = vmul.f32 %v2287_v26, %v1255_v59 }
0x1690   :  { %v1340_v31 = vadd.f32 1.0, %v2289_v20 }
0x1691   :  { %1333 = vrot.lane.b32.xlu1 %v1331_v23, %s2363_s24 }
0x1692   :  { %2290 = vrcp.f32 %v1340_v31 }
0x169c   :  { %v2291_v2 = vpop.eup %2290 }
0x1703   :  { %v1334_v25 = vpop.permute.xlu1 %1333 }
0x1704   :  { %v1336_v27 = vadd.f32 %v1334_v25, %v1329_v24 }
0x1706   :  { %2292 = vtanh.f32 %v1336_v27 }
0x1710   :  { %v2293_v28 = vpop.eup %2292 }
0x1711   :  { %v2889_v29 = vmul.f32 %v2293_v28, %v2291_v2  ;;  %v964_v2 = vadd.f32 %v2861_v34, %v2776_v38  ;;  %v966_v28 = vadd.f32 %v2863_v36, %v2778_v39 }
0x1713   :  { %v1354_v30 = vpack.c.bf16 %v2889_v29, %v2889_v29 }
0x1715   :  { %1356 = vrot.lane.b32.xlu0 %v1354_v30, %s2363_s24 }
0x1787   :  { %v1357_v6 = vpop.permute.xlu0 %1356 }
0x1788   :  { %2015 = vmatmul.mubr.msk.bf16.vlgmr.msra.gmra.mrb[28].mxu1 %vm80_vm0, %v1357_v6 }
0x1789   :  { %1524 = vmatpush1.bf16.msra.mxu1 %v2660_v42  ;;  %1555 = vmatprep.mubr.bf16.mxu1 %v2362_v1 }
0x178a   :  { %1525 = vmatprep.subr.bf16.mxu1 %v2666_v43 }
0x178d   :  { %1526 = vmatpush1.bf16.msra.mxu1 %v2679_v46 }
0x178e   :  { %1527 = vmatprep.subr.bf16.mxu1 %v2697_v52 }
0x1791   :  { %1528 = vmatpush1.bf16.msra.mxu1 %v2705_v54 }
0x1792   :  { %1529 = vmatprep.subr.bf16.mxu1 %v2715_v58 }
0x1795   :  { %1530 = vmatpush1.bf16.msra.mxu1 %v2724_v60 }
0x185b   :  { %v1395_v32 = vpop.f32.mrb[28].mxu1 }
0x185c   :  { %v1402_v35 = vadd.f32 %v1395_v32, %v954_v7  ;;  %v1397_v37 = vpop.f32.mrb[29].mxu1 }
0x185d   :  { %v1403_v45 = vadd.f32 %v1397_v37, %v956_v8  ;;  %v1399_v47 = vpop.f32.mrb[30].mxu1 }
0x185e   :  { %v2016_v48 = vmul.f32 -1.442695, %v1402_v35  ;;  %v1400_v49 = vpop.f32.mrb[31].mxu1 }
0x185f   :  { %v2017_v3 = vmul.f32 -1.442695, %v1403_v45 }
0x1860   :  { %2294 = vpow2.f32 %v2016_v48 }
0x1861   :  { %2296 = vtanh.f32 %v1403_v45 }
0x186a   :  { %v2295_v50 = vpop.eup %2294 }
0x186b   :  { %v1407_v53 = vadd.f32 1.0, %v2295_v50  ;;  %v2297_v55 = vpop.eup %2296 }
0x186d   :  { %2298 = vrcp.f32 %v1407_v53 }
0x186e   :  { %2300 = vpow2.f32 %v2017_v3 }
0x1877   :  { %v2299_v57 = vpop.eup %2298 }
0x1878   :  { %v1412_v59 = vmul.f32 %v2299_v57, %v2297_v55  ;;  %v2301_v4 = vpop.eup %2300  ;;  %v1410_v62 = vmul.f32 %v2299_v57, %v1336_v27 }
0x1879   :  { %v1421_v61 = vadd.f32 1.0, %v2301_v4 }
0x187a   :  { %1414 = vrot.lane.b32.xlu1 %v1412_v59, %s2363_s24 }
0x187b   :  { %2302 = vrcp.f32 %v1421_v61 }
0x1885   :  { %v2303_v56 = vpop.eup %2302 }
0x18ec   :  { %v1415_v9 = vpop.permute.xlu1 %1414 }
0x18ed   :  { %v1417_v10 = vadd.f32 %v1415_v9, %v1410_v62 }
0x18ef   :  { %2304 = vtanh.f32 %v1417_v10 }
0x18f9   :  { %v2305_v11 = vpop.eup %2304 }
0x18fa   :  { %v2908_v12 = vmul.f32 %v2305_v11, %v2303_v56 }
0x18fc   :  { %v1435_v13 = vpack.c.bf16 %v2908_v12, %v2908_v12 }
0x18fe   :  { %1437 = vrot.lane.b32.xlu0 %v1435_v13, %s2363_s24 }
0x1970   :  { %v1438_v14 = vpop.permute.xlu0 %1437 }
0x1971   :  { %2018 = vmatmul.mubr.msk.bf16.vlgmr.msra.gmra.mrb[36].mxu0 %vm80_vm0, %v1438_v14 }
0x1972   :  { %1605 = vmatpush1.bf16.msra.mxu0 %v2660_v42  ;;  %1636 = vmatprep.mubr.bf16.mxu0 %v2362_v1  ;;  %v960_v42 = vadd.f32 %v2859_v33, %v2778_v39 }
0x1973   :  { %1606 = vmatprep.subr.bf16.mxu0 %v2666_v43 }
0x1976   :  { %1607 = vmatpush1.bf16.msra.mxu0 %v2679_v46 }
0x1977   :  { %1608 = vmatprep.subr.bf16.mxu0 %v2697_v52 }
0x197a   :  { %1609 = vmatpush1.bf16.msra.mxu0 %v2705_v54 }
0x197b   :  { %1610 = vmatprep.subr.bf16.mxu0 %v2715_v58 }
0x197e   :  { %1611 = vmatpush1.bf16.msra.mxu0 %v2724_v60 }
0x1a44   :  { %v1476_v16 = vpop.f32.mrb[36].mxu0 }
0x1a45   :  { %v1483_v1 = vadd.f32 %v1476_v16, %v958_v15  ;;  %v1478_v18 = vpop.f32.mrb[37].mxu0 }
0x1a46   :  { %v1484_v43 = vadd.f32 %v1478_v18, %v960_v42  ;;  %v1480_v41 = vpop.f32.mrb[38].mxu0 }
0x1a47   :  { %v2019_v46 = vmul.f32 -1.442695, %v1483_v1  ;;  %v1481_v19 = vpop.f32.mrb[39].mxu0 }
0x1a48   :  { %v2020_v5 = vmul.f32 -1.442695, %v1484_v43 }
0x1a49   :  { %2306 = vpow2.f32 %v2019_v46 }
0x1a4a   :  { %2308 = vtanh.f32 %v1484_v43 }
0x1a53   :  { %v2307_v52 = vpop.eup %2306 }
0x1a54   :  { %v1488_v54 = vadd.f32 1.0, %v2307_v52  ;;  %v2309_v58 = vpop.eup %2308 }
0x1a56   :  { %2310 = vrcp.f32 %v1488_v54 }
0x1a57   :  { %2312 = vpow2.f32 %v2020_v5  ;;  %v2149_v5 = vld [vmem:[%s3046_s5 + $0x18] sm:$0xff]  }
0x1a60   :  { %v2311_v60 = vpop.eup %2310 }
0x1a61   :  { %v1493_v22 = vmul.f32 %v2311_v60, %v2309_v58  ;;  %v2313_v33 = vpop.eup %2312  ;;  %v1491_v26 = vmul.f32 %v2311_v60, %v1417_v10 }
0x1a62   :  { %v1502_v21 = vadd.f32 1.0, %v2313_v33 }
0x1a63   :  { %1495 = vrot.lane.b32.xlu1 %v1493_v22, %s2363_s24 }
0x1a64   :  { %2314 = vrcp.f32 %v1502_v21 }
0x1a6e   :  { %v2315_v20 = vpop.eup %2314 }
0x1ad5   :  { %v1496_v23 = vpop.permute.xlu1 %1495 }
0x1ad6   :  { %v1498_v0 = vadd.f32 %v1496_v23, %v1491_v26 }
0x1ad8   :  { %2316 = vtanh.f32 %v1498_v0 }
0x1ae2   :  { %v2317_v31 = vpop.eup %2316 }
0x1ae3   :  { %v2927_v24 = vmul.f32 %v2317_v31, %v2315_v20 }
0x1ae5   :  { %v1516_v25 = vpack.c.bf16 %v2927_v24, %v2927_v24 }
0x1ae7   :  { %1518 = vrot.lane.b32.xlu0 %v1516_v25, %s2363_s24 }
0x1b59   :  { %v1519_v27 = vpop.permute.xlu0 %1518 }
0x1b5a   :  { %2021 = vmatmul.mubr.msk.bf16.vlgmr.msra.gmra.mrb[32].mxu1 %vm80_vm0, %v1519_v27 }
0x1c2d   :  { %v1557_v30 = vpop.f32.mrb[32].mxu1 }
0x1c2e   :  { %v1564_v6 = vadd.f32 %v1557_v30, %v964_v2  ;;  %v1559_v7 = vpop.f32.mrb[33].mxu1 }
0x1c2f   :  { %v1565_v8 = vadd.f32 %v1559_v7, %v966_v28  ;;  %v1561_v32 = vpop.f32.mrb[34].mxu1 }
0x1c30   :  { %v2022_v35 = vmul.f32 -1.442695, %v1564_v6  ;;  %v1562_v37 = vpop.f32.mrb[35].mxu1 }
0x1c31   :  { %v2023_v34 = vmul.f32 -1.442695, %v1565_v8 }
0x1c32   :  { %2318 = vpow2.f32 %v2022_v35 }
0x1c33   :  { %2320 = vtanh.f32 %v1565_v8 }
0x1c3c   :  { %v2319_v45 = vpop.eup %2318 }
0x1c3d   :  { %v1569_v47 = vadd.f32 1.0, %v2319_v45  ;;  %v2321_v48 = vpop.eup %2320 }
0x1c3f   :  { %2322 = vrcp.f32 %v1569_v47 }
0x1c40   :  { %2324 = vpow2.f32 %v2023_v34 }
0x1c49   :  { %v2323_v49 = vpop.eup %2322 }
0x1c4a   :  { %v1574_v50 = vmul.f32 %v2323_v49, %v2321_v48  ;;  %v2325_v36 = vpop.eup %2324  ;;  %v1572_v55 = vmul.f32 %v2323_v49, %v1498_v0 }
0x1c4b   :  { %v1583_v53 = vadd.f32 1.0, %v2325_v36 }
0x1c4c   :  { %1576 = vrot.lane.b32.xlu1 %v1574_v50, %s2363_s24 }
0x1c4d   :  { %2326 = vrcp.f32 %v1583_v53 }
0x1c57   :  { %v2327_v3 = vpop.eup %2326 }
0x1cbe   :  { %v1577_v57 = vpop.permute.xlu1 %1576 }
0x1cbf   :  { %v1579_v59 = vadd.f32 %v1577_v57, %v1572_v55 }
0x1cc1   :  { %2328 = vtanh.f32 %v1579_v59 }
0x1ccb   :  { %v2329_v4 = vpop.eup %2328 }
0x1ccc   :  { %v1587_v61 = vmul.f32 %v2329_v4, %v2327_v3 }
0x1cce   :  { %v1597_v62 = vpack.c.bf16 %v1587_v61, %v1587_v61 }
0x1cd0   :  { %1599 = vrot.lane.b32.xlu0 %v1597_v62, %s2363_s24 }
0x1cd4   :  { %1104 = vrot.lane.b32.xlu0 %v2786_v17, %s2363_s24 }
0x1cd8   :  { %1589 = vrot.lane.b32.xlu0 %v1587_v61, %s2363_s24  ;;  %v2035_v61 = vld [vmem:[%s3047_s6] ss:$0 sm:$0xff] }
0x1cdc   :  { %1265 = vrot.lane.b32.xlu0 %v2871_v63, %s2363_s24  ;;  %v968_v63 = vadd.f32 %v2865_v40, %v2776_v38  ;;  %v2146_v38 = vld [vmem:[%s3046_s5] sm:$0xff]  }
0x1cdd   :  { %2044 = vmatprep.subr.bf16.mxu1 %v2146_v38 }
0x1cde   :  { %2045 = vmatpush3.bf16.msra.mxu1 %v2146_v38 }
0x1ce0   :  { %1427 = vrot.lane.b32.xlu0 %v2908_v12, %s2363_s24  ;;  %v970_v12 = vadd.f32 %v2867_v44, %v2778_v39 }
0x1d42   :  { %v1600_v9 = vpop.permute.xlu0 %1599 }
0x1d43   :  { %2024 = vmatmul.mubr.msk.bf16.vlgmr.msra.gmra.mrb[40].mxu0 %vm80_vm0, %v1600_v9 }
0x1d46   :  { %v1105_v10 = vpop.permute.xlu0 %1104 }
0x1d47   :  { %1107 = vst.msk [vmem:[#allocation4] sm:$0xff] %vm80_vm0, %v1105_v10 }
0x1d4a   :  { %v1590_v56 = vpop.permute.xlu0 %1589 }
0x1d4b   :  { %1593 = vst.msk [vmem:[#allocation4 + $0x30] sm:$0xff] %vm80_vm0, %v1590_v56 }
0x1d4e   :  { %v1266_v11 = vpop.permute.xlu0 %1265  ;;  %v1675_v25 = vld [vmem:[#allocation4] sm:$0xff] }
0x1d4f   :  { %1269 = vst.msk [vmem:[#allocation4 + $0x10] sm:$0xff] %vm80_vm0, %v1266_v11 }
0x1d52   :  { %v1428_v17 = vpop.permute.xlu0 %1427  ;;  %v1679_v2 = vld [vmem:[#allocation4 + $0x30] sm:$0xff] }
0x1d53   :  { %1431 = vst.msk [vmem:[#allocation4 + $0x20] sm:$0xff] %vm80_vm0, %v1428_v17 }
0x1d56   :  { %v1681_v7 = vld [vmem:[#allocation4 + $0x10] sm:$0xff] }
0x1d5a   :  { %v1685_v32 = vld [vmem:[#allocation4 + $0x20] sm:$0xff] }
0x1e16   :  { %v1638_v13 = vpop.f32.mrb[40].mxu0 }
0x1e17   :  { %v1645_v14 = vadd.f32 %v1638_v13, %v968_v63  ;;  %v1640_v15 = vpop.f32.mrb[41].mxu0 }
0x1e18   :  { %v1646_v42 = vadd.f32 %v1640_v15, %v970_v12  ;;  %v1642_v16 = vpop.f32.mrb[42].mxu0 }
0x1e19   :  { %v2025_v1 = vmul.f32 -1.442695, %v1645_v14  ;;  %v1643_v18 = vpop.f32.mrb[43].mxu0 }
0x1e1a   :  { %v2026_v39 = vmul.f32 -1.442695, %v1646_v42 }
0x1e1b   :  { %2330 = vpow2.f32 %v2025_v1 }
0x1e1c   :  { %2332 = vtanh.f32 %v1646_v42 }
0x1e25   :  { %v2331_v43 = vpop.eup %2330 }
0x1e26   :  { %v1650_v41 = vadd.f32 1.0, %v2331_v43  ;;  %v2333_v46 = vpop.eup %2332 }
0x1e28   :  { %2334 = vrcp.f32 %v1650_v41 }
0x1e29   :  { %2336 = vpow2.f32 %v2026_v39 }
0x1e32   :  { %v2335_v19 = vpop.eup %2334 }
0x1e33   :  { %v1655_v52 = vmul.f32 %v2335_v19, %v2333_v46  ;;  %v2337_v40 = vpop.eup %2336  ;;  %v1653_v54 = vmul.f32 %v2335_v19, %v1579_v59 }
0x1e34   :  { %v1664_v44 = vadd.f32 1.0, %v2337_v40 }
0x1e35   :  { %1657 = vrot.lane.b32.xlu1 %v1655_v52, %s2363_s24 }
0x1e36   :  { %2338 = vrcp.f32 %v1664_v44 }
0x1e39   :  { %1184 = vrot.lane.b32.xlu1 %v2817_v51, %s2363_s24  ;;  %v2147_v51 = vld [vmem:[%s3046_s5 + $0x8] sm:$0xff]  }
0x1e3a   :  { %2046 = vmatprep.subr.bf16.mxu1 %v2147_v51 }
0x1e3b   :  { %2047 = vmatpush3.bf16.msra.mxu1 %v2147_v51 }
0x1e3d   :  { %1346 = vrot.lane.b32.xlu1 %v2889_v29, %s2363_s24  ;;  %v2148_v29 = vld [vmem:[%s3046_s5 + $0x10] sm:$0xff]  }
0x1e3e   :  { %2048 = vmatprep.subr.bf16.mxu1 %v2148_v29 }
0x1e3f   :  { %2049 = vmatpush3.bf16.msra.mxu1 %v2148_v29 }
0x1e40   :  { %2050 = vmatprep.subr.bf16.mxu1 %v2149_v5  ;;  %v2339_v21 = vpop.eup %2338 }
0x1e43   :  { %2051 = vmatpush3.bf16.msra.mxu1 %v2149_v5 }
0x1ea7   :  { %v1658_v58 = vpop.permute.xlu1 %1657 }
0x1ea8   :  { %v1660_v60 = vadd.f32 %v1658_v58, %v1653_v54 }
0x1eaa   :  { %2340 = vtanh.f32 %v1660_v60 }
0x1eab   :  { %v1185_v22 = vpop.permute.xlu1 %1184 }
0x1eac   :  { %1188 = vst.msk [vmem:[#allocation4 + $0x8] sm:$0xff] %vm80_vm0, %v1185_v22 }
0x1eaf   :  { %v1347_v33 = vpop.permute.xlu1 %1346 }
0x1eb0   :  { %1350 = vst.msk [vmem:[#allocation4 + $0x18] sm:$0xff] %vm80_vm0, %v1347_v33 }
0x1eb3   :  { %v1678_v31 = vld [vmem:[#allocation4 + $0x8] sm:$0xff] }
0x1eb4   :  { %v2341_v26 = vpop.eup %2340  ;;  %v2983_v30 = vsel %vm731_vm1, %v1678_v31, %v1679_v2  ;;  %v3010_v34 = vsel %vm731_vm1, %v1679_v2, %v1678_v31 }
0x1eb5   :  { %v1668_v23 = vmul.f32 %v2341_v26, %v2339_v21 }
0x1eb7   :  { %1670 = vrot.lane.b32.xlu1 %v1668_v23, %s2363_s24  ;;  %v1865_v23 = vld [vmem:[%s3048_s7] sm:$0xff] }
0x1ebb   :  { %1508 = vrot.lane.b32.xlu1 %v2927_v24, %s2363_s24  ;;  %v1684_v24 = vld [vmem:[#allocation4 + $0x18] sm:$0xff] }
0x1ebc   :  { %v2992_v37 = vsel %vm731_vm1, %v1684_v24, %v1685_v32  ;;  %v2995_v45 = vsel %vm731_vm1, %v1685_v32, %v1684_v24 }
0x1f29   :  { %v1671_v0 = vpop.permute.xlu1 %1670 }
0x1f2a   :  { %1674 = vst.msk [vmem:[#allocation4 + $0x38] sm:$0xff] %vm80_vm0, %v1671_v0 }
0x1f2d   :  { %v1509_v20 = vpop.permute.xlu1 %1508 }
0x1f2e   :  { %1512 = vst.msk [vmem:[#allocation4 + $0x28] sm:$0xff] %vm80_vm0, %v1509_v20 }
0x1f31   :  { %v1676_v27 = vld [vmem:[#allocation4 + $0x38] sm:$0xff] }
0x1f32   :  { %v2980_v28 = vsel %vm731_vm1, %v1675_v25, %v1676_v27  ;;  %v3007_v50 = vsel %vm731_vm1, %v1676_v27, %v1675_v25  ;;  %v1866_v27 = vmul.f32 10000.0, %v1865_v23 }
0x1f33   :  { %v1691_v6 = vpack.c.bf16 %v2983_v30, %v2980_v28  ;;  %v1694_v36 = vpack.c.bf16 %v3007_v50, %v3010_v34 }
0x1f35   :  { %2052 = vmatprep.mubr.msk.bf16.mxu1 %vm80_vm0, %v1691_v6  ;;  %v1682_v8 = vld [vmem:[#allocation4 + $0x28] sm:$0xff] }
0x1f36   :  { %v2989_v35 = vsel %vm731_vm1, %v1681_v7, %v1682_v8  ;;  %v2998_v47 = vsel %vm731_vm1, %v1682_v8, %v1681_v7 }
0x1f37   :  { %v1692_v48 = vpack.c.bf16 %v2992_v37, %v2989_v35  ;;  %v1693_v49 = vpack.c.bf16 %v2998_v47, %v2995_v45 }
0x1f39   :  { %2053 = vmatmul.mubr.msk.bf16.vlgmr.msra.gmra.mrb[36].mxu1 %vm80_vm0, %v1692_v48 }
0x1f3a   :  { %2056 = vmatprep.mubr.msk.bf16.mxu1 %vm80_vm0, %v1693_v49 }
0x1f41   :  { %2057 = vmatmul.mubr.msk.bf16.gmra.mrb[40].mxu1 %vm80_vm0, %v1694_v36 }
0x200c   :  { %v2054_v53 = vpop.f32.mrb[36].mxu1 }
0x200d   :  { %2342 = vtanh.f32 %v2054_v53  ;;  %v1773_v55 = vpop.f32.mrb[37].mxu1 }
0x200e   :  { %2344 = vtanh.f32 %v1773_v55  ;;  %v2055_v57 = vpop.f32.mrb[38].mxu1  ;;  %v2364_v55 = vmov 1  }
0x200f   :  { %v1776_v59 = vpop.f32.mrb[39].mxu1  ;;  %2090 = vset.pattern.permute.xlu0 %v2364_v55 }
0x2010   :  { %2346 = vtanh.f32 %v1776_v59 }
0x2011   :  { %2348 = vtanh.f32 %v2055_v57 }
0x2014   :  { %v2058_v3 = vpop.f32.mrb[40].mxu1 }
0x2015   :  { %2350 = vtanh.f32 %v2058_v3  ;;  %v1789_v4 = vpop.f32.mrb[41].mxu1 }
0x2016   :  { %2352 = vtanh.f32 %v1789_v4  ;;  %v2059_v62 = vpop.f32.mrb[42].mxu1  ;;  %v2365_v4 = vmov 2  }
0x2017   :  { %v2343_v9 = vpop.eup %2342  ;;  %v1792_v10 = vpop.f32.mrb[43].mxu1 }
0x2018   :  { %v2345_v56 = vpop.eup %2344  ;;  %2354 = vtanh.f32 %v1792_v10  ;;  %v1821_v11 = vmul.f32 %v2343_v9, %v2035_v61  ;;  %v2368_v9 = vmov 4   ;;  %v2369_v10 = vmov 5  }
0x2019   :  { %2356 = vtanh.f32 %v2059_v62  ;;  %v1819_v12 = vmul.f32 %v2345_v56, %v2035_v61  ;;  %v2367_v62 = vmov 3   ;;  %v2370_v56 = vmov 6  }
0x201a   :  { %v2347_v17 = vpop.eup %2346  ;;  %v1833_v63 = vsel %vm80_vm0, %v1821_v11, 0.0 }
0x201b   :  { %v2349_v13 = vpop.eup %2348  ;;  %1834 = vadd.xlane.f32.xlu0 %v1833_v63  ;;  %v1820_v14 = vmul.f32 %v2347_v17, %v2035_v61  ;;  %v1827_v42 = vsel %vm80_vm0, %v1819_v12, 0.0 }
0x201c   :  { %v1822_v16 = vmul.f32 %v2349_v13, %v2035_v61 }
0x201d   :  { %v1830_v15 = vsel %vm80_vm0, %v1820_v14, 0.0 }
0x201e   :  { %1831 = vadd.xlane.f32.xlu1 %v1830_v15  ;;  %v1836_v46 = vsel %vm80_vm0, %v1822_v16, 0.0 }
0x201f   :  { %v2351_v1 = vpop.eup %2350  ;;  %1828 = vadd.xlane.f32.xlu0 %v1827_v42 }
0x2020   :  { %v2353_v18 = vpop.eup %2352  ;;  %v1825_v39 = vmul.f32 %v2351_v1, %v2035_v61 }
0x2021   :  { %v1823_v43 = vmul.f32 %v2353_v18, %v2035_v61 }
0x2022   :  { %v2355_v41 = vpop.eup %2354  ;;  %v1845_v54 = vsel %vm80_vm0, %v1825_v39, 0.0 }
0x2023   :  { %v2357_v19 = vpop.eup %2356  ;;  %1837 = vadd.xlane.f32.xlu0 %v1836_v46  ;;  %v1839_v52 = vsel %vm80_vm0, %v1823_v43, 0.0  ;;  %v1824_v38 = vmul.f32 %v2355_v41, %v2035_v61 }
0x2024   :  { %1840 = vadd.xlane.f32.xlu1 %v1839_v52  ;;  %v1826_v44 = vmul.f32 %v2357_v19, %v2035_v61  ;;  %v2366_v61 = vmov 7  }
0x2025   :  { %v1842_v40 = vsel %vm80_vm0, %v1824_v38, 0.0 }
0x2026   :  { %v1848_v58 = vsel %vm80_vm0, %v1826_v44, 0.0 }
0x2027   :  { %1843 = vadd.xlane.f32.xlu0 %v1842_v40 }
0x2028   :  { %1846 = vadd.xlane.f32.xlu1 %v1845_v54 }
0x202b   :  { %1849 = vadd.xlane.f32.xlu0 %v1848_v58 }
0x20a8   :  { %v1835_v60 = vpop.xlane.xlu0 %1834 }
0x20ab   :  { %v1832_v51 = vpop.xlane.xlu1 %1831 }
0x20ac   :  { %v1829_v22 = vpop.xlane.xlu0 %1828 }
0x20ad   :  { %v1852_v29 = vsel %vm1851_vm3, %v1829_v22, %v1832_v51 }
0x20ae   :  { %v1854_v33 = vsel %vm1853_vm4, %v1852_v29, %v1835_v60 }
0x20b0   :  { %v1838_v5 = vpop.xlane.xlu0 %1837 }
0x20b1   :  { %v1856_v21 = vsel %vm1855_vm5, %v1854_v33, %v1838_v5  ;;  %v1841_v26 = vpop.xlane.xlu1 %1840 }
0x20b2   :  { %v1858_v0 = vsel %vm1857_vm6, %v1856_v21, %v1841_v26 }
0x20b4   :  { %v1844_v20 = vpop.xlane.xlu0 %1843 }
0x20b5   :  { %v1860_v31 = vsel %vm1859_vm7, %v1858_v0, %v1844_v20  ;;  %v1847_v25 = vpop.xlane.xlu1 %1846 }
0x20b6   :  { %v1862_v2 = vsel %vm1861_vm8, %v1860_v31, %v1847_v25 }
0x20b8   :  { %v1850_v6 = vpop.xlane.xlu0 %1849 }
0x20b9   :  { %v1864_v24 = vsel %vm1863_vm9, %v1862_v2, %v1850_v6 }
0x20ba   :  { %v1867_v7 = vsub.f32 %v1864_v24, %v1866_v27 }
0x20bc   :  { %v1869_v8 = vsel %vm1868_vm10, %v1867_v7, -inf }
0x20bd   :  { %1870 = vmax.xlane.f32.xlu1 %v1869_v8 }
0x214a   :  { %v1871_v32 = vpop.xlane.xlu1 %1870 }
0x214b   :  { %v1872_v48 = vsub.f32 %v1867_v7, %v1871_v32 }
0x214d   :  { %v1873_v49 = vmul.f32 1.442695, %v1872_v48 }
0x214f   :  { %2358 = vpow2.f32 %v1873_v49 }
0x2159   :  { %v2359_v36 = vpop.eup %2358 }
0x215a   :  { %v1875_v53 = vsel %vm1868_vm10, %v2359_v36, 0.0 }
0x215b   :  { %1876 = vadd.xlane.f32.xlu0 %v1875_v53 }
0x21e8   :  { %v1877_v57 = vpop.xlane.xlu0 %1876 }
0x21e9   :  { %2360 = vrcp.f32 %v1877_v57 }
0x21f3   :  { %v2361_v59 = vpop.eup %2360 }
0x21f4   :  { %v1880_v3 = vmul.f32 %v2361_v59, %v2359_v36 }
0x21f6   :  { %1889 = vperm.xlu0 %2090, %v1880_v3   ;;  %1883 = vperm.xlu1 %2089, %v1880_v3  }
0x21fa   :  { %2091 = vset.pattern.permute.xlu1 %v2365_v4  ;;  %2097 = vset.pattern.permute.xlu0 %v2366_v61 }
0x21fb   :  { %1895 = vperm.xlu1 %2091, %v1880_v3  }
0x21ff   :  { %2092 = vset.pattern.permute.xlu1 %v2367_v62 }
0x2200   :  { %1901 = vperm.xlu1 %2092, %v1880_v3  }
0x2204   :  { %2093 = vset.pattern.permute.xlu1 %v2368_v9 }
0x2205   :  { %1907 = vperm.xlu1 %2093, %v1880_v3  }
0x2209   :  { %2094 = vset.pattern.permute.xlu1 %v2369_v10 }
0x220a   :  { %1913 = vperm.xlu1 %2094, %v1880_v3  }
0x220e   :  { %2095 = vset.pattern.permute.xlu1 %v2370_v56 }
0x220f   :  { %1919 = vperm.xlu1 %2095, %v1880_v3  }
0x2213   :  { %2096 = vset.pattern.permute.xlu1 %v2366_v61 }
0x2214   :  { %1925 = vperm.xlu1 %2096, %v1880_v3  }
0x2275   :  { %v1884_v11 = vpop.permute.xlu1 %1883  ;;  %v1890_v12 = vpop.permute.xlu0 %1889 }
0x2276   :  { %v1892_v14 = vmul.f32 %v1890_v12, %v2983_v30  ;;  %v1886_v15 = vmul.f32 %v1884_v11, %v2980_v28 }
0x2278   :  { %v1893_v1 = vadd.f32 %v1892_v14, %v1886_v15 }
0x227a   :  { %v1896_v17 = vpop.permute.xlu1 %1895 }
0x227b   :  { %v1898_v42 = vmul.f32 %v1896_v17, %v2989_v35 }
0x227d   :  { %v1899_v43 = vadd.f32 %v1898_v42, %v1893_v1 }
0x227f   :  { %v1902_v63 = vpop.permute.xlu1 %1901 }
0x2280   :  { %v1904_v18 = vmul.f32 %v1902_v63, %v2992_v37 }
0x2282   :  { %v1905_v46 = vadd.f32 %v1904_v18, %v1899_v43 }
0x2284   :  { %v1908_v13 = vpop.permute.xlu1 %1907 }
0x2285   :  { %v1910_v41 = vmul.f32 %v1908_v13, %v2995_v45 }
0x2287   :  { %v1911_v38 = vadd.f32 %v1910_v41, %v1905_v46 }
0x2289   :  { %v1914_v16 = vpop.permute.xlu1 %1913 }
0x228a   :  { %v1916_v19 = vmul.f32 %v1914_v16, %v2998_v47 }
0x228c   :  { %v1917_v40 = vadd.f32 %v1916_v19, %v1911_v38 }
0x228e   :  { %v1920_v52 = vpop.permute.xlu1 %1919 }
0x228f   :  { %v1922_v39 = vmul.f32 %v1920_v52, %v3010_v34 }
0x2291   :  { %v1923_v44 = vadd.f32 %v1922_v39, %v1917_v40 }
0x2293   :  { %v1926_v30 = vpop.permute.xlu1 %1925 }
0x2294   :  { %v1928_v28 = vmul.f32 %v1926_v30, %v3007_v50 }
0x2296   :  { %v1929_v35 = vadd.f32 %v1928_v28, %v1923_v44 }
0x2298   :  { %1930 = vst.msk [vmem:[%s3049_s8] sm:$0xff] %vm80_vm0, %v1929_v35 }

</bundles_post_ra>
